<compile_context>
chip_gen: v5e
topology: v5e:2x2
jax: 0.10.0
libtpu: 0.0.40
codegen_flags: <defaults>
</compile_context>

<pallas_src>
import functools

import jax
import jax.numpy as jnp
from jax.experimental import pallas as pl
from jax.experimental.pallas import tpu as pltpu

_LANE = 128


def _round_up(x, m):
    return ((x + m - 1) // m) * m


def _vmem_tile_bytes(shape, dtype):
    """VMEM footprint of an array including (sublane, lane) tile padding."""
    itemsize = jnp.dtype(dtype).itemsize
    rows_per_tile = 8 * max(1, 4 // itemsize)
    shape = tuple(shape)
    if len(shape) < 2:
        shape = (1,) * (2 - len(shape)) + shape
    lead = 1
    for d in shape[:-2]:
        lead *= d
    r = _round_up(shape[-2], rows_per_tile)
    c = _round_up(shape[-1], _LANE)
    return lead * r * c * itemsize


def _vmem_budget():
    """Generation-aware VMEM sizing (v5e/v6e: 128 MiB, v7x: 64 MiB)."""
    try:
        cap = int(pltpu.get_tpu_info().vmem_capacity_bytes)
        if cap <= 0:
            cap = 64 * 1024 * 1024
    except Exception:
        cap = 64 * 1024 * 1024            # conservative fallback (v7x)
    budget = int(cap * 0.40)              # per-grid-step working-set target
    limit = min(int(cap * 0.80), 110 * 1024 * 1024)
    return budget, limit


def _choose_tiles(m_valid, cin, cout_p, k, halo_p, in_dtype, out_dtype, budget):
    """Pick (tm, cout_t): tm a multiple of halo_p, under the VMEM budget."""
    kk = k * k

    def vmem_need(tm, ct):
        return (2 * _vmem_tile_bytes((tm, cin), in_dtype)          # row tile (dbl buf)
                + 2 * _vmem_tile_bytes((halo_p, cin), in_dtype)    # halo tile
                + 2 * _vmem_tile_bytes((kk, cin, ct), in_dtype)    # weights
                + 4 * _vmem_tile_bytes((1, ct), jnp.float32)       # scale + bias
                + 2 * _vmem_tile_bytes((tm, ct), out_dtype)        # output
                + _vmem_tile_bytes((tm + halo_p, cin), in_dtype)   # stitch scratch
                + _vmem_tile_bytes((tm, ct), jnp.float32)          # f32 accumulator
                + (2 << 20))                                       # compiler slack

    def pick_tm(ct):
        tm_cap = max(halo_p, (4096 // halo_p) * halo_p)
        tm = max(halo_p, min(_round_up(m_valid, halo_p), tm_cap))
        while tm > halo_p and vmem_need(tm, ct) > budget:
            tm = max(halo_p, ((tm // 2) // halo_p) * halo_p)
        return tm

    # Only split Cout when it is wide (keeps weights resident across the grid
    # for the common case and keeps output stores lane-dense).
    if cout_p <= 512:
        cout_t = cout_p
    elif cout_p % 256 == 0:
        cout_t = 256
    else:
        cout_t = 128
    tm = pick_tm(cout_t)
    if cout_t > 128 and vmem_need(tm, cout_t) > budget:
        cout_t = 128
        tm = pick_tm(cout_t)
    return tm, cout_t


def _make_conv_kernel(k, w_pad, tm, halo_p, cout_t):
    """Fused implicit-GEMM conv + BN(scale,bias) + ReLU kernel body."""
    kk_total = k * k

    def kernel(xa_ref, xh_ref, w_ref, scale_ref, bias_ref, o_ref, xbuf_ref):
        # Stitch the row tile and its lookahead halo into one contiguous VMEM
        # buffer so the K*K shifted views below are plain static slices.
        xbuf_ref[pl.ds(0, tm), :] = xa_ref[...]
        xbuf_ref[pl.ds(tm, halo_p), :] = xh_ref[...]

        # K*K shifted matmuls, f32 accumulation on the MXU.
        acc = jnp.dot(xa_ref[...], w_ref[0], preferred_element_type=jnp.float32)
        for kk in range(1, kk_total):
            off = (kk // k) * w_pad + (kk % k)
            acc = acc + jnp.dot(xbuf_ref[pl.ds(off, tm), :], w_ref[kk],
                                preferred_element_type=jnp.float32)

        # Folded BatchNorm (f32 per-channel scale + bias) and ReLU epilogue.
        y = acc * scale_ref[...] + bias_ref[...]
        o_ref[...] = jnp.maximum(y, 0.0).astype(o_ref.dtype)

    return kernel


@functools.partial(jax.jit,
                   static_argnames=("kernel_size", "stride", "padding",
                                    "compute_dtype"))
def cnn_block_forward(x_nchw, conv_w, conv_b, bn_gamma, bn_beta, bn_mean, bn_var,
                      *, kernel_size, stride, padding, eps=1e-5,
                      compute_dtype=jnp.bfloat16):
    """CNNBlock forward: Conv2d -> BatchNorm2d (eval, folded) -> ReLU."""
    n, cin, h, w = x_nchw.shape
    cout = conv_w.shape[0]
    k, s, p = kernel_size, stride, padding

    hp, wp = h + 2 * p, w + 2 * p
    oh_s = (h + 2 * p - k) // s + 1          # module (strided) output dims
    ow_s = (w + 2 * p - k) // s + 1

    # ---- glue: NCHW -> flattened, spatially padded NHWC ---------------------
    x_nhwc = jnp.transpose(x_nchw, (0, 2, 3, 1))
    x_pad = jnp.pad(x_nhwc, ((0, 0), (p, p), (p, p), (0, 0))).astype(compute_dtype)
    x_flat = x_pad.reshape(n * hp * wp, cin)

    # weights: OIHW -> (kh*kw, Cin, Cout), matching the kernel's (kh, kw) loop
    w_r = jnp.transpose(conv_w, (2, 3, 1, 0)).reshape(k * k, cin, cout)

    # ---- BatchNorm folding (inference / running-stats semantics) ------------
    inv_std = jax.lax.rsqrt(bn_var.astype(jnp.float32) + eps)
    scale = bn_gamma.astype(jnp.float32) * inv_std                        # [Cout]
    bias = (bn_beta.astype(jnp.float32)
            + (conv_b.astype(jnp.float32) - bn_mean.astype(jnp.float32)) * scale)

    # ---- tiling / padding ----------------------------------------------------
    cout_p = _round_up(cout, _LANE)
    halo = (k - 1) * wp + (k - 1)            # flat-row lookahead a tile needs
    halo_p = _round_up(max(halo, 8), 8)
    budget, vmem_limit = _vmem_budget()
    m_valid = n * hp * wp
    out_dtype = x_nchw.dtype                 # flip to bf16 if the consumer allows
    tm, cout_t = _choose_tiles(m_valid, cin, cout_p, k, halo_p,
                               compute_dtype, out_dtype, budget)
    m_pad = _round_up(m_valid, tm)

    x_flat = jnp.pad(x_flat, ((0, m_pad + halo_p - m_valid), (0, 0)))
    w_p = jnp.pad(w_r, ((0, 0), (0, 0), (0, cout_p - cout))).astype(compute_dtype)
    scale_p = jnp.pad(scale, (0, cout_p - cout)).reshape(1, cout_p)
    bias_p = jnp.pad(bias, (0, cout_p - cout)).reshape(1, cout_p)

    grid = (m_pad // tm, cout_p // cout_t)
    hs = tm // halo_p                        # halo-blocks per row tile
    in_b = jnp.dtype(compute_dtype).itemsize
    cost = pl.CostEstimate(
        flops=2 * m_pad * cin * cout_p * k * k,
        transcendentals=0,
        bytes_accessed=(x_flat.size * in_b + grid[0] * halo_p * cin * in_b
                        + w_p.size * in_b + scale_p.size * 4 + bias_p.size * 4
                        + m_pad * cout_p * jnp.dtype(out_dtype).itemsize))

    kernel = _make_conv_kernel(k, wp, tm, halo_p, cout_t)

    out_flat = pl.pallas_call(
        kernel,
        out_shape=jax.ShapeDtypeStruct((m_pad, cout_p), out_dtype),
        grid=grid,
        in_specs=[
            pl.BlockSpec((tm, cin), lambda i, j: (i, 0)),                 # row tile
            pl.BlockSpec((halo_p, cin), lambda i, j: ((i + 1) * hs, 0)),  # halo rows
            pl.BlockSpec((k * k, cin, cout_t), lambda i, j: (0, 0, j)),   # weights
            pl.BlockSpec((1, cout_t), lambda i, j: (0, j)),               # BN scale
            pl.BlockSpec((1, cout_t), lambda i, j: (0, j)),               # BN bias
        ],
        out_specs=pl.BlockSpec((tm, cout_t), lambda i, j: (i, j)),
        scratch_shapes=[pltpu.VMEM((tm + halo_p, cin), compute_dtype)],
        compiler_params=pltpu.CompilerParams(
            dimension_semantics=("parallel", "parallel"),
            vmem_limit_bytes=vmem_limit),
        cost_estimate=cost,
    )(x_flat, x_flat, w_p, scale_p, bias_p)

    # ---- glue: un-flatten, drop seam/pad garbage, stride-subsample, NCHW ----
    y = out_flat[:m_valid].reshape(n, hp, wp, cout_p)
    y = y[:, :(oh_s - 1) * s + 1:s, :(ow_s - 1) * s + 1:s, :cout]
    return jnp.transpose(y, (0, 3, 1, 2))


def _reference(x_nchw, conv_w, conv_b, g, b, mean, var, stride, padding, eps=1e-5):
    y = jax.lax.conv_general_dilated(
        x_nchw, conv_w,
        window_strides=(stride, stride),
        padding=[(padding, padding), (padding, padding)],
        dimension_numbers=("NCHW", "OIHW", "NCHW"))
    y = y + conv_b[None, :, None, None]
    y = (y - mean[None, :, None, None]) / jnp.sqrt(var[None, :, None, None] + eps)
    y = y * g[None, :, None, None] + b[None, :, None, None]
    return jnp.maximum(y, 0.0)


if __name__ == "__main__":
    # small shapes consistent with the module
    N, Cin, H, W = 2, 4, 16, 16
    Cout, K, STRIDE, PAD = 8, 3, 1, 1

    key = jax.random.PRNGKey(0)
    kx, kw_, kb, kg, kbe, km, kv = jax.random.split(key, 7)

    x = jax.random.normal(kx, (N, Cin, H, W), jnp.float32)
    conv_w = jax.random.normal(kw_, (Cout, Cin, K, K), jnp.float32) * 0.1
    conv_b = jax.random.normal(kb, (Cout,), jnp.float32) * 0.1
    bn_gamma = 1.0 + 0.1 * jax.random.normal(kg, (Cout,), jnp.float32)
    bn_beta = 0.1 * jax.random.normal(kbe, (Cout,), jnp.float32)
    bn_mean = 0.1 * jax.random.normal(km, (Cout,), jnp.float32)
    bn_var = jnp.abs(jax.random.normal(kv, (Cout,), jnp.float32)) + 0.5

    out = cnn_block_forward(
        x, conv_w, conv_b, bn_gamma, bn_beta, bn_mean, bn_var,
        kernel_size=K, stride=STRIDE, padding=PAD)
    out = jax.block_until_ready(out)

    ref = _reference(x, conv_w, conv_b, bn_gamma, bn_beta, bn_mean, bn_var,
                     STRIDE, PAD)
    assert out.shape == (N, Cout, H, W), out.shape
    # bf16 matmul inputs with f32 accumulation and f32 BN epilogue.
    assert jnp.allclose(out, ref, atol=3e-2, rtol=3e-2), "mismatch vs reference"

    # stride=2 exercises the same kernel (dense conv + wrapper subsample)
    out2 = jax.block_until_ready(cnn_block_forward(
        x, conv_w, conv_b, bn_gamma, bn_beta, bn_mean, bn_var,
        kernel_size=K, stride=2, padding=PAD))
    ref2 = _reference(x, conv_w, conv_b, bn_gamma, bn_beta, bn_mean, bn_var,
                      2, PAD)
    assert out2.shape == ref2.shape, (out2.shape, ref2.shape)
    assert jnp.allclose(out2, ref2, atol=3e-2, rtol=3e-2), "strided mismatch"

    print("KERNEL_OK")
</pallas_src>

<mosaic_0001>
module attributes {stable_mosaic.version = 11 : i64} {
  func.func @kernel(%arg0: i32, %arg1: i32, %arg2: memref<680x4xbf16, #tpu.memory_space<vmem>>, %arg3: memref<40x4xbf16, #tpu.memory_space<vmem>>, %arg4: memref<9x4x128xbf16, #tpu.memory_space<vmem>>, %arg5: memref<1x128xf32, #tpu.memory_space<vmem>>, %arg6: memref<1x128xf32, #tpu.memory_space<vmem>>, %arg7: memref<680x128xf32, #tpu.memory_space<vmem>>, %arg8: memref<720x4xbf16, #tpu.memory_space<vmem>>) attributes {dimension_semantics = [#tpu.dimension_semantics<parallel>, #tpu.dimension_semantics<parallel>], iteration_bounds = array<i64: 1, 1>, scalar_prefetch = 0 : i64, scratch_operands = 1 : i64, tpu.core_type = #tpu.core_type<tc>, window_params = [{transform_indices = @transform_0, window_bounds = array<i64: 680, 4>}, {transform_indices = @transform_1, window_bounds = array<i64: 40, 4>}, {transform_indices = @transform_2, window_bounds = array<i64: 9, 4, 128>}, {transform_indices = @transform_3, window_bounds = array<i64: 1, 128>}, {transform_indices = @transform_4, window_bounds = array<i64: 1, 128>}, {transform_indices = @transform_5, window_bounds = array<i64: 680, 128>}]} {
    %c0 = arith.constant 0 : index
    %c0_0 = arith.constant 0 : index
    %0 = vector.load %arg2[%c0, %c0_0] : memref<680x4xbf16, #tpu.memory_space<vmem>>, vector<680x4xbf16>
    %c0_1 = arith.constant 0 : index
    %c0_2 = arith.constant 0 : index
    %1 = vector.load %arg8[%c0_1, %c0_2] : memref<720x4xbf16, #tpu.memory_space<vmem>>, vector<680x4xbf16>
    tpu.vector_store %arg8[%c0_1, %c0_2], %0 {strides = array<i32>} : memref<720x4xbf16, #tpu.memory_space<vmem>>, vector<680x4xbf16>,
    %c0_3 = arith.constant 0 : index
    %c0_4 = arith.constant 0 : index
    %2 = vector.load %arg3[%c0_3, %c0_4] : memref<40x4xbf16, #tpu.memory_space<vmem>>, vector<40x4xbf16>
    %c680 = arith.constant 680 : index
    %c0_5 = arith.constant 0 : index
    %3 = vector.load %arg8[%c680, %c0_5] : memref<720x4xbf16, #tpu.memory_space<vmem>>, vector<40x4xbf16>
    tpu.vector_store %arg8[%c680, %c0_5], %2 {strides = array<i32>} : memref<720x4xbf16, #tpu.memory_space<vmem>>, vector<40x4xbf16>,
    %c0_6 = arith.constant 0 : index
    %c0_7 = arith.constant 0 : index
    %4 = vector.load %arg2[%c0_6, %c0_7] : memref<680x4xbf16, #tpu.memory_space<vmem>>, vector<680x4xbf16>
    %c0_8 = arith.constant 0 : index
    %c0_9 = arith.constant 0 : index
    %c0_10 = arith.constant 0 : index
    %5 = vector.load %arg4[%c0_8, %c0_9, %c0_10] : memref<9x4x128xbf16, #tpu.memory_space<vmem>>, vector<1x4x128xbf16>
    %6 = vector.shape_cast %5 : vector<1x4x128xbf16> to vector<4x128xbf16>
    %cst = arith.constant dense<0.000000e+00> : vector<680x128xf32>
    %7 = tpu.matmul %4, %6, %cst {dimension_numbers = #tpu.dot_dimension_numbers<[1], [0], [0], [1], [0, 0, 1, 1], [], []>} : vector<680x4xbf16>, vector<4x128xbf16>, vector<680x128xf32> -> vector<680x128xf32>
    %c1 = arith.constant 1 : index
    %c0_11 = arith.constant 0 : index
    %8 = vector.load %arg8[%c1, %c0_11] : memref<720x4xbf16, #tpu.memory_space<vmem>>, vector<680x4xbf16>
    %c1_12 = arith.constant 1 : index
    %c0_13 = arith.constant 0 : index
    %c0_14 = arith.constant 0 : index
    %9 = vector.load %arg4[%c1_12, %c0_13, %c0_14] : memref<9x4x128xbf16, #tpu.memory_space<vmem>>, vector<1x4x128xbf16>
    %10 = vector.shape_cast %9 : vector<1x4x128xbf16> to vector<4x128xbf16>
    %cst_15 = arith.constant dense<0.000000e+00> : vector<680x128xf32>
    %11 = tpu.matmul %8, %10, %cst_15 {dimension_numbers = #tpu.dot_dimension_numbers<[1], [0], [0], [1], [0, 0, 1, 1], [], []>} : vector<680x4xbf16>, vector<4x128xbf16>, vector<680x128xf32> -> vector<680x128xf32>
    %12 = arith.addf %7, %11 : vector<680x128xf32>
    %c2 = arith.constant 2 : index
    %c0_16 = arith.constant 0 : index
    %13 = vector.load %arg8[%c2, %c0_16] : memref<720x4xbf16, #tpu.memory_space<vmem>>, vector<680x4xbf16>
    %c2_17 = arith.constant 2 : index
    %c0_18 = arith.constant 0 : index
    %c0_19 = arith.constant 0 : index
    %14 = vector.load %arg4[%c2_17, %c0_18, %c0_19] : memref<9x4x128xbf16, #tpu.memory_space<vmem>>, vector<1x4x128xbf16>
    %15 = vector.shape_cast %14 : vector<1x4x128xbf16> to vector<4x128xbf16>
    %cst_20 = arith.constant dense<0.000000e+00> : vector<680x128xf32>
    %16 = tpu.matmul %13, %15, %cst_20 {dimension_numbers = #tpu.dot_dimension_numbers<[1], [0], [0], [1], [0, 0, 1, 1], [], []>} : vector<680x4xbf16>, vector<4x128xbf16>, vector<680x128xf32> -> vector<680x128xf32>
    %17 = arith.addf %12, %16 : vector<680x128xf32>
    %c18 = arith.constant 18 : index
    %c0_21 = arith.constant 0 : index
    %18 = vector.load %arg8[%c18, %c0_21] : memref<720x4xbf16, #tpu.memory_space<vmem>>, vector<680x4xbf16>
    %c3 = arith.constant 3 : index
    %c0_22 = arith.constant 0 : index
    %c0_23 = arith.constant 0 : index
    %19 = vector.load %arg4[%c3, %c0_22, %c0_23] : memref<9x4x128xbf16, #tpu.memory_space<vmem>>, vector<1x4x128xbf16>
    %20 = vector.shape_cast %19 : vector<1x4x128xbf16> to vector<4x128xbf16>
    %cst_24 = arith.constant dense<0.000000e+00> : vector<680x128xf32>
    %21 = tpu.matmul %18, %20, %cst_24 {dimension_numbers = #tpu.dot_dimension_numbers<[1], [0], [0], [1], [0, 0, 1, 1], [], []>} : vector<680x4xbf16>, vector<4x128xbf16>, vector<680x128xf32> -> vector<680x128xf32>
    %22 = arith.addf %17, %21 : vector<680x128xf32>
    %c19 = arith.constant 19 : index
    %c0_25 = arith.constant 0 : index
    %23 = vector.load %arg8[%c19, %c0_25] : memref<720x4xbf16, #tpu.memory_space<vmem>>, vector<680x4xbf16>
    %c4 = arith.constant 4 : index
    %c0_26 = arith.constant 0 : index
    %c0_27 = arith.constant 0 : index
    %24 = vector.load %arg4[%c4, %c0_26, %c0_27] : memref<9x4x128xbf16, #tpu.memory_space<vmem>>, vector<1x4x128xbf16>
    %25 = vector.shape_cast %24 : vector<1x4x128xbf16> to vector<4x128xbf16>
    %cst_28 = arith.constant dense<0.000000e+00> : vector<680x128xf32>
    %26 = tpu.matmul %23, %25, %cst_28 {dimension_numbers = #tpu.dot_dimension_numbers<[1], [0], [0], [1], [0, 0, 1, 1], [], []>} : vector<680x4xbf16>, vector<4x128xbf16>, vector<680x128xf32> -> vector<680x128xf32>
    %27 = arith.addf %22, %26 : vector<680x128xf32>
    %c20 = arith.constant 20 : index
    %c0_29 = arith.constant 0 : index
    %28 = vector.load %arg8[%c20, %c0_29] : memref<720x4xbf16, #tpu.memory_space<vmem>>, vector<680x4xbf16>
    %c5 = arith.constant 5 : index
    %c0_30 = arith.constant 0 : index
    %c0_31 = arith.constant 0 : index
    %29 = vector.load %arg4[%c5, %c0_30, %c0_31] : memref<9x4x128xbf16, #tpu.memory_space<vmem>>, vector<1x4x128xbf16>
    %30 = vector.shape_cast %29 : vector<1x4x128xbf16> to vector<4x128xbf16>
    %cst_32 = arith.constant dense<0.000000e+00> : vector<680x128xf32>
    %31 = tpu.matmul %28, %30, %cst_32 {dimension_numbers = #tpu.dot_dimension_numbers<[1], [0], [0], [1], [0, 0, 1, 1], [], []>} : vector<680x4xbf16>, vector<4x128xbf16>, vector<680x128xf32> -> vector<680x128xf32>
    %32 = arith.addf %27, %31 : vector<680x128xf32>
    %c36 = arith.constant 36 : index
    %c0_33 = arith.constant 0 : index
    %33 = vector.load %arg8[%c36, %c0_33] : memref<720x4xbf16, #tpu.memory_space<vmem>>, vector<680x4xbf16>
    %c6 = arith.constant 6 : index
    %c0_34 = arith.constant 0 : index
    %c0_35 = arith.constant 0 : index
    %34 = vector.load %arg4[%c6, %c0_34, %c0_35] : memref<9x4x128xbf16, #tpu.memory_space<vmem>>, vector<1x4x128xbf16>
    %35 = vector.shape_cast %34 : vector<1x4x128xbf16> to vector<4x128xbf16>
    %cst_36 = arith.constant dense<0.000000e+00> : vector<680x128xf32>
    %36 = tpu.matmul %33, %35, %cst_36 {dimension_numbers = #tpu.dot_dimension_numbers<[1], [0], [0], [1], [0, 0, 1, 1], [], []>} : vector<680x4xbf16>, vector<4x128xbf16>, vector<680x128xf32> -> vector<680x128xf32>
    %37 = arith.addf %32, %36 : vector<680x128xf32>
    %c37 = arith.constant 37 : index
    %c0_37 = arith.constant 0 : index
    %38 = vector.load %arg8[%c37, %c0_37] : memref<720x4xbf16, #tpu.memory_space<vmem>>, vector<680x4xbf16>
    %c7 = arith.constant 7 : index
    %c0_38 = arith.constant 0 : index
    %c0_39 = arith.constant 0 : index
    %39 = vector.load %arg4[%c7, %c0_38, %c0_39] : memref<9x4x128xbf16, #tpu.memory_space<vmem>>, vector<1x4x128xbf16>
    %40 = vector.shape_cast %39 : vector<1x4x128xbf16> to vector<4x128xbf16>
    %cst_40 = arith.constant dense<0.000000e+00> : vector<680x128xf32>
    %41 = tpu.matmul %38, %40, %cst_40 {dimension_numbers = #tpu.dot_dimension_numbers<[1], [0], [0], [1], [0, 0, 1, 1], [], []>} : vector<680x4xbf16>, vector<4x128xbf16>, vector<680x128xf32> -> vector<680x128xf32>
    %42 = arith.addf %37, %41 : vector<680x128xf32>
    %c38 = arith.constant 38 : index
    %c0_41 = arith.constant 0 : index
    %43 = vector.load %arg8[%c38, %c0_41] : memref<720x4xbf16, #tpu.memory_space<vmem>>, vector<680x4xbf16>
    %c8 = arith.constant 8 : index
    %c0_42 = arith.constant 0 : index
    %c0_43 = arith.constant 0 : index
    %44 = vector.load %arg4[%c8, %c0_42, %c0_43] : memref<9x4x128xbf16, #tpu.memory_space<vmem>>, vector<1x4x128xbf16>
    %45 = vector.shape_cast %44 : vector<1x4x128xbf16> to vector<4x128xbf16>
    %cst_44 = arith.constant dense<0.000000e+00> : vector<680x128xf32>
    %46 = tpu.matmul %43, %45, %cst_44 {dimension_numbers = #tpu.dot_dimension_numbers<[1], [0], [0], [1], [0, 0, 1, 1], [], []>} : vector<680x4xbf16>, vector<4x128xbf16>, vector<680x128xf32> -> vector<680x128xf32>
    %47 = arith.addf %42, %46 : vector<680x128xf32>
    %c0_45 = arith.constant 0 : index
    %c0_46 = arith.constant 0 : index
    %48 = vector.load %arg5[%c0_45, %c0_46] : memref<1x128xf32, #tpu.memory_space<vmem>>, vector<1x128xf32>
    %49 = vector.broadcast %48 : vector<1x128xf32> to vector<680x128xf32>
    %50 = arith.mulf %47, %49 : vector<680x128xf32>
    %c0_47 = arith.constant 0 : index
    %c0_48 = arith.constant 0 : index
    %51 = vector.load %arg6[%c0_47, %c0_48] : memref<1x128xf32, #tpu.memory_space<vmem>>, vector<1x128xf32>
    %52 = vector.broadcast %51 : vector<1x128xf32> to vector<680x128xf32>
    %53 = arith.addf %50, %52 : vector<680x128xf32>
    %cst_49 = arith.constant 0.000000e+00 : f32
    %54 = vector.broadcast %cst_49 : f32 to vector<680x128xf32>
    %55 = arith.maximumf %53, %54 : vector<680x128xf32>
    %c0_50 = arith.constant 0 : index
    %c0_51 = arith.constant 0 : index
    %56 = vector.load %arg7[%c0_50, %c0_51] : memref<680x128xf32, #tpu.memory_space<vmem>>, vector<680x128xf32>
    tpu.vector_store %arg7[%c0_50, %c0_51], %55 {strides = array<i32>} : memref<680x128xf32, #tpu.memory_space<vmem>>, vector<680x128xf32>,
    return
  }
  func.func @transform_0(%arg0: i32, %arg1: i32) -> (i32, i32) {
    %c0_i32 = arith.constant 0 : i32
    %c0_i32_0 = arith.constant 0 : i32
    return %arg0, %c0_i32 : i32, i32
  }
  func.func @transform_1(%arg0: i32, %arg1: i32) -> (i32, i32) {
    %c1_i32 = arith.constant 1 : i32
    %0 = arith.addi %arg0, %c1_i32 : i32
    %c17_i32 = arith.constant 17 : i32
    %1 = arith.muli %0, %c17_i32 : i32
    %c0_i32 = arith.constant 0 : i32
    %c0_i32_0 = arith.constant 0 : i32
    return %1, %c0_i32 : i32, i32
  }
  func.func @transform_2(%arg0: i32, %arg1: i32) -> (i32, i32, i32) {
    %c0_i32 = arith.constant 0 : i32
    %c0_i32_0 = arith.constant 0 : i32
    %c0_i32_1 = arith.constant 0 : i32
    return %c0_i32, %c0_i32_0, %arg1 : i32, i32, i32
  }
  func.func @transform_3(%arg0: i32, %arg1: i32) -> (i32, i32) {
    %c0_i32 = arith.constant 0 : i32
    %c0_i32_0 = arith.constant 0 : i32
    return %c0_i32, %arg1 : i32, i32
  }
  func.func @transform_4(%arg0: i32, %arg1: i32) -> (i32, i32) {
    %c0_i32 = arith.constant 0 : i32
    %c0_i32_0 = arith.constant 0 : i32
    return %c0_i32, %arg1 : i32, i32
  }
  func.func @transform_5(%arg0: i32, %arg1: i32) -> (i32, i32) {
    %c0_i32 = arith.constant 0 : i32
    return %arg0, %arg1 : i32, i32
  }
}

</mosaic_0001>

<bundles_post_ra>
// kernel: cnn_block_forward.1
= control target key start
LH: loop header
LB: loop body
LE: loop exit
PB: predicated region body
PF: predicated region fallthrough
CT: control target
= control target key end

     0   :  { %vm1092_vm0 = vcmask 1041408   ;;  %vm133_vm1 = vcmask 27648   ;;  %vm618_vm2 = vsmask.f32 7424  ;;  %vm962_vm3 = vcmask 31744   ;;  %s11135_s2 = inlined_call_operand.vmem [shape: bf16[9,4,128], index: 2, kind: input, shape index: {}]   ;;  %s11136_s0 = inlined_call_operand.vmem [shape: bf16[720,4], index: 0, kind: input, shape index: {}, may-alias: {0,1}]   ;;  %s11137_s1 = inlined_call_operand.vmem [shape: bf16[720,4], index: 1, kind: input, shape index: {}, may-alias: {0,1}]   ;;  %s11138_s3 = inlined_call_operand.vmem [shape: f32[1,128], index: 3, kind: input, shape index: {}]   ;;  %s11139_s4 = inlined_call_operand.vmem [shape: f32[1,128], index: 4, kind: input, shape index: {}]   ;;  %s11140_s5 = inlined_call_operand.vmem [shape: f32[680,128], index: 5, kind: output, shape index: {}]  }
   0x1   :  { %v7168_v0 = vld [vmem:[%s11135_s2 + $0x2] sm:$0x3]  ;;  %v70_v1 = vld [vmem:[%s11136_s0 + $0x58] sm:$0xf]  ;;  %v71_v2 = vld [vmem:[%s11136_s0 + $0x5c] sm:$0xf] }
   0x2   :  { %v1094_v3 = vsel %vm1092_vm0, %v7168_v0, 0  ;;  %v72_v4 = vld [vmem:[%s11136_s0 + $0x60] sm:$0xf]  ;;  %v73_v5 = vld [vmem:[%s11136_s0 + $0x64] sm:$0xf]  ;;  %vm1893_vm4 = vcmask 1046528  }
   0x3   :  { %8400 = vmatpush.bf16.msra.mxu1 %v1094_v3  ;;  %8401 = vmatpush.bf16.msra.mxu2 %v1094_v3  ;;  %156 = vst.msk [vmem:[#allocation2 + $0x58] sm:$0xf] %vm133_vm1, %v70_v1  ;;  %v92_v6 = vld [vmem:[%s11136_s0 + $0xb0] sm:$0xf]  ;;  %v93_v7 = vld [vmem:[%s11136_s0 + $0xb4] sm:$0xf] }
   0x4   :  { %1103 = vmatpush.bf16.msra.mxu0 %v1094_v3  ;;  %157 = vst.msk [vmem:[#allocation2 + $0x5c] sm:$0xf] %vm133_vm1, %v71_v2  ;;  %8402 = vmatpush.bf16.msra.mxu3 %v1094_v3  ;;  %v7591_v8 = vld [vmem:[%s11135_s2 + $0x4] sm:$0x3]  ;;  %v94_v9 = vld [vmem:[%s11136_s0 + $0xb8] sm:$0xf] }
   0x5   :  { %158 = vst.msk [vmem:[#allocation2 + $0x60] sm:$0xf] %vm133_vm1, %v72_v4  ;;  %v2109_v10 = vsel %vm1092_vm0, %v7591_v8, 0  ;;  %v95_v11 = vld [vmem:[%s11136_s0 + $0xbc] sm:$0xf]  ;;  %vm4086_vm7 = vcmask 1045504  }
   0x6   :  { %159 = vst.msk [vmem:[#allocation2 + $0x64] sm:$0xf] %vm133_vm1, %v73_v5  ;;  %v48_v12 = vld [vmem:[%s11136_s0] sm:$0xf]  ;;  %v49_v13 = vld [vmem:[%s11136_s0 + $0x4] sm:$0xf] }
   0x7   :  { %178 = vst.msk [vmem:[#allocation2 + $0xb0] sm:$0xf] %vm133_vm1, %v92_v6  ;;  %2118 = vmatpush.bf16.msrb.mxu2 %v2109_v10  ;;  %v314_v14 = vld [vmem:[%s11135_s2] sm:$0x3]  ;;  %v50_v15 = vld [vmem:[%s11136_s0 + $0x8] sm:$0xf] }
   0x8   :  { %179 = vst.msk [vmem:[#allocation2 + $0xb4] sm:$0xf] %vm133_vm1, %v93_v7  ;;  %v1662_v16 = vsel %vm1092_vm0, %v314_v14, 0  ;;  %v51_v17 = vld [vmem:[%s11136_s0 + $0xc] sm:$0xf]  ;;  %vm6279_vm8 = vcmask 1044480  }
   0x9   :  { %180 = vst.msk [vmem:[#allocation2 + $0xb8] sm:$0xf] %vm133_vm1, %v94_v9  ;;  %1671 = vmatpush.bf16.msrb.mxu1 %v1662_v16  ;;  %v114_v18 = vld [vmem:[%s11136_s0 + $0x108] sm:$0xf]  ;;  %v115_v20 = vld [vmem:[%s11136_s0 + $0x10c] sm:$0xf] }
   0xa   :  { %181 = vst.msk [vmem:[#allocation2 + $0xbc] sm:$0xf] %vm133_vm1, %v95_v11  ;;  %v7843_v21 = vld [vmem:[%s11135_s2 + $0x8] sm:$0x3]  ;;  %v116_v22 = vld [vmem:[%s11136_s0 + $0x110] sm:$0xf] }
   0xb   :  { %v8279_v19 = vld [vmem:[#allocation2 + $0x58] sm:$0xff]  ;;  %134 = vst.msk [vmem:[#allocation2] sm:$0xf] %vm133_vm1, %v48_v12  ;;  %v3770_v23 = vsel %vm1092_vm0, %v7843_v21, 0  ;;  %v117_v27 = vld [vmem:[%s11136_s0 + $0x114] sm:$0xf] }
   0xc   :  { %135 = vst.msk [vmem:[#allocation2 + $0x4] sm:$0xf] %vm133_vm1, %v49_v13  ;;  %v707_v25 = vshll.u32 %v8279_v19, 16  ;;  %v711_v26 = vshrl.u32 %v8279_v19, 16  ;;  %3779 = vmatpush.bf16.msrb.mxu0 %v3770_v23  ;;  %v74_v28 = vld [vmem:[%s11136_s0 + $0x68] sm:$0xf] }
   0xd   :  { %v8584_v24 = vld [vmem:[#allocation2 + $0x60] sm:$0xff]  ;;  %136 = vst.msk [vmem:[#allocation2 + $0x8] sm:$0xf] %vm133_vm1, %v50_v15  ;;  %v75_v32 = vld [vmem:[%s11136_s0 + $0x6c] sm:$0xf] }
   0xe   :  { %137 = vst.msk [vmem:[#allocation2 + $0xc] sm:$0xf] %vm133_vm1, %v51_v17  ;;  %v8594_v29 = vrot.slane %v707_v25, 1  ;;  %v715_v30 = vshll.u32 %v8584_v24, 16  ;;  %v96_v33 = vld [vmem:[%s11136_s0 + $0xc0] sm:$0xf] }
   0xf   :  { %v8290_v31 = vld [vmem:[#allocation2 + $0xb0] sm:$0xff]  ;;  %200 = vst.msk [vmem:[#allocation2 + $0x108] sm:$0xf] %vm133_vm1, %v114_v18  ;;  %v97_v39 = vld [vmem:[%s11136_s0 + $0xc4] sm:$0xf]  ;;  %v719_v54 = vshrl.u32 %v8584_v24, 16 }
  0x10   :  { %201 = vst.msk [vmem:[#allocation2 + $0x10c] sm:$0xf] %vm133_vm1, %v115_v20  ;;  %v713_v34 = vor.u32 %v711_v26, %v8594_v29  ;;  %v717_v35 = vrot.slane %v715_v30, 1  ;;  %v795_v37 = vshll.u32 %v8290_v31, 16  ;;  %v799_v38 = vshrl.u32 %v8290_v31, 16 }
  0x11   :  { %v8606_v36 = vld [vmem:[#allocation2 + $0xb8] sm:$0xff]  ;;  %202 = vst.msk [vmem:[#allocation2 + $0x110] sm:$0xf] %vm133_vm1, %v116_v22  ;;  %v52_v40 = vld [vmem:[%s11136_s0 + $0x10] sm:$0xf] }
  0x12   :  { %203 = vst.msk [vmem:[#allocation2 + $0x114] sm:$0xf] %vm133_vm1, %v117_v27  ;;  %v7635_v41 = vld [vmem:[%s11135_s2 + $0x6] sm:$0x3]  ;;  %v718_v42 = vsel %vm618_vm2, %v713_v34, %v717_v35  ;;  %v8620_v43 = vrot.slane %v795_v37, 1  ;;  %v803_v44 = vshll.u32 %v8606_v36, 16  ;;  %v721_v9 = vor.u32 %v719_v54, %v717_v35 }
  0x13   :  { %v8394_v45 = vld [vmem:[#allocation2] sm:$0xff]   ;;  %160 = vst.msk [vmem:[#allocation2 + $0x68] sm:$0xf] %vm133_vm1, %v74_v28  ;;  %7348 = vmatmul.msk.bf16.vlgmr.msra.gmra.mxu1 %vm962_vm3, %v718_v42  ;;  %v2937_v48 = vsel %vm1092_vm0, %v7635_v41, 0  ;;  %v53_v52 = vld [vmem:[%s11136_s0 + $0x14] sm:$0xf] }
  0x14   :  { %v620_v46 = vshrl.u32 %v8394_v45, 16  ;;  %v622_v47 = vshll.u32 %v8394_v45, 16  ;;  %161 = vst.msk [vmem:[#allocation2 + $0x6c] sm:$0xf] %vm133_vm1, %v75_v32  ;;  %v801_v49 = vor.u32 %v799_v38, %v8620_v43  ;;  %v805_v50 = vrot.slane %v803_v44, 1  ;;  %2946 = vmatpush.bf16.msrb.mxu3 %v2937_v48 }
  0x15   :  { %v8628_v51 = vld [vmem:[#allocation2 + $0x8] sm:$0xff]  ;;  %182 = vst.msk [vmem:[#allocation2 + $0xc0] sm:$0xf] %vm133_vm1, %v96_v33  ;;  %v118_v55 = vld [vmem:[%s11136_s0 + $0x118] sm:$0xf]  ;;  %v807_v15 = vshrl.u32 %v8606_v36, 16 }
  0x16   :  { %v624_v53 = vrot.slane %v622_v47, 1  ;;  %183 = vst.msk [vmem:[#allocation2 + $0xc4] sm:$0xf] %vm133_vm1, %v97_v39  ;;  %v806_v56 = vsel %vm618_vm2, %v801_v49, %v805_v50  ;;  %v627_v57 = vshll.u32 %v8628_v51, 16  ;;  %v119_v59 = vld [vmem:[%s11136_s0 + $0x11c] sm:$0xf] }
  0x17   :  { %v8301_v58 = vld [vmem:[#allocation2 + $0x108] sm:$0xff]  ;;  %138 = vst.msk [vmem:[#allocation2 + $0x10] sm:$0xf] %vm133_vm1, %v52_v40  ;;  %7359 = vmatmul.msk.bf16.vlgmr.msra.gmra.mxu2 %vm962_vm3, %v806_v56  ;;  %v76_v61 = vld [vmem:[%s11136_s0 + $0x70] sm:$0xf]  ;;  %v631_v22 = vshrl.u32 %v8628_v51, 16  ;;  %v809_v25 = vor.u32 %v807_v15, %v805_v50 }
  0x18   :  { %v625_v60 = vor.u32 %v624_v53, %v620_v46  ;;  %139 = vst.msk [vmem:[#allocation2 + $0x14] sm:$0xf] %vm133_vm1, %v53_v52  ;;  %v77_v62 = vld [vmem:[%s11136_s0 + $0x74] sm:$0xf]  ;;  %v629_v63 = vrot.slane %v627_v57, 1  ;;  %v883_v1 = vshll.u32 %v8301_v58, 16 }
  0x19   :  { %v8653_v0 = vld [vmem:[#allocation2 + $0x110] sm:$0xff]  ;;  %v887_v2 = vshrl.u32 %v8301_v58, 16  ;;  %204 = vst.msk [vmem:[#allocation2 + $0x118] sm:$0xf] %vm133_vm1, %v118_v55  ;;  %v98_v3 = vld [vmem:[%s11136_s0 + $0xc8] sm:$0xf] }
  0x1a   :  { %205 = vst.msk [vmem:[#allocation2 + $0x11c] sm:$0xf] %vm133_vm1, %v119_v59  ;;  %v99_v4 = vld [vmem:[%s11136_s0 + $0xcc] sm:$0xf]  ;;  %v630_v5 = vsel %vm618_vm2, %v625_v60, %v629_v63  ;;  %v8664_v6 = vrot.slane %v883_v1, 1  ;;  %v891_v7 = vshll.u32 %v8653_v0, 16  ;;  %v633_v32 = vor.u32 %v631_v22, %v629_v63 }
  0x1b   :  { %v8667_v8 = vld [vmem:[#allocation2 + $0x68] sm:$0xff]  ;;  %162 = vst.msk [vmem:[#allocation2 + $0x70] sm:$0xf] %vm133_vm1, %v76_v61  ;;  %7337 = vmatmul.msk.bf16.vlgmr.msra.gmra.mxu0 %vm962_vm3, %v630_v5  ;;  %v54_v10 = vld [vmem:[%s11136_s0 + $0x18] sm:$0xf]  ;;  %v895_v36 = vshrl.u32 %v8653_v0, 16 }
  0x1c   :  { %163 = vst.msk [vmem:[#allocation2 + $0x74] sm:$0xf] %vm133_vm1, %v77_v62  ;;  %v889_v11 = vor.u32 %v887_v2, %v8664_v6  ;;  %v893_v12 = vrot.slane %v891_v7, 1  ;;  %v723_v13 = vshll.u32 %v8667_v8, 16  ;;  %v55_v16 = vld [vmem:[%s11136_s0 + $0x1c] sm:$0xf] }
  0x1d   :  { %v8677_v14 = vld [vmem:[#allocation2 + $0xc0] sm:$0xff]  ;;  %184 = vst.msk [vmem:[#allocation2 + $0xc8] sm:$0xf] %vm133_vm1, %v98_v3  ;;  %v78_v30 = vld [vmem:[%s11136_s0 + $0x78] sm:$0xf]  ;;  %v727_v40 = vshrl.u32 %v8667_v8, 16 }
  0x1e   :  { %185 = vst.msk [vmem:[#allocation2 + $0xcc] sm:$0xf] %vm133_vm1, %v99_v4  ;;  %v120_v17 = vld [vmem:[%s11136_s0 + $0x120] sm:$0xf]  ;;  %v894_v18 = vsel %vm618_vm2, %v889_v11, %v893_v12  ;;  %v725_v19 = vrot.slane %v723_v13, 1  ;;  %v811_v20 = vshll.u32 %v8677_v14, 16  ;;  %v897_v46 = vor.u32 %v895_v36, %v893_v12 }
  0x1f   :  { %v8690_v21 = vld [vmem:[#allocation2 + $0x10] sm:$0xff]  ;;  %140 = vst.msk [vmem:[#allocation2 + $0x18] sm:$0xf] %vm133_vm1, %v54_v10  ;;  %7370 = vmatmul.msk.bf16.vlgmr.msra.gmra.mxu3 %vm962_vm3, %v894_v18  ;;  %v121_v23 = vld [vmem:[%s11136_s0 + $0x124] sm:$0xf]  ;;  %v815_v52 = vshrl.u32 %v8677_v14, 16 }
  0x20   :  { %141 = vst.msk [vmem:[#allocation2 + $0x1c] sm:$0xf] %vm133_vm1, %v55_v16  ;;  %v726_v24 = vsel %vm618_vm2, %v721_v9, %v725_v19  ;;  %v813_v26 = vrot.slane %v811_v20, 1  ;;  %v635_v27 = vshll.u32 %v8690_v21, 16  ;;  %v79_v31 = vld [vmem:[%s11136_s0 + $0x7c] sm:$0xf]  ;;  %v729_v56 = vor.u32 %v727_v40, %v725_v19 }
  0x21   :  { %v8701_v28 = vld [vmem:[#allocation2 + $0x118] sm:$0xff]  ;;  %206 = vst.msk [vmem:[#allocation2 + $0x120] sm:$0xf] %vm133_vm1, %v120_v17  ;;  %v100_v33 = vld [vmem:[%s11136_s0 + $0xd0] sm:$0xf]  ;;  %v639_v0 = vshrl.u32 %v8690_v21, 16 }
  0x22   :  { %207 = vst.msk [vmem:[#allocation2 + $0x124] sm:$0xf] %vm133_vm1, %v121_v23  ;;  %v814_v34 = vsel %vm618_vm2, %v809_v25, %v813_v26  ;;  %v637_v35 = vrot.slane %v635_v27, 1  ;;  %v899_v37 = vshll.u32 %v8701_v28, 16  ;;  %v101_v39 = vld [vmem:[%s11136_s0 + $0xd4] sm:$0xf]  ;;  %v817_v2 = vor.u32 %v815_v52, %v813_v26 }
  0x23   :  { %7349 = vmatmul.msk.bf16.gmra.mxu1 %vm962_vm3, %v726_v24  ;;  %164 = vst.msk [vmem:[#allocation2 + $0x78] sm:$0xf] %vm133_vm1, %v78_v30  ;;  %v8719_v38 = vld [vmem:[#allocation2 + $0x70] sm:$0xff]  ;;  %v56_v42 = vld [vmem:[%s11136_s0 + $0x20] sm:$0xf]  ;;  %v903_v7 = vshrl.u32 %v8701_v28, 16 }
  0x24   :  { %165 = vst.msk [vmem:[#allocation2 + $0x7c] sm:$0xf] %vm133_vm1, %v79_v31  ;;  %v57_v44 = vld [vmem:[%s11136_s0 + $0x24] sm:$0xf]  ;;  %v638_v45 = vsel %vm618_vm2, %v633_v32, %v637_v35  ;;  %v901_v47 = vrot.slane %v899_v37, 1  ;;  %v731_v48 = vshll.u32 %v8719_v38, 16  ;;  %v641_v9 = vor.u32 %v639_v0, %v637_v35 }
  0x25   :  { %186 = vst.msk [vmem:[#allocation2 + $0xd0] sm:$0xf] %vm133_vm1, %v100_v33  ;;  %v8729_v41 = vld [vmem:[#allocation2 + $0xc8] sm:$0xff]  ;;  %v80_v54 = vld [vmem:[%s11136_s0 + $0x80] sm:$0xf]  ;;  %v735_v15 = vshrl.u32 %v8719_v38, 16 }
  0x26   :  { %187 = vst.msk [vmem:[#allocation2 + $0xd4] sm:$0xf] %vm133_vm1, %v101_v39  ;;  %v122_v49 = vld [vmem:[%s11136_s0 + $0x128] sm:$0xf]  ;;  %v123_v50 = vld [vmem:[%s11136_s0 + $0x12c] sm:$0xf]  ;;  %v902_v55 = vsel %vm618_vm2, %v897_v46, %v901_v47  ;;  %v905_v17 = vor.u32 %v903_v7, %v901_v47 }
  0x27   :  { %7360 = vmatmul.msk.bf16.gmra.mxu2 %vm962_vm3, %v814_v34  ;;  %142 = vst.msk [vmem:[#allocation2 + $0x20] sm:$0xf] %vm133_vm1, %v56_v42  ;;  %v819_v53 = vshll.u32 %v8729_v41, 16  ;;  %v733_v57 = vrot.slane %v731_v48, 1  ;;  %v8756_v58 = vld [vmem:[#allocation2 + $0x18] sm:$0xff]  ;;  %v823_v24 = vshrl.u32 %v8729_v41, 16 }
  0x28   :  { %143 = vst.msk [vmem:[#allocation2 + $0x24] sm:$0xf] %vm133_vm1, %v57_v44  ;;  %v81_v59 = vld [vmem:[%s11136_s0 + $0x84] sm:$0xf]  ;;  %v102_v60 = vld [vmem:[%s11136_s0 + $0xd8] sm:$0xf] }
  0x29   :  { %208 = vst.msk [vmem:[#allocation2 + $0x128] sm:$0xf] %vm133_vm1, %v122_v49  ;;  %v103_v61 = vld [vmem:[%s11136_s0 + $0xdc] sm:$0xf]  ;;  %v58_v62 = vld [vmem:[%s11136_s0 + $0x28] sm:$0xf]  ;;  %v734_v1 = vsel %vm618_vm2, %v729_v56, %v733_v57  ;;  %v737_v28 = vor.u32 %v735_v15, %v733_v57 }
  0x2a   :  { %209 = vst.msk [vmem:[#allocation2 + $0x12c] sm:$0xf] %vm133_vm1, %v123_v50  ;;  %v821_v63 = vrot.slane %v819_v53, 1  ;;  %v643_v3 = vshll.u32 %v8756_v58, 16  ;;  %v8304_v4 = vld [vmem:[#allocation2 + $0x120] sm:$0xff]  ;;  %v647_v39 = vshrl.u32 %v8756_v58, 16 }
  0x2b   :  { %7338 = vmatmul.msk.bf16.gmra.mxu0 %vm962_vm3, %v638_v45  ;;  %166 = vst.msk [vmem:[#allocation2 + $0x80] sm:$0xf] %vm133_vm1, %v80_v54  ;;  %v59_v5 = vld [vmem:[%s11136_s0 + $0x2c] sm:$0xf]  ;;  %v907_v11 = vshll.u32 %v8304_v4, 16  ;;  %v8786_v12 = vld [vmem:[#allocation2 + $0x78] sm:$0xff] }
  0x2c   :  { %167 = vst.msk [vmem:[#allocation2 + $0x84] sm:$0xf] %vm133_vm1, %v81_v59  ;;  %v822_v8 = vsel %vm618_vm2, %v817_v2, %v821_v63  ;;  %v645_v10 = vrot.slane %v643_v3, 1  ;;  %v124_v13 = vld [vmem:[%s11136_s0 + $0x130] sm:$0xf]  ;;  %v739_v19 = vshll.u32 %v8786_v12, 16  ;;  %v825_v37 = vor.u32 %v823_v24, %v821_v63 }
  0x2d   :  { %188 = vst.msk [vmem:[#allocation2 + $0xd8] sm:$0xf] %vm133_vm1, %v102_v60  ;;  %v125_v14 = vld [vmem:[%s11136_s0 + $0x134] sm:$0xf]  ;;  %v909_v18 = vrot.slane %v907_v11, 1  ;;  %v911_v42 = vshrl.u32 %v8304_v4, 16 }
  0x2e   :  { %189 = vst.msk [vmem:[#allocation2 + $0xdc] sm:$0xf] %vm133_vm1, %v103_v61  ;;  %v646_v16 = vsel %vm618_vm2, %v641_v9, %v645_v10  ;;  %v8800_v20 = vld [vmem:[#allocation2 + $0xd0] sm:$0xff]  ;;  %v82_v22 = vld [vmem:[%s11136_s0 + $0x88] sm:$0xf]  ;;  %v741_v30 = vrot.slane %v739_v19, 1  ;;  %v649_v45 = vor.u32 %v647_v39, %v645_v10 }
  0x2f   :  { %7371 = vmatmul.msk.bf16.gmra.mxu3 %vm962_vm3, %v902_v55  ;;  %144 = vst.msk [vmem:[#allocation2 + $0x28] sm:$0xf] %vm133_vm1, %v58_v62  ;;  %v83_v23 = vld [vmem:[%s11136_s0 + $0x8c] sm:$0xf]  ;;  %v8810_v25 = vld [vmem:[#allocation2 + $0x20] sm:$0xff]  ;;  %v910_v27 = vsel %vm618_vm2, %v905_v17, %v909_v18  ;;  %v827_v31 = vshll.u32 %v8800_v20, 16  ;;  %v913_v50 = vor.u32 %v911_v42, %v909_v18 }
  0x30   :  { %145 = vst.msk [vmem:[#allocation2 + $0x2c] sm:$0xf] %vm133_vm1, %v59_v5  ;;  %v104_v26 = vld [vmem:[%s11136_s0 + $0xe0] sm:$0xf]  ;;  %v105_v32 = vld [vmem:[%s11136_s0 + $0xe4] sm:$0xf]  ;;  %v742_v36 = vsel %vm618_vm2, %v737_v28, %v741_v30 }
  0x31   :  { %210 = vst.msk [vmem:[#allocation2 + $0x130] sm:$0xf] %vm133_vm1, %v124_v13  ;;  %v60_v33 = vld [vmem:[%s11136_s0 + $0x30] sm:$0xf]  ;;  %v61_v34 = vld [vmem:[%s11136_s0 + $0x34] sm:$0xf] }
  0x32   :  { %211 = vst.msk [vmem:[#allocation2 + $0x134] sm:$0xf] %vm133_vm1, %v125_v14  ;;  %v651_v35 = vshll.u32 %v8810_v25, 16  ;;  %v829_v38 = vrot.slane %v827_v31, 1  ;;  %v8305_v40 = vld [vmem:[#allocation2 + $0x128] sm:$0xff]  ;;  %v743_v54 = vshrl.u32 %v8786_v12, 16 }
  0x33   :  { %7350 = vmatmul.msk.bf16.gmra.mxu1 %vm962_vm3, %v734_v1  ;;  %168 = vst.msk [vmem:[#allocation2 + $0x88] sm:$0xf] %vm133_vm1, %v82_v22  ;;  %v915_v46 = vshll.u32 %v8305_v40, 16  ;;  %v8838_v47 = vld [vmem:[#allocation2 + $0x80] sm:$0xff]  ;;  %v126_v48 = vld [vmem:[%s11136_s0 + $0x138] sm:$0xf] }
  0x34   :  { %169 = vst.msk [vmem:[#allocation2 + $0x8c] sm:$0xf] %vm133_vm1, %v83_v23  ;;  %v653_v41 = vrot.slane %v651_v35, 1  ;;  %v830_v44 = vsel %vm618_vm2, %v825_v37, %v829_v38  ;;  %v127_v49 = vld [vmem:[%s11136_s0 + $0x13c] sm:$0xf]  ;;  %v747_v55 = vshll.u32 %v8838_v47, 16  ;;  %v745_v1 = vor.u32 %v743_v54, %v741_v30 }
  0x35   :  { %190 = vst.msk [vmem:[#allocation2 + $0xe0] sm:$0xf] %vm133_vm1, %v104_v26  ;;  %v917_v53 = vrot.slane %v915_v46, 1  ;;  %v8852_v56 = vld [vmem:[#allocation2 + $0xd8] sm:$0xff]  ;;  %v84_v57 = vld [vmem:[%s11136_s0 + $0x90] sm:$0xf] }
  0x36   :  { %191 = vst.msk [vmem:[#allocation2 + $0xe4] sm:$0xf] %vm133_vm1, %v105_v32  ;;  %v654_v52 = vsel %vm618_vm2, %v649_v45, %v653_v41  ;;  %v85_v59 = vld [vmem:[%s11136_s0 + $0x94] sm:$0xf]  ;;  %v106_v60 = vld [vmem:[%s11136_s0 + $0xe8] sm:$0xf] }
  0x37   :  { %7361 = vmatmul.msk.bf16.gmra.mxu2 %vm962_vm3, %v822_v8  ;;  %146 = vst.msk [vmem:[#allocation2 + $0x30] sm:$0xf] %vm133_vm1, %v60_v33  ;;  %v831_v61 = vshrl.u32 %v8800_v20, 16  ;;  %v8865_v62 = vld [vmem:[#allocation2 + $0x28] sm:$0xff]  ;;  %v918_v0 = vsel %vm618_vm2, %v913_v50, %v917_v53  ;;  %v749_v2 = vrot.slane %v747_v55, 1  ;;  %v835_v3 = vshll.u32 %v8852_v56, 16 }
  0x38   :  { %147 = vst.msk [vmem:[#allocation2 + $0x34] sm:$0xf] %vm133_vm1, %v61_v34  ;;  %v107_v63 = vld [vmem:[%s11136_s0 + $0xec] sm:$0xf]  ;;  %v62_v4 = vld [vmem:[%s11136_s0 + $0x38] sm:$0xf] }
  0x39   :  { %212 = vst.msk [vmem:[#allocation2 + $0x138] sm:$0xf] %vm133_vm1, %v126_v48  ;;  %v63_v5 = vld [vmem:[%s11136_s0 + $0x3c] sm:$0xf]  ;;  %v659_v7 = vshll.u32 %v8865_v62, 16  ;;  %v750_v8 = vsel %vm618_vm2, %v745_v1, %v749_v2  ;;  %v833_v9 = vor.u32 %v831_v61, %v829_v38  ;;  %v837_v10 = vrot.slane %v835_v3, 1 }
  0x3a   :  { %213 = vst.msk [vmem:[#allocation2 + $0x13c] sm:$0xf] %vm133_vm1, %v127_v49  ;;  %v655_v11 = vshrl.u32 %v8810_v25, 16  ;;  %v8306_v12 = vld [vmem:[#allocation2 + $0x130] sm:$0xff]  ;;  %v919_v14 = vshrl.u32 %v8305_v40, 16  ;;  %v751_v26 = vshrl.u32 %v8838_v47, 16 }
  0x3b   :  { %7339 = vmatmul.msk.bf16.gmra.mxu0 %vm962_vm3, %v646_v16  ;;  %170 = vst.msk [vmem:[#allocation2 + $0x90] sm:$0xf] %vm133_vm1, %v84_v57  ;;  %v661_v13 = vrot.slane %v659_v7, 1  ;;  %v838_v15 = vsel %vm618_vm2, %v833_v9, %v837_v10  ;;  %v923_v17 = vshll.u32 %v8306_v12, 16  ;;  %v8890_v18 = vld [vmem:[#allocation2 + $0x88] sm:$0xff]  ;;  %v839_v33 = vshrl.u32 %v8852_v56, 16 }
  0x3c   :  { %171 = vst.msk [vmem:[#allocation2 + $0x94] sm:$0xf] %vm133_vm1, %v85_v59  ;;  %v657_v16 = vor.u32 %v655_v11, %v653_v41  ;;  %v128_v19 = vld [vmem:[%s11136_s0 + $0x140] sm:$0xf]  ;;  %v129_v20 = vld [vmem:[%s11136_s0 + $0x144] sm:$0xf]  ;;  %v921_v22 = vor.u32 %v919_v14, %v917_v53  ;;  %v753_v37 = vor.u32 %v751_v26, %v749_v2 }
  0x3d   :  { %192 = vst.msk [vmem:[#allocation2 + $0xe8] sm:$0xf] %vm133_vm1, %v106_v60  ;;  %v925_v24 = vrot.slane %v923_v17, 1  ;;  %v8904_v28 = vld [vmem:[#allocation2 + $0xe0] sm:$0xff]  ;;  %v86_v30 = vld [vmem:[%s11136_s0 + $0x98] sm:$0xf]  ;;  %v841_v45 = vor.u32 %v839_v33, %v837_v10 }
  0x3e   :  { %193 = vst.msk [vmem:[#allocation2 + $0xec] sm:$0xf] %vm133_vm1, %v107_v63  ;;  %v662_v23 = vsel %vm618_vm2, %v657_v16, %v661_v13  ;;  %v87_v31 = vld [vmem:[%s11136_s0 + $0x9c] sm:$0xf]  ;;  %v108_v32 = vld [vmem:[%s11136_s0 + $0xf0] sm:$0xf] }
  0x3f   :  { %7372 = vmatmul.msk.bf16.gmra.mxu3 %vm962_vm3, %v910_v27  ;;  %148 = vst.msk [vmem:[#allocation2 + $0x38] sm:$0xf] %vm133_vm1, %v62_v4  ;;  %v755_v27 = vshll.u32 %v8890_v18, 16  ;;  %v8917_v34 = vld [vmem:[#allocation2 + $0x30] sm:$0xff]  ;;  %v843_v39 = vshll.u32 %v8904_v28, 16  ;;  %v663_v47 = vshrl.u32 %v8865_v62, 16 }
  0x40   :  { %149 = vst.msk [vmem:[#allocation2 + $0x3c] sm:$0xf] %vm133_vm1, %v63_v5  ;;  %v109_v35 = vld [vmem:[%s11136_s0 + $0xf4] sm:$0xf]  ;;  %v64_v40 = vld [vmem:[%s11136_s0 + $0x40] sm:$0xf] }
  0x41   :  { %214 = vst.msk [vmem:[#allocation2 + $0x140] sm:$0xf] %vm133_vm1, %v128_v19  ;;  %v757_v38 = vrot.slane %v755_v27, 1  ;;  %v65_v41 = vld [vmem:[%s11136_s0 + $0x44] sm:$0xf]  ;;  %v667_v42 = vshll.u32 %v8917_v34, 16  ;;  %v665_v53 = vor.u32 %v663_v47, %v661_v13 }
  0x42   :  { %215 = vst.msk [vmem:[#allocation2 + $0x144] sm:$0xf] %vm133_vm1, %v129_v20  ;;  %v845_v46 = vrot.slane %v843_v39, 1  ;;  %v8307_v48 = vld [vmem:[#allocation2 + $0x138] sm:$0xff]  ;;  %v927_v54 = vshrl.u32 %v8306_v12, 16  ;;  %v847_v7 = vshrl.u32 %v8904_v28, 16 }
  0x43   :  { %7351 = vmatmul.msk.bf16.gmra.mxu1 %vm962_vm3, %v742_v36  ;;  %172 = vst.msk [vmem:[#allocation2 + $0x98] sm:$0xf] %vm133_vm1, %v86_v30  ;;  %v926_v36 = vsel %vm618_vm2, %v921_v22, %v925_v24  ;;  %v669_v49 = vrot.slane %v667_v42, 1  ;;  %v8941_v50 = vld [vmem:[#allocation2 + $0x90] sm:$0xff]  ;;  %v931_v55 = vshll.u32 %v8307_v48, 16  ;;  %v935_v30 = vshrl.u32 %v8307_v48, 16 }
  0x44   :  { %173 = vst.msk [vmem:[#allocation2 + $0x9c] sm:$0xf] %vm133_vm1, %v87_v31  ;;  %v130_v56 = vld [vmem:[%s11136_s0 + $0x148] sm:$0xf]  ;;  %v131_v57 = vld [vmem:[%s11136_s0 + $0x14c] sm:$0xf]  ;;  %v929_v61 = vor.u32 %v927_v54, %v925_v24  ;;  %v849_v17 = vor.u32 %v847_v7, %v845_v46 }
  0x45   :  { %194 = vst.msk [vmem:[#allocation2 + $0xf0] sm:$0xf] %vm133_vm1, %v108_v32  ;;  %v763_v59 = vshll.u32 %v8941_v50, 16  ;;  %v670_v60 = vsel %vm618_vm2, %v665_v53, %v669_v49  ;;  %v933_v63 = vrot.slane %v931_v55, 1  ;;  %v8956_v1 = vld [vmem:[#allocation2 + $0xe8] sm:$0xff] }
  0x46   :  { %195 = vst.msk [vmem:[#allocation2 + $0xf4] sm:$0xf] %vm133_vm1, %v109_v35  ;;  %v88_v2 = vld [vmem:[%s11136_s0 + $0xa0] sm:$0xf]  ;;  %v89_v3 = vld [vmem:[%s11136_s0 + $0xa4] sm:$0xf] }
  0x47   :  { %7362 = vmatmul.msk.bf16.gmra.mxu2 %vm962_vm3, %v830_v44  ;;  %150 = vst.msk [vmem:[#allocation2 + $0x40] sm:$0xf] %vm133_vm1, %v64_v40  ;;  %v758_v44 = vsel %vm618_vm2, %v753_v37, %v757_v38  ;;  %v110_v4 = vld [vmem:[%s11136_s0 + $0xf8] sm:$0xf]  ;;  %v765_v5 = vrot.slane %v763_v59, 1  ;;  %v934_v9 = vsel %vm618_vm2, %v929_v61, %v933_v63  ;;  %v851_v11 = vshll.u32 %v8956_v1, 16 }
  0x48   :  { %151 = vst.msk [vmem:[#allocation2 + $0x44] sm:$0xf] %vm133_vm1, %v65_v41  ;;  %v8975_v12 = vld [vmem:[#allocation2 + $0x38] sm:$0xff]  ;;  %v66_v13 = vld [vmem:[%s11136_s0 + $0x48] sm:$0xf]  ;;  %v937_v35 = vor.u32 %v935_v30, %v933_v63  ;;  %v767_v37 = vshrl.u32 %v8941_v50, 16 }
  0x49   :  { %216 = vst.msk [vmem:[#allocation2 + $0x148] sm:$0xf] %vm133_vm1, %v130_v56  ;;  %v67_v14 = vld [vmem:[%s11136_s0 + $0x4c] sm:$0xf]  ;;  %v675_v19 = vshll.u32 %v8975_v12, 16  ;;  %v8308_v20 = vld [vmem:[#allocation2 + $0x140] sm:$0xff] }
  0x4a   :  { %217 = vst.msk [vmem:[#allocation2 + $0x14c] sm:$0xf] %vm133_vm1, %v131_v57  ;;  %v132_v24 = vld [vmem:[%s11136_s0 + $0x150] sm:$0xf]  ;;  %v7163_v26 = vld [vmem:[%s11137_s1 + $0x154] sm:$0xf] }
  0x4b   :  { %7340 = vmatmul.msk.bf16.gmra.mxu0 %vm962_vm3, %v654_v52  ;;  %v846_v52 = vsel %vm618_vm2, %v841_v45, %v845_v46  ;;  %174 = vst.msk [vmem:[#allocation2 + $0xa0] sm:$0xf] %vm133_vm1, %v88_v2  ;;  %v677_v28 = vrot.slane %v675_v19, 1  ;;  %v939_v31 = vshll.u32 %v8308_v20, 16  ;;  %v90_v39 = vld [vmem:[%s11136_s0 + $0xa8] sm:$0xf]  ;;  %v769_v46 = vor.u32 %v767_v37, %v765_v5 }
  0x4c   :  { %175 = vst.msk [vmem:[#allocation2 + $0xa4] sm:$0xf] %vm133_vm1, %v89_v3  ;;  %v91_v40 = vld [vmem:[%s11136_s0 + $0xac] sm:$0xf]  ;;  %v112_v41 = vld [vmem:[%s11136_s0 + $0x100] sm:$0xf] }
  0x4d   :  { %196 = vst.msk [vmem:[#allocation2 + $0xf8] sm:$0xf] %vm133_vm1, %v110_v4  ;;  %v68_v50 = vld [vmem:[%s11136_s0 + $0x50] sm:$0xf]  ;;  %v679_v57 = vshrl.u32 %v8975_v12, 16 }
  0x4e   :  { %152 = vst.msk [vmem:[#allocation2 + $0x48] sm:$0xf] %vm133_vm1, %v66_v13  ;;  %vm3253_vm5 = vsmask.f32 6400  ;;  %vm5446_vm6 = vsmask.f32 5376 }
  0x4f   :  { %7373 = vmatmul.msk.bf16.gmra.mxu3 %vm962_vm3, %v918_v0  ;;  %v759_v0 = vshrl.u32 %v8890_v18, 16  ;;  %v853_v18 = vrot.slane %v851_v11, 1  ;;  %153 = vst.msk [vmem:[#allocation2 + $0x4c] sm:$0xf] %vm133_vm1, %v67_v14  ;;  %v9018_v48 = vld [vmem:[#allocation2 + $0x40] sm:$0xff] }
  0x50   :  { %218 = vst.msk [vmem:[#allocation2 + $0x150] sm:$0xf] %vm133_vm1, %v132_v24  ;;  %v683_v59 = vshll.u32 %v9018_v48, 16  ;;  %v687_v19 = vshrl.u32 %v9018_v48, 16 }
  0x51   :  { %v761_v10 = vor.u32 %v759_v0, %v757_v38  ;;  %v854_v27 = vsel %vm618_vm2, %v849_v17, %v853_v18  ;;  %224 = vst.msk [vmem:[#allocation2 + $0x154] sm:$0xf] %vm133_vm1, %v7163_v26  ;;  %v8298_v38 = vld [vmem:[#allocation2 + $0xf0] sm:$0xff]  ;;  %v8309_v54 = vld [vmem:[#allocation2 + $0x148] sm:$0xff]  ;;  %v681_v0 = vor.u32 %v679_v57, %v677_v28 }
  0x52   :  { %176 = vst.msk [vmem:[#allocation2 + $0xa8] sm:$0xf] %vm133_vm1, %v90_v39  ;;  %v859_v47 = vshll.u32 %v8298_v38, 16  ;;  %v947_v61 = vshll.u32 %v8309_v54, 16 }
  0x53   :  { %7352 = vmatmul.msk.bf16.gmra.mxu1 %vm962_vm3, %v750_v8  ;;  %v111_v8 = vld [vmem:[%s11136_s0 + $0xfc] sm:$0xf]  ;;  %v766_v16 = vsel %vm618_vm2, %v761_v10, %v765_v5  ;;  %177 = vst.msk [vmem:[#allocation2 + $0xac] sm:$0xf] %vm133_vm1, %v91_v40  ;;  %v8288_v2 = vld [vmem:[#allocation2 + $0xa0] sm:$0xff] }
  0x54   :  { %197 = vst.msk [vmem:[#allocation2 + $0xfc] sm:$0xf] %vm133_vm1, %v111_v8  ;;  %v861_v56 = vrot.slane %v859_v47, 1  ;;  %v949_v4 = vrot.slane %v947_v61, 1  ;;  %v779_v8 = vshll.u32 %v8288_v2, 16 }
  0x55   :  { %198 = vst.msk [vmem:[#allocation2 + $0x100] sm:$0xf] %vm133_vm1, %v112_v41  ;;  %v783_v41 = vshrl.u32 %v8288_v2, 16 }
  0x56   :  { %154 = vst.msk [vmem:[#allocation2 + $0x50] sm:$0xf] %vm133_vm1, %v68_v50  ;;  %v9044_v11 = vld [vmem:[#allocation2 + $0x48] sm:$0xff]  ;;  %v781_v14 = vrot.slane %v779_v8, 1 }
  0x57   :  { %7363 = vmatmul.msk.bf16.gmra.mxu2 %vm962_vm3, %v838_v15  ;;  %v671_v15 = vshrl.u32 %v8917_v34, 16  ;;  %v7335_v17 = vld [vmem:[#allocation2 + $0x150] sm:$0xf] }
  0x59   :  { %v673_v22 = vor.u32 %v671_v15, %v669_v49  ;;  %v113_v49 = vld [vmem:[%s11136_s0 + $0x104] sm:$0xf]  ;;  %v863_v15 = vshrl.u32 %v8298_v38, 16 }
  0x5a   :  { %199 = vst.msk [vmem:[#allocation2 + $0x104] sm:$0xf] %vm133_vm1, %v113_v49  ;;  %v785_v49 = vor.u32 %v783_v41, %v781_v14 }
  0x5b   :  { %7341 = vmatmul.msk.bf16.gmra.mxu0 %vm962_vm3, %v662_v23  ;;  %v8287_v23 = vld [vmem:[#allocation2 + $0x98] sm:$0xff]  ;;  %v678_v33 = vsel %vm618_vm2, %v673_v22, %v677_v28  ;;  %v865_v24 = vor.u32 %v863_v15, %v861_v56 }
  0x5c   :  { %v771_v32 = vshll.u32 %v8287_v23, 16  ;;  %v775_v7 = vshrl.u32 %v8287_v23, 16 }
  0x5e   :  { %v773_v42 = vrot.slane %v771_v32, 1  ;;  %v951_v32 = vshrl.u32 %v8309_v54, 16 }
  0x5f   :  { %7374 = vmatmul.msk.bf16.gmra.mxu3 %vm962_vm3, %v926_v36  ;;  %v941_v36 = vrot.slane %v939_v31, 1 }
  0x60   :  { %v774_v55 = vsel %vm618_vm2, %v769_v46, %v773_v42  ;;  %v777_v13 = vor.u32 %v775_v7, %v773_v42  ;;  %v953_v39 = vor.u32 %v951_v32, %v949_v4 }
  0x61   :  { %v942_v45 = vsel %vm618_vm2, %v937_v35, %v941_v36  ;;  %v8289_v35 = vld [vmem:[#allocation2 + $0xa8] sm:$0xff] }
  0x62   :  { %v782_v23 = vsel %vm618_vm2, %v777_v13, %v781_v14  ;;  %v787_v42 = vshll.u32 %v8289_v35, 16 }
  0x63   :  { %7353 = vmatmul.msk.bf16.gmra.mxu1 %vm962_vm3, %v758_v44  ;;  %v855_v44 = vshrl.u32 %v8956_v1, 16  ;;  %v685_v1 = vrot.slane %v683_v59, 1 }
  0x64   :  { %v789_v50 = vrot.slane %v787_v42, 1 }
  0x65   :  { %v857_v53 = vor.u32 %v855_v44, %v853_v18  ;;  %v686_v5 = vsel %vm618_vm2, %v681_v0, %v685_v1  ;;  %v8310_v18 = vld [vmem:[#allocation2 + $0x150] sm:$0x10]  ;;  %v689_v28 = vor.u32 %v687_v19, %v685_v1  ;;  %v8300_v44 = vld [vmem:[#allocation2 + $0x100] sm:$0xff]  ;;  %v7887_v19 = vld [vmem:[%s11135_s2 + $0xa] sm:$0x3] }
  0x66   :  { %v790_v57 = vsel %vm618_vm2, %v785_v49, %v789_v50 }
  0x67   :  { %7364 = vmatmul.msk.bf16.gmra.mxu2 %vm962_vm3, %v846_v52  ;;  %v69_v52 = vld [vmem:[%s11136_s0 + $0x54] sm:$0xf]  ;;  %v862_v63 = vsel %vm618_vm2, %v857_v53, %v861_v56 }
  0x68   :  { %155 = vst.msk [vmem:[#allocation2 + $0x54] sm:$0xf] %vm133_vm1, %v69_v52  ;;  %v875_v52 = vshll.u32 %v8300_v44, 16 }
  0x6a   :  { %v877_v59 = vrot.slane %v875_v52, 1 }
  0x6b   :  { %7342 = vmatmul.msk.bf16.gmra.mxu0 %vm962_vm3, %v670_v60  ;;  %v943_v60 = vshrl.u32 %v8308_v20, 16  ;;  %v691_v20 = vshll.u32 %v9044_v11, 16 }
  0x6d   :  { %v945_v3 = vor.u32 %v943_v60, %v941_v36  ;;  %v693_v30 = vrot.slane %v691_v20, 1  ;;  %v695_v60 = vshrl.u32 %v9044_v11, 16 }
  0x6f   :  { %7375 = vmatmul.msk.bf16.gmra.mxu3 %vm962_vm3, %v934_v9  ;;  %v8299_v9 = vld [vmem:[#allocation2 + $0xf8] sm:$0xff]  ;;  %v950_v10 = vsel %vm618_vm2, %v945_v3, %v949_v4  ;;  %v694_v36 = vsel %vm618_vm2, %v689_v28, %v693_v30  ;;  %v9067_v53 = vld [vmem:[#allocation2 + $0x50] sm:$0xff]  ;;  %v697_v2 = vor.u32 %v695_v60, %v693_v30  ;;  %v4302_v28 = vsel %vm1092_vm0, %v7887_v19, 0  ;;  %v8397_v60 = vld [vmem:[#allocation2] sm:$0xf0] }
  0x70   :  { %v871_v46 = vshrl.u32 %v8299_v9, 16  ;;  %v699_v61 = vshll.u32 %v9067_v53, 16  ;;  %4311 = vmatpush.bf16.msra.mxu1 %v4302_v28 }
  0x72   :  { %v701_v3 = vrot.slane %v699_v61, 1  ;;  %v8398_v61 = vld [vmem:[#allocation2] sm:$0xe] }
  0x73   :  { %7354 = vmatmul.msk.bf16.gmra.mxu1 %vm962_vm3, %v766_v16  ;;  %v867_v16 = vshll.u32 %v8299_v9, 16  ;;  %v791_v9 = vshrl.u32 %v8289_v35, 16 }
  0x74   :  { %v702_v7 = vsel %vm618_vm2, %v697_v2, %v701_v3 }
  0x75   :  { %v869_v26 = vrot.slane %v867_v16, 1  ;;  %v793_v20 = vor.u32 %v791_v9, %v789_v50 }
  0x77   :  { %7365 = vmatmul.msk.bf16.gmra.mxu2 %vm962_vm3, %v854_v27  ;;  %v9052_v27 = vor.u32 %v8310_v18, %v7335_v17  ;;  %v870_v31 = vsel %vm618_vm2, %v865_v24, %v869_v26  ;;  %v873_v54 = vor.u32 %v871_v46, %v869_v26  ;;  %v879_v17 = vshrl.u32 %v8300_v44, 16  ;;  %v8139_v18 = vld [vmem:[%s11135_s2 + $0xe] sm:$0x3]  ;;  %v8311_v46 = vld [vmem:[#allocation2 + $0x10] sm:$0xff] }
  0x78   :  { %v9105_v24 = vld [vmem:[#allocation2 + $0xc] sm:$0xf]  ;;  %v5963_v26 = vsel %vm1092_vm0, %v8139_v18, 0  ;;  %v798_v35 = vsel %vm618_vm2, %v793_v20, %v8620_v43  ;;  %v2723_v52 = vrot.slane %v8311_v46, 1  ;;  %v3263_v9 = vshrl.u32 %v8311_v46, 16 }
  0x79   :  { %11146 = vst [vmem:[#allocation3_spill] sm:$0xff] %v9052_v27  ;;  %v878_v1 = vsel %vm618_vm2, %v873_v54, %v877_v59  ;;  %v959_v4 = vshrl.u32 %v9052_v27, 16  ;;  %5972 = vmatpush.bf16.msra.mxu3 %v5963_v26 }
  0x7a   :  { %11152 = vst [vmem:[#allocation9_spill] sm:$0xff] %v9105_v24 }
  0x7b   :  { %7343 = vmatmul.msk.bf16.gmra.mxu0 %vm962_vm3, %v678_v33  ;;  %v955_v33 = vshll.u32 %v9052_v27, 16 }
  0x7d   :  { %v957_v40 = vrot.slane %v955_v33, 1 }
  0x7f   :  { %7376 = vmatmul.msk.bf16.gmra.mxu3 %vm962_vm3, %v942_v45  ;;  %v958_v47 = vsel %vm618_vm2, %v953_v39, %v957_v40  ;;  %v961_v16 = vor.u32 %v959_v4, %v957_v40  ;;  %v703_v39 = vshrl.u32 %v9067_v53, 16  ;;  %v8183_v40 = vld [vmem:[%s11135_s2 + $0x10] sm:$0x3] }
  0x80   :  { %v6495_v41 = vsel %vm1092_vm0, %v8183_v40, 0  ;;  %v8312_v40 = vld [vmem:[#allocation2 + $0x18] sm:$0xff] }
  0x81   :  { %6504 = vmatpush.bf16.msra.mxu0 %v6495_v41  ;;  %v705_v49 = vor.u32 %v703_v39, %v701_v3  ;;  %v8399_v3 = vor.u32 %v8398_v61, %v8397_v60  ;;  %v3275_v60 = vshll.u32 %v8312_v40, 16  ;;  %v8228_v61 = vld [vmem:[%s11136_s0 + $0x8] sm:$0xff] }
  0x83   :  { %7355 = vmatmul.msk.bf16.gmra.mxu1 %vm962_vm3, %v774_v55 }
  0x87   :  { %7366 = vmatmul.msk.bf16.gmra.mxu2 %vm962_vm3, %v862_v63 }
  0x8b   :  { %7344 = vmatmul.msk.bf16.gmra.mxu0 %vm962_vm3, %v686_v5 }
  0x8f   :  { %7377 = vmatmul.msk.bf16.gmra.mxu3 %vm962_vm3, %v950_v10  ;;  %v7931_v10 = vld [vmem:[%s11135_s2 + $0xc] sm:$0x3] }
  0x90   :  { %v9049_v22 = vpop.f32.mrf.mxu1  ;;  %v5130_v13 = vsel %vm1092_vm0, %v7931_v10, 0  ;;  %v3266_v10 = vshll.u32 %v8311_v46, 16 }
  0x91   :  { %5139 = vmatpush.bf16.msra.mxu2 %v5130_v13  ;;  %v1894_v13 = vrot.slane %v8399_v3, 1 }
  0x92   :  { %v3268_v26 = vrot.slane %v3266_v10, 2 }
  0x93   :  { %7356 = vmatmul.msk.bf16.gmra.mxu1 %vm962_vm3, %v782_v23  ;;  %v2419_v23 = vld [vmem:[#allocation2 + $0x8] sm:$0xe] }
  0x94   :  { %v2593_v30 = vunpack.c.l.b16 %v2419_v23  ;;  %v3265_v23 = vrot.slane %v3263_v9, 1  ;;  %v3277_v9 = vrot.slane %v3275_v60, 2  ;;  %v1899_v60 = vrot.slane %v8756_v58, 1 }
  0x96   :  { %v3269_v39 = vor.u32 %v3268_v26, %v3265_v23 }
  0x97   :  { %7367 = vmatmul.msk.bf16.gmra.mxu2 %vm962_vm3, %v870_v31  ;;  %v11141_v31 = vunpack.c.l.b16 %v9105_v24 }
  0x98   :  { %v9059_v37 = vpop.f32.mrf.mxu0  ;;  %v9061_v38 = vpop.f32.mrf.mxu1 }
  0x99   :  { %v2679_v43 = vpack.c.b16 %v11141_v31, %v2593_v30 }
  0x9a   :  { %v9063_v45 = vpop.f32.mrf.mxu2 }
  0x9b   :  { %11147 = vst [vmem:[#allocation4_spill] sm:$0xff] %v9063_v45  ;;  %7345 = vmatmul.msk.bf16.gmra.mxu0 %vm962_vm3, %v694_v36  ;;  %v881_v36 = vor.u32 %v879_v17, %v877_v59  ;;  %v2722_v50 = vrot.slane %v2679_v43, 1  ;;  %v3255_v4 = vshrl.u32 %v2679_v43, 16 }
  0x9d   :  { %v3257_v19 = vrot.slane %v3255_v4, 1  ;;  %v1897_v4 = vrot.slane %v8690_v21, 1 }
  0x9f   :  { %7378 = vmatmul.msk.bf16.gmra.mxu3 %vm962_vm3, %v958_v47  ;;  %v886_v47 = vsel %vm618_vm2, %v881_v36, %v8664_v6  ;;  %v2724_v6 = vsel %vm1893_vm4, %v2722_v50, %v2723_v52 }
  0xa0   :  { %v9070_v55 = vpop.f32.mrf.mxu0  ;;  %v9072_v56 = vpop.f32.mrf.mxu1 }
  0xa2   :  { %v9077_v63 = vpop.f32.mrf.mxu2  ;;  %v9079_v0 = vpop.f32.mrf.mxu3 }
  0xa3   :  { %11148 = vst [vmem:[#allocation5_spill] sm:$0xff] %v9077_v63  ;;  %7357 = vmatmul.msk.bf16.gmra.mxu1 %vm962_vm3, %v790_v57  ;;  %v710_v57 = vsel %vm618_vm2, %v705_v49, %v8594_v29  ;;  %v8227_v29 = vld [vmem:[%s11136_s0] sm:$0xff] }
  0xa4   :  { %11149 = vst [vmem:[#allocation6_spill] sm:$0xff] %v9079_v0 }
  0xa7   :  { %7368 = vmatmul.msk.bf16.gmra.mxu2 %vm962_vm3, %v878_v1 }
  0xa8   :  { %v9085_v5 = vpop.f32.mrf.mxu0  ;;  %v9088_v8 = vpop.f32.mrf.mxu1 }
  0xaa   :  { %v9094_v14 = vpop.f32.mrf.mxu2  ;;  %v9096_v15 = vpop.f32.mrf.mxu3 }
  0xab   :  { %11150 = vst [vmem:[#allocation7_spill] sm:$0xff] %v9094_v14  ;;  %7346 = vmatmul.msk.bf16.gmra.mxu0 %vm962_vm3, %v702_v7  ;;  %v3258_v7 = vshll.u32 %v2679_v43, 16  ;;  %v2725_v43 = vrot.slane %v8312_v40, 1 }
  0xac   :  { %11151 = vst [vmem:[#allocation8_spill] sm:$0xff] %v9096_v15 }
  0xad   :  { %v3260_v20 = vrot.slane %v3258_v7, 2  ;;  %v2726_v50 = vsel %vm1893_vm4, %v2723_v52, %v2725_v43 }
  0xaf   :  { %7379 = vmatmul.msk.bf16.gmra.mxu3 %vm962_vm3, %v961_v16  ;;  %v1895_v16 = vrot.slane %v8628_v51, 1  ;;  %v3261_v36 = vor.u32 %v3260_v20, %v3257_v19  ;;  %v8313_v19 = vld [vmem:[#allocation2 + $0x20] sm:$0xff] }
  0xb0   :  { %v9111_v32 = vpop.f32.mrf.mxu0  ;;  %v9113_v33 = vpop.f32.mrf.mxu1  ;;  %v2727_v21 = vrot.slane %v8313_v19, 1 }
  0xb1   :  { %v3270_v41 = vsel %vm3253_vm5, %v3261_v36, %v3269_v39  ;;  %v1898_v52 = vsel %vm1893_vm4, %v1895_v16, %v1897_v4 }
  0xb2   :  { %v9122_v42 = vpop.f32.mrf.mxu2  ;;  %v9124_v44 = vpop.f32.mrf.mxu3 }
  0xb3   :  { %11153 = vst [vmem:[#allocation10_spill] sm:$0xff] %v9122_v42  ;;  %7358 = vmatmul.msk.bf16.gmra.mxu1 %vm962_vm3, %v798_v35  ;;  %v1896_v35 = vsel %vm1893_vm4, %v1894_v13, %v1895_v16  ;;  %v3281_v16 = vshrl.u32 %v8313_v19, 16 }
  0xb4   :  { %11154 = vst [vmem:[#allocation11_spill] sm:$0xff] %v9124_v44 }
  0xb7   :  { %7369 = vmatmul.msk.bf16.gmra.mxu2 %vm962_vm3, %v886_v47 }
  0xb8   :  { %v9132_v54 = vpop.f32.mrf.mxu0  ;;  %v9136_v59 = vpop.f32.mrf.mxu1 }
  0xba   :  { %v9138_v1 = vpop.f32.mrf.mxu2  ;;  %v9140_v2 = vpop.f32.mrf.mxu3 }
  0xbb   :  { %11155 = vst [vmem:[#allocation12_spill] sm:$0xff] %v9138_v1  ;;  %7347 = vmatmul.msk.bf16.gmra.mxu0 %vm962_vm3, %v710_v57  ;;  %v3272_v57 = vshrl.u32 %v8312_v40, 16  ;;  %v2728_v40 = vsel %vm1893_vm4, %v2725_v43, %v2727_v21  ;;  %v1900_v43 = vsel %vm1893_vm4, %v1897_v4, %v1899_v60 }
  0xbc   :  { %11156 = vst [vmem:[#allocation13_spill] sm:$0xff] %v9140_v2 }
  0xbd   :  { %v3274_v7 = vrot.slane %v3272_v57, 1 }
  0xbf   :  { %7800 = vmatmul.msk.bf16.vlgmr.msrb.gmra.mxu3 %vm962_vm3, %v2724_v6  ;;  %v3278_v13 = vor.u32 %v3277_v9, %v3274_v7 }
  0xc0   :  { %v9149_v17 = vpop.f32.mrf.mxu0  ;;  %v9151_v18 = vpop.f32.mrf.mxu1 }
  0xc1   :  { %v3279_v23 = vsel %vm3253_vm5, %v3269_v39, %v3278_v13 }
  0xc2   :  { %v9153_v28 = vpop.f32.mrf.mxu2  ;;  %v9155_v30 = vpop.f32.mrf.mxu3 }
  0xc3   :  { %11157 = vst [vmem:[#allocation14_spill] sm:$0xff] %v9153_v28  ;;  %7548 = vmatmul.msk.bf16.vlgmr.msrb.gmra.mxu1 %vm962_vm3, %v8227_v29 }
  0xc4   :  { %11158 = vst [vmem:[#allocation15_spill] sm:$0xff] %v9155_v30 }
  0xc7   :  { %7592 = vmatmul.msk.bf16.vlgmr.msrb.gmra.mxu2 %vm962_vm3, %v1896_v35 }
  0xc8   :  { %v9160_v51 = vpop.f32.mrf.mxu0  ;;  %v9163_v46 = vpop.f32.mrf.mxu1 }
  0xca   :  { %v9165_v47 = vpop.f32.mrf.mxu2  ;;  %v9167_v49 = vpop.f32.mrf.mxu3 }
  0xcb   :  { %11159 = vst [vmem:[#allocation16_spill] sm:$0xff] %v9165_v47  ;;  %7844 = vmatmul.msk.bf16.vlgmr.msrb.gmra.mxu0 %vm962_vm3, %v3270_v41  ;;  %v3284_v41 = vshll.u32 %v8313_v19, 16 }
  0xcc   :  { %11160 = vst [vmem:[#allocation17_spill] sm:$0xff] %v9167_v49 }
  0xcd   :  { %v3286_v7 = vrot.slane %v3284_v41, 2 }
  0xcf   :  { %7801 = vmatmul.msk.bf16.gmra.mxu3 %vm962_vm3, %v2726_v50  ;;  %v8229_v50 = vld [vmem:[%s11136_s0 + $0x10] sm:$0xff] }
  0xd0   :  { %v9175_v6 = vpop.f32.mrf.mxu0  ;;  %v9177_v3 = vpop.f32.mrf.mxu1 }
  0xd2   :  { %v9180_v10 = vpop.f32.mrf.mxu2  ;;  %v9182_v29 = vpop.f32.mrf.mxu3 }
  0xd3   :  { %11161 = vst [vmem:[#allocation18_spill] sm:$0xff] %v9180_v10  ;;  %7549 = vmatmul.msk.bf16.gmra.mxu1 %vm962_vm3, %v8228_v61  ;;  %v3283_v61 = vrot.slane %v3281_v16, 1 }
  0xd4   :  { %11162 = vst [vmem:[#allocation19_spill] sm:$0xff] %v9182_v29 }
  0xd5   :  { %v3287_v19 = vor.u32 %v3286_v7, %v3283_v61  ;;  %v8230_v7 = vld [vmem:[%s11136_s0 + $0x18] sm:$0xff] }
  0xd7   :  { %7593 = vmatmul.msk.bf16.gmra.mxu2 %vm962_vm3, %v1898_v52  ;;  %v3288_v31 = vsel %vm3253_vm5, %v3278_v13, %v3287_v19 }
  0xd8   :  { %v9187_v20 = vpop.f32.mrf.mxu0  ;;  %v9190_v26 = vpop.f32.mrf.mxu1 }
  0xda   :  { %v9192_v35 = vpop.f32.mrf.mxu2  ;;  %v9194_v36 = vpop.f32.mrf.mxu3 }
  0xdb   :  { %11163 = vst [vmem:[#allocation20_spill] sm:$0xff] %v9192_v35  ;;  %7845 = vmatmul.msk.bf16.gmra.mxu0 %vm962_vm3, %v3279_v23  ;;  %v8314_v23 = vld [vmem:[#allocation2 + $0x28] sm:$0xff] }
  0xdc   :  { %11164 = vst [vmem:[#allocation21_spill] sm:$0xff] %v9194_v36  ;;  %v2729_v58 = vrot.slane %v8314_v23, 1  ;;  %v3290_v4 = vshrl.u32 %v8314_v23, 16  ;;  %v3293_v61 = vshll.u32 %v8314_v23, 16 }
  0xde   :  { %v3292_v29 = vrot.slane %v3290_v4, 1 }
  0xdf   :  { %7802 = vmatmul.msk.bf16.gmra.mxu3 %vm962_vm3, %v2728_v40 }
  0xe0   :  { %v9202_v39 = vpop.f32.mrf.mxu0  ;;  %v9204_v57 = vpop.f32.mrf.mxu1 }
  0xe2   :  { %v9207_v9 = vpop.f32.mrf.mxu2  ;;  %v9209_v52 = vpop.f32.mrf.mxu3 }
  0xe3   :  { %11165 = vst [vmem:[#allocation22_spill] sm:$0xff] %v9207_v9  ;;  %7550 = vmatmul.msk.bf16.gmra.mxu1 %vm962_vm3, %v8229_v50  ;;  %v2730_v50 = vsel %vm1893_vm4, %v2727_v21, %v2729_v58 }
  0xe4   :  { %11166 = vst [vmem:[#allocation23_spill] sm:$0xff] %v9209_v52  ;;  %v1901_v52 = vrot.slane %v8810_v25, 1 }
  0xe6   :  { %v1902_v21 = vsel %vm1893_vm4, %v1899_v60, %v1901_v52 }
  0xe7   :  { %7594 = vmatmul.msk.bf16.gmra.mxu2 %vm962_vm3, %v1900_v43 }
  0xe8   :  { %v9214_v40 = vpop.f32.mrf.mxu0  ;;  %v9217_v36 = vpop.f32.mrf.mxu1 }
  0xea   :  { %v9219_v16 = vpop.f32.mrf.mxu2  ;;  %v9221_v41 = vpop.f32.mrf.mxu3 }
  0xeb   :  { %11167 = vst [vmem:[#allocation24_spill] sm:$0xff] %v9219_v16  ;;  %7846 = vmatmul.msk.bf16.gmra.mxu0 %vm962_vm3, %v3288_v31 }
  0xec   :  { %11168 = vst [vmem:[#allocation25_spill] sm:$0xff] %v9221_v41  ;;  %v3295_v41 = vrot.slane %v3293_v61, 2 }
  0xee   :  { %v3296_v23 = vor.u32 %v3295_v41, %v3292_v29  ;;  %v8231_v41 = vld [vmem:[%s11136_s0 + $0x20] sm:$0xff] }
  0xef   :  { %7803 = vmatmul.msk.bf16.gmra.mxu3 %vm962_vm3, %v2730_v50  ;;  %v8315_v50 = vld [vmem:[#allocation2 + $0x30] sm:$0xff] }
  0xf0   :  { %v9229_v13 = vpop.f32.mrf.mxu0  ;;  %v9231_v43 = vpop.f32.mrf.mxu1  ;;  %v3297_v2 = vsel %vm3253_vm5, %v3287_v19, %v3296_v23  ;;  %v2731_v25 = vrot.slane %v8315_v50, 1  ;;  %v3299_v60 = vshrl.u32 %v8315_v50, 16  ;;  %v3302_v29 = vshll.u32 %v8315_v50, 16 }
  0xf2   :  { %v9234_v49 = vpop.f32.mrf.mxu2  ;;  %v9236_v31 = vpop.f32.mrf.mxu3  ;;  %v3301_v24 = vrot.slane %v3299_v60, 1 }
  0xf3   :  { %11169 = vst [vmem:[#allocation26_spill] sm:$0xff] %v9234_v49  ;;  %7551 = vmatmul.msk.bf16.gmra.mxu1 %vm962_vm3, %v8230_v7  ;;  %v2732_v7 = vsel %vm1893_vm4, %v2729_v58, %v2731_v25 }
  0xf4   :  { %11170 = vst [vmem:[#allocation27_spill] sm:$0xff] %v9236_v31  ;;  %v1903_v31 = vrot.slane %v8865_v62, 1 }
  0xf6   :  { %v1904_v58 = vsel %vm1893_vm4, %v1901_v52, %v1903_v31 }
  0xf7   :  { %7595 = vmatmul.msk.bf16.gmra.mxu2 %vm962_vm3, %v1902_v21 }
  0xf8   :  { %v9241_v30 = vpop.f32.mrf.mxu0  ;;  %v9244_v44 = vpop.f32.mrf.mxu1 }
  0xfa   :  { %v9246_v4 = vpop.f32.mrf.mxu2  ;;  %v9248_v61 = vpop.f32.mrf.mxu3 }
  0xfb   :  { %11171 = vst [vmem:[#allocation28_spill] sm:$0xff] %v9246_v4  ;;  %7847 = vmatmul.msk.bf16.gmra.mxu0 %vm962_vm3, %v3297_v2 }
  0xfc   :  { %11172 = vst [vmem:[#allocation29_spill] sm:$0xff] %v9248_v61  ;;  %v3304_v61 = vrot.slane %v3302_v29, 2 }
  0xfe   :  { %v3305_v50 = vor.u32 %v3304_v61, %v3301_v24  ;;  %v8232_v61 = vld [vmem:[%s11136_s0 + $0x28] sm:$0xff] }
  0xff   :  { %7804 = vmatmul.msk.bf16.gmra.mxu3 %vm962_vm3, %v2732_v7  ;;  %v8316_v7 = vld [vmem:[#allocation2 + $0x38] sm:$0xff] }
 0x100   :  { %v9256_v19 = vpop.f32.mrf.mxu0  ;;  %v9258_v21 = vpop.f32.mrf.mxu1  ;;  %v3306_v27 = vsel %vm3253_vm5, %v3296_v23, %v3305_v50  ;;  %v2733_v62 = vrot.slane %v8316_v7, 1  ;;  %v3308_v52 = vshrl.u32 %v8316_v7, 16  ;;  %v3311_v24 = vshll.u32 %v8316_v7, 16 }
 0x102   :  { %v9261_v15 = vpop.f32.mrf.mxu2  ;;  %v9263_v2 = vpop.f32.mrf.mxu3 }
 0x103   :  { %11173 = vst [vmem:[#allocation30_spill] sm:$0xff] %v9261_v15  ;;  %7552 = vmatmul.msk.bf16.gmra.mxu1 %vm962_vm3, %v8231_v41  ;;  %v2734_v41 = vsel %vm1893_vm4, %v2731_v25, %v2733_v62 }
 0x104   :  { %11174 = vst [vmem:[#allocation31_spill] sm:$0xff] %v9263_v2  ;;  %v1905_v2 = vrot.slane %v8917_v34, 1 }
 0x106   :  { %v1906_v25 = vsel %vm1893_vm4, %v1903_v31, %v1905_v2 }
 0x107   :  { %7596 = vmatmul.msk.bf16.gmra.mxu2 %vm962_vm3, %v1904_v58 }
 0x108   :  { %v9268_v0 = vpop.f32.mrf.mxu0  ;;  %v9271_v4 = vpop.f32.mrf.mxu1 }
 0x10a   :  { %v9273_v60 = vpop.f32.mrf.mxu2  ;;  %v9275_v29 = vpop.f32.mrf.mxu3 }
 0x10b   :  { %11175 = vst [vmem:[#allocation32_spill] sm:$0xff] %v9273_v60  ;;  %7848 = vmatmul.msk.bf16.gmra.mxu0 %vm962_vm3, %v3306_v27  ;;  %v3310_v60 = vrot.slane %v3308_v52, 1 }
 0x10c   :  { %11176 = vst [vmem:[#allocation33_spill] sm:$0xff] %v9275_v29  ;;  %v3313_v29 = vrot.slane %v3311_v24, 2 }
 0x10e   :  { %v3314_v7 = vor.u32 %v3313_v29, %v3310_v60  ;;  %v8233_v29 = vld [vmem:[%s11136_s0 + $0x30] sm:$0xff] }
 0x10f   :  { %7805 = vmatmul.msk.bf16.gmra.mxu3 %vm962_vm3, %v2734_v41  ;;  %v8317_v41 = vld [vmem:[#allocation2 + $0x40] sm:$0xff] }
 0x110   :  { %v9283_v23 = vpop.f32.mrf.mxu0  ;;  %v9285_v58 = vpop.f32.mrf.mxu1  ;;  %v3315_v16 = vsel %vm3253_vm5, %v3305_v50, %v3314_v7  ;;  %v2735_v34 = vrot.slane %v8317_v41, 1  ;;  %v3317_v31 = vshrl.u32 %v8317_v41, 16  ;;  %v3320_v60 = vshll.u32 %v8317_v41, 16 }
 0x112   :  { %v9288_v15 = vpop.f32.mrf.mxu2  ;;  %v9290_v27 = vpop.f32.mrf.mxu3 }
 0x113   :  { %11177 = vst [vmem:[#allocation34_spill] sm:$0xff] %v9288_v15  ;;  %7553 = vmatmul.msk.bf16.gmra.mxu1 %vm962_vm3, %v8232_v61  ;;  %v2736_v61 = vsel %vm1893_vm4, %v2733_v62, %v2735_v34 }
 0x114   :  { %11178 = vst [vmem:[#allocation35_spill] sm:$0xff] %v9290_v27  ;;  %v1907_v27 = vrot.slane %v8975_v12, 1 }
 0x116   :  { %v1908_v62 = vsel %vm1893_vm4, %v1905_v2, %v1907_v27 }
 0x117   :  { %7597 = vmatmul.msk.bf16.gmra.mxu2 %vm962_vm3, %v1906_v25 }
 0x118   :  { %v9295_v49 = vpop.f32.mrf.mxu0  ;;  %v9298_v9 = vpop.f32.mrf.mxu1 }
 0x11a   :  { %v9300_v52 = vpop.f32.mrf.mxu2  ;;  %v9302_v24 = vpop.f32.mrf.mxu3 }
 0x11b   :  { %11179 = vst [vmem:[#allocation36_spill] sm:$0xff] %v9300_v52  ;;  %7849 = vmatmul.msk.bf16.gmra.mxu0 %vm962_vm3, %v3315_v16  ;;  %v3319_v52 = vrot.slane %v3317_v31, 1 }
 0x11c   :  { %11180 = vst [vmem:[#allocation37_spill] sm:$0xff] %v9302_v24  ;;  %v3322_v24 = vrot.slane %v3320_v60, 2 }
 0x11e   :  { %v3323_v41 = vor.u32 %v3322_v24, %v3319_v52  ;;  %v8234_v24 = vld [vmem:[%s11136_s0 + $0x38] sm:$0xff] }
 0x11f   :  { %7806 = vmatmul.msk.bf16.gmra.mxu3 %vm962_vm3, %v2736_v61  ;;  %v8318_v61 = vld [vmem:[#allocation2 + $0x48] sm:$0xff] }
 0x120   :  { %v9310_v50 = vpop.f32.mrf.mxu0  ;;  %v9312_v25 = vpop.f32.mrf.mxu1  ;;  %v3324_v10 = vsel %vm3253_vm5, %v3314_v7, %v3323_v41  ;;  %v2737_v12 = vrot.slane %v8318_v61, 1  ;;  %v3326_v2 = vshrl.u32 %v8318_v61, 16  ;;  %v3329_v52 = vshll.u32 %v8318_v61, 16 }
 0x121   :  { %11181 = vst [vmem:[#allocation38_spill] sm:$0xff] %v9312_v25 }
 0x122   :  { %v9315_v15 = vpop.f32.mrf.mxu2  ;;  %v9317_v16 = vpop.f32.mrf.mxu3 }
 0x123   :  { %11182 = vst [vmem:[#allocation39_spill] sm:$0xff] %v9315_v15  ;;  %7554 = vmatmul.msk.bf16.gmra.mxu1 %vm962_vm3, %v8233_v29  ;;  %v2738_v29 = vsel %vm1893_vm4, %v2735_v34, %v2737_v12 }
 0x124   :  { %11183 = vst [vmem:[#allocation40_spill] sm:$0xff] %v9317_v16  ;;  %v1909_v16 = vrot.slane %v9018_v48, 1 }
 0x126   :  { %v1910_v34 = vsel %vm1893_vm4, %v1907_v27, %v1909_v16 }
 0x127   :  { %7598 = vmatmul.msk.bf16.gmra.mxu2 %vm962_vm3, %v1908_v62 }
 0x128   :  { %v9322_v35 = vpop.f32.mrf.mxu0  ;;  %v9325_v47 = vpop.f32.mrf.mxu1 }
 0x129   :  { %11184 = vst [vmem:[#allocation41_spill] sm:$0xff] %v9325_v47 }
 0x12a   :  { %v9327_v31 = vpop.f32.mrf.mxu2  ;;  %v9329_v60 = vpop.f32.mrf.mxu3 }
 0x12b   :  { %11185 = vst [vmem:[#allocation42_spill] sm:$0xff] %v9327_v31  ;;  %7850 = vmatmul.msk.bf16.gmra.mxu0 %vm962_vm3, %v3324_v10  ;;  %v3328_v31 = vrot.slane %v3326_v2, 1 }
 0x12c   :  { %11186 = vst [vmem:[#allocation43_spill] sm:$0xff] %v9329_v60  ;;  %v3331_v60 = vrot.slane %v3329_v52, 2 }
 0x12e   :  { %v3332_v61 = vor.u32 %v3331_v60, %v3328_v31  ;;  %v8235_v31 = vld [vmem:[%s11136_s0 + $0x40] sm:$0xff] }
 0x12f   :  { %7807 = vmatmul.msk.bf16.gmra.mxu3 %vm962_vm3, %v2738_v29  ;;  %v8319_v29 = vld [vmem:[#allocation2 + $0x50] sm:$0xff] }
 0x130   :  { %v9337_v7 = vpop.f32.mrf.mxu0  ;;  %v9339_v62 = vpop.f32.mrf.mxu1  ;;  %v3333_v1 = vsel %vm3253_vm5, %v3323_v41, %v3332_v61  ;;  %v2739_v48 = vrot.slane %v8319_v29, 1  ;;  %v3338_v27 = vshll.u32 %v8319_v29, 16 }
 0x131   :  { %11187 = vst [vmem:[#allocation44_spill] sm:$0xff] %v9339_v62 }
 0x132   :  { %v9342_v15 = vpop.f32.mrf.mxu2  ;;  %v9344_v10 = vpop.f32.mrf.mxu3 }
 0x133   :  { %11188 = vst [vmem:[#allocation45_spill] sm:$0xff] %v9342_v15  ;;  %7555 = vmatmul.msk.bf16.gmra.mxu1 %vm962_vm3, %v8234_v24  ;;  %v2740_v24 = vsel %vm1893_vm4, %v2737_v12, %v2739_v48 }
 0x134   :  { %11189 = vst [vmem:[#allocation46_spill] sm:$0xff] %v9344_v10  ;;  %v3335_v10 = vshrl.u32 %v8319_v29, 16 }
 0x136   :  { %v3337_v15 = vrot.slane %v3335_v10, 1 }
 0x137   :  { %7599 = vmatmul.msk.bf16.gmra.mxu2 %vm962_vm3, %v1910_v34  ;;  %v1911_v34 = vrot.slane %v9044_v11, 1 }
 0x138   :  { %v9349_v28 = vpop.f32.mrf.mxu0  ;;  %v9352_v42 = vpop.f32.mrf.mxu1 }
 0x139   :  { %11190 = vst [vmem:[#allocation47_spill] sm:$0xff] %v9352_v42  ;;  %v1912_v12 = vsel %vm1893_vm4, %v1909_v16, %v1911_v34 }
 0x13a   :  { %v9354_v2 = vpop.f32.mrf.mxu2  ;;  %v1317_v52 = vpop.f32.mrf.mxu3 }
 0x13b   :  { %11191 = vst [vmem:[#allocation48_spill] sm:$0xff] %v9354_v2  ;;  %7851 = vmatmul.msk.bf16.gmra.mxu0 %vm962_vm3, %v3333_v1  ;;  %v3340_v2 = vrot.slane %v3338_v27, 2 }
 0x13d   :  { %v3341_v29 = vor.u32 %v3340_v2, %v3337_v15 }
 0x13f   :  { %7808 = vmatmul.msk.bf16.gmra.mxu3 %vm962_vm3, %v2740_v24  ;;  %v8320_v24 = vld [vmem:[#allocation2 + $0x58] sm:$0xff]  ;;  %v3342_v63 = vsel %vm3253_vm5, %v3332_v61, %v3341_v29  ;;  %v8236_v61 = vld [vmem:[%s11136_s0 + $0x48] sm:$0xff] }
 0x140   :  { %v9362_v60 = vpop.f32.mrf.mxu0  ;;  %v1673_v41 = vpop.f32.mrf.mxu1  ;;  %v2741_v42 = vrot.slane %v8320_v24, 1  ;;  %v3344_v62 = vshrl.u32 %v8320_v24, 16  ;;  %v3347_v16 = vshll.u32 %v8320_v24, 16 }
 0x141   :  { %v1674_v11 = vadd.f32 %v1673_v41, %v9059_v37  ;;  %v1913_v41 = vrot.slane %v9067_v53, 1 }
 0x142   :  { %v9365_v52 = vpop.f32.mrf.mxu2  ;;  %v2948_v1 = vpop.f32.mrf.mxu3  ;;  %v3346_v47 = vrot.slane %v3344_v62, 1 }
 0x143   :  { %11192 = vst [vmem:[#allocation49_spill] sm:$0xff] %v9365_v52  ;;  %7556 = vmatmul.msk.bf16.gmra.mxu1 %vm962_vm3, %v8235_v31  ;;  %v2742_v31 = vsel %vm1893_vm4, %v2739_v48, %v2741_v42 }
 0x147   :  { %7600 = vmatmul.msk.bf16.gmra.mxu2 %vm962_vm3, %v1912_v12 }
 0x148   :  { %v3781_v14 = vpop.f32.mrf.mxu0  ;;  %v1675_v45 = vpop.f32.mrf.mxu1 }
 0x14a   :  { %v2120_v10 = vpop.f32.mrf.mxu2  ;;  %v2950_v27 = vpop.f32.mrf.mxu3 }
 0x14b   :  { %7852 = vmatmul.msk.bf16.gmra.mxu0 %vm962_vm3, %v3342_v63  ;;  %v2334_v52 = vadd.f32 %v2120_v10, %v1674_v11  ;;  %v3349_v63 = vrot.slane %v3347_v16, 2  ;;  %v1676_v11 = vadd.f32 %v1675_v45, %v9070_v55 }
 0x14d   :  { %v3162_v15 = vadd.f32 %v2948_v1, %v2334_v52  ;;  %v1914_v52 = vsel %vm1893_vm4, %v1911_v34, %v1913_v41  ;;  %v3350_v1 = vor.u32 %v3349_v63, %v3346_v47 }
 0x14f   :  { %7809 = vmatmul.msk.bf16.gmra.mxu3 %vm962_vm3, %v2742_v31  ;;  %v9378_v2 = vadd.f32 %v3781_v14, %v3162_v15  ;;  %v8321_v31 = vld [vmem:[#allocation2 + $0x60] sm:$0xff]  ;;  %v3351_v53 = vsel %vm3253_vm5, %v3341_v29, %v3350_v1 }
 0x150   :  { %v3783_v12 = vpop.f32.mrf.mxu0  ;;  %v1678_v37 = vpop.f32.mrf.mxu1  ;;  %v2743_v16 = vrot.slane %v8321_v31, 1  ;;  %v3353_v34 = vshrl.u32 %v8321_v31, 16 }
 0x151   :  { %v1679_v45 = vadd.f32 %v1678_v37, %v9085_v5  ;;  %v8405_v37 = vld [vmem:[#allocation2 + $0x58] sm:$0xff] }
 0x152   :  { %v2122_v48 = vpop.f32.mrf.mxu2  ;;  %v2953_v10 = vpop.f32.mrf.mxu3  ;;  %v2744_v47 = vsel %vm1893_vm4, %v2741_v42, %v2743_v16 }
 0x153   :  { %v2335_v24 = vadd.f32 %v2122_v48, %v1676_v11  ;;  %7557 = vmatmul.msk.bf16.gmra.mxu1 %vm962_vm3, %v8236_v61  ;;  %v1915_v48 = vrot.slane %v8405_v37, 1 }
 0x155   :  { %v3163_v25 = vadd.f32 %v2950_v27, %v2335_v24  ;;  %v3356_v27 = vshll.u32 %v8321_v31, 16  ;;  %v3355_v24 = vrot.slane %v3353_v34, 1 }
 0x157   :  { %7601 = vmatmul.msk.bf16.gmra.mxu2 %vm962_vm3, %v1914_v52  ;;  %v9385_v14 = vadd.f32 %v3783_v12, %v3163_v25  ;;  %v8237_v25 = vld [vmem:[%s11136_s0 + $0x50] sm:$0xff]  ;;  %v3358_v52 = vrot.slane %v3356_v27, 2 }
 0x158   :  { %v3786_v15 = vpop.f32.mrf.mxu0  ;;  %v1680_v62 = vpop.f32.mrf.mxu1 }
 0x15a   :  { %v2125_v55 = vpop.f32.mrf.mxu2  ;;  %v2955_v11 = vpop.f32.mrf.mxu3 }
 0x15b   :  { %7853 = vmatmul.msk.bf16.gmra.mxu0 %vm962_vm3, %v3351_v53  ;;  %v2336_v61 = vadd.f32 %v2125_v55, %v1679_v45  ;;  %v1681_v53 = vadd.f32 %v1680_v62, %v9111_v32  ;;  %v3359_v55 = vor.u32 %v3358_v52, %v3355_v24 }
 0x15d   :  { %v3164_v63 = vadd.f32 %v2953_v10, %v2336_v61  ;;  %v1916_v10 = vsel %vm1893_vm4, %v1913_v41, %v1915_v48  ;;  %v8322_v61 = vld [vmem:[#allocation2 + $0x68] sm:$0xff]  ;;  %v3360_v34 = vsel %vm3253_vm5, %v3350_v1, %v3359_v55  ;;  %v8238_v1 = vld [vmem:[%s11136_s0 + $0x58] sm:$0xff] }
 0x15e   :  { %v2745_v37 = vrot.slane %v8322_v61, 1  ;;  %v3362_v24 = vshrl.u32 %v8322_v61, 16 }
 0x15f   :  { %7810 = vmatmul.msk.bf16.gmra.mxu3 %vm962_vm3, %v2744_v47  ;;  %v9395_v29 = vadd.f32 %v3786_v15, %v3164_v63 }
 0x160   :  { %v3788_v12 = vpop.f32.mrf.mxu0  ;;  %v1683_v5 = vpop.f32.mrf.mxu1  ;;  %v2746_v41 = vsel %vm1893_vm4, %v2743_v16, %v2745_v37 }
 0x161   :  { %v1684_v32 = vadd.f32 %v1683_v5, %v9132_v54  ;;  %v8406_v5 = vld [vmem:[#allocation2 + $0x60] sm:$0xff] }
 0x162   :  { %v2127_v42 = vpop.f32.mrf.mxu2  ;;  %v2958_v45 = vpop.f32.mrf.mxu3 }
 0x163   :  { %v2337_v31 = vadd.f32 %v2127_v42, %v1681_v53  ;;  %7558 = vmatmul.msk.bf16.gmra.mxu1 %vm962_vm3, %v8237_v25 }
 0x165   :  { %v3165_v47 = vadd.f32 %v2955_v11, %v2337_v31  ;;  %v3365_v11 = vshll.u32 %v8322_v61, 16  ;;  %v1917_v31 = vrot.slane %v8406_v5, 1 }
 0x167   :  { %7602 = vmatmul.msk.bf16.gmra.mxu2 %vm962_vm3, %v1916_v10  ;;  %v9401_v15 = vadd.f32 %v3788_v12, %v3165_v47  ;;  %v3364_v10 = vrot.slane %v3362_v24, 1  ;;  %v3367_v47 = vrot.slane %v3365_v11, 2 }
 0x168   :  { %v3791_v63 = vpop.f32.mrf.mxu0  ;;  %v1685_v27 = vpop.f32.mrf.mxu1 }
 0x16a   :  { %v2130_v62 = vpop.f32.mrf.mxu2  ;;  %v2960_v53 = vpop.f32.mrf.mxu3 }
 0x16b   :  { %7854 = vmatmul.msk.bf16.gmra.mxu0 %vm962_vm3, %v3360_v34  ;;  %v2338_v25 = vadd.f32 %v2130_v62, %v1684_v32  ;;  %v1686_v34 = vadd.f32 %v1685_v27, %v9149_v17  ;;  %v3368_v62 = vor.u32 %v3367_v47, %v3364_v10 }
 0x16d   :  { %v3166_v52 = vadd.f32 %v2958_v45, %v2338_v25  ;;  %v1918_v45 = vsel %vm1893_vm4, %v1915_v48, %v1917_v31  ;;  %v8323_v25 = vld [vmem:[#allocation2 + $0x70] sm:$0xff]  ;;  %v3369_v24 = vsel %vm3253_vm5, %v3359_v55, %v3368_v62  ;;  %v8239_v55 = vld [vmem:[%s11136_s0 + $0x60] sm:$0xff] }
 0x16e   :  { %v2747_v5 = vrot.slane %v8323_v25, 1  ;;  %v3371_v10 = vshrl.u32 %v8323_v25, 16 }
 0x16f   :  { %7811 = vmatmul.msk.bf16.gmra.mxu3 %vm962_vm3, %v2746_v41  ;;  %v9411_v12 = vadd.f32 %v3791_v63, %v3166_v52 }
 0x170   :  { %v3793_v42 = vpop.f32.mrf.mxu0  ;;  %v1688_v54 = vpop.f32.mrf.mxu1  ;;  %v2748_v48 = vsel %vm1893_vm4, %v2745_v37, %v2747_v5 }
 0x171   :  { %v1689_v17 = vadd.f32 %v1688_v54, %v9160_v51  ;;  %v8407_v54 = vld [vmem:[#allocation2 + $0x68] sm:$0xff] }
 0x172   :  { %v2132_v16 = vpop.f32.mrf.mxu2  ;;  %v2963_v32 = vpop.f32.mrf.mxu3 }
 0x173   :  { %v2339_v61 = vadd.f32 %v2132_v16, %v1686_v34  ;;  %7559 = vmatmul.msk.bf16.gmra.mxu1 %vm962_vm3, %v8238_v1 }
 0x175   :  { %v3167_v41 = vadd.f32 %v2960_v53, %v2339_v61  ;;  %v3374_v53 = vshll.u32 %v8323_v25, 16  ;;  %v1919_v61 = vrot.slane %v8407_v54, 1 }
 0x177   :  { %7603 = vmatmul.msk.bf16.gmra.mxu2 %vm962_vm3, %v1918_v45  ;;  %v9417_v63 = vadd.f32 %v3793_v42, %v3167_v41  ;;  %v3373_v45 = vrot.slane %v3371_v10, 1  ;;  %v3376_v41 = vrot.slane %v3374_v53, 2 }
 0x178   :  { %v3796_v52 = vpop.f32.mrf.mxu0  ;;  %v1690_v11 = vpop.f32.mrf.mxu1 }
 0x17a   :  { %v2135_v27 = vpop.f32.mrf.mxu2  ;;  %v2965_v34 = vpop.f32.mrf.mxu3 }
 0x17b   :  { %7855 = vmatmul.msk.bf16.gmra.mxu0 %vm962_vm3, %v3369_v24  ;;  %v2340_v1 = vadd.f32 %v2135_v27, %v1689_v17  ;;  %v1691_v24 = vadd.f32 %v1690_v11, %v9175_v6  ;;  %v3377_v27 = vor.u32 %v3376_v41, %v3373_v45 }
 0x17d   :  { %v3168_v47 = vadd.f32 %v2963_v32, %v2340_v1  ;;  %v1920_v32 = vsel %vm1893_vm4, %v1917_v31, %v1919_v61  ;;  %v8324_v1 = vld [vmem:[#allocation2 + $0x78] sm:$0xff]  ;;  %v3378_v10 = vsel %vm3253_vm5, %v3368_v62, %v3377_v27  ;;  %v8240_v62 = vld [vmem:[%s11136_s0 + $0x68] sm:$0xff] }
 0x17e   :  { %v2749_v54 = vrot.slane %v8324_v1, 1  ;;  %v3380_v45 = vshrl.u32 %v8324_v1, 16 }
 0x17f   :  { %7812 = vmatmul.msk.bf16.gmra.mxu3 %vm962_vm3, %v2748_v48  ;;  %v9427_v42 = vadd.f32 %v3796_v52, %v3168_v47 }
 0x180   :  { %v3798_v16 = vpop.f32.mrf.mxu0  ;;  %v1693_v51 = vpop.f32.mrf.mxu1  ;;  %v2750_v31 = vsel %vm1893_vm4, %v2747_v5, %v2749_v54 }
 0x181   :  { %v1694_v6 = vadd.f32 %v1693_v51, %v9187_v20  ;;  %v8408_v51 = vld [vmem:[#allocation2 + $0x70] sm:$0xff] }
 0x182   :  { %v2137_v37 = vpop.f32.mrf.mxu2  ;;  %v2968_v17 = vpop.f32.mrf.mxu3 }
 0x183   :  { %v2341_v25 = vadd.f32 %v2137_v37, %v1691_v24  ;;  %7560 = vmatmul.msk.bf16.gmra.mxu1 %vm962_vm3, %v8239_v55 }
 0x185   :  { %v3169_v48 = vadd.f32 %v2965_v34, %v2341_v25  ;;  %v3383_v34 = vshll.u32 %v8324_v1, 16  ;;  %v1921_v25 = vrot.slane %v8408_v51, 1 }
 0x187   :  { %7604 = vmatmul.msk.bf16.gmra.mxu2 %vm962_vm3, %v1920_v32  ;;  %v9433_v52 = vadd.f32 %v3798_v16, %v3169_v48  ;;  %v3382_v32 = vrot.slane %v3380_v45, 1  ;;  %v3385_v48 = vrot.slane %v3383_v34, 2 }
 0x188   :  { %v3801_v47 = vpop.f32.mrf.mxu0  ;;  %v1695_v53 = vpop.f32.mrf.mxu1 }
 0x18a   :  { %v2140_v11 = vpop.f32.mrf.mxu2  ;;  %v2970_v24 = vpop.f32.mrf.mxu3 }
 0x18b   :  { %7856 = vmatmul.msk.bf16.gmra.mxu0 %vm962_vm3, %v3378_v10  ;;  %v2342_v55 = vadd.f32 %v2140_v11, %v1694_v6  ;;  %v1696_v10 = vadd.f32 %v1695_v53, %v9202_v39  ;;  %v3386_v11 = vor.u32 %v3385_v48, %v3382_v32 }
 0x18d   :  { %v3170_v41 = vadd.f32 %v2968_v17, %v2342_v55  ;;  %v1922_v17 = vsel %vm1893_vm4, %v1919_v61, %v1921_v25  ;;  %v8325_v55 = vld [vmem:[#allocation2 + $0x80] sm:$0xff]  ;;  %v3387_v45 = vsel %vm3253_vm5, %v3377_v27, %v3386_v11  ;;  %v8241_v27 = vld [vmem:[%s11136_s0 + $0x70] sm:$0xff] }
 0x18e   :  { %v2751_v51 = vrot.slane %v8325_v55, 1  ;;  %v3389_v32 = vshrl.u32 %v8325_v55, 16 }
 0x18f   :  { %7813 = vmatmul.msk.bf16.gmra.mxu3 %vm962_vm3, %v2750_v31  ;;  %v9443_v16 = vadd.f32 %v3801_v47, %v3170_v41 }
 0x190   :  { %v3803_v37 = vpop.f32.mrf.mxu0  ;;  %v1698_v20 = vpop.f32.mrf.mxu1  ;;  %v2752_v61 = vsel %vm1893_vm4, %v2749_v54, %v2751_v51 }
 0x191   :  { %v1699_v39 = vadd.f32 %v1698_v20, %v9214_v40  ;;  %v8409_v20 = vld [vmem:[#allocation2 + $0x78] sm:$0xff] }
 0x192   :  { %v2142_v5 = vpop.f32.mrf.mxu2  ;;  %v2973_v6 = vpop.f32.mrf.mxu3 }
 0x193   :  { %v2343_v1 = vadd.f32 %v2142_v5, %v1696_v10  ;;  %7561 = vmatmul.msk.bf16.gmra.mxu1 %vm962_vm3, %v8240_v62 }
 0x195   :  { %v3171_v31 = vadd.f32 %v2970_v24, %v2343_v1  ;;  %v3392_v24 = vshll.u32 %v8325_v55, 16  ;;  %v1923_v1 = vrot.slane %v8409_v20, 1 }
 0x197   :  { %7605 = vmatmul.msk.bf16.gmra.mxu2 %vm962_vm3, %v1922_v17  ;;  %v9449_v47 = vadd.f32 %v3803_v37, %v3171_v31  ;;  %v3391_v17 = vrot.slane %v3389_v32, 1  ;;  %v3394_v31 = vrot.slane %v3392_v24, 2 }
 0x198   :  { %v3806_v41 = vpop.f32.mrf.mxu0  ;;  %v1700_v34 = vpop.f32.mrf.mxu1 }
 0x19a   :  { %v2145_v53 = vpop.f32.mrf.mxu2  ;;  %v2975_v10 = vpop.f32.mrf.mxu3 }
 0x19b   :  { %7857 = vmatmul.msk.bf16.gmra.mxu0 %vm962_vm3, %v3387_v45  ;;  %v2344_v62 = vadd.f32 %v2145_v53, %v1699_v39  ;;  %v1701_v45 = vadd.f32 %v1700_v34, %v9229_v13  ;;  %v3395_v53 = vor.u32 %v3394_v31, %v3391_v17 }
 0x19d   :  { %v3172_v48 = vadd.f32 %v2973_v6, %v2344_v62  ;;  %v1924_v6 = vsel %vm1893_vm4, %v1921_v25, %v1923_v1  ;;  %v8326_v62 = vld [vmem:[#allocation2 + $0x88] sm:$0xff]  ;;  %v3396_v32 = vsel %vm3253_vm5, %v3386_v11, %v3395_v53  ;;  %v8242_v11 = vld [vmem:[%s11136_s0 + $0x78] sm:$0xff] }
 0x19e   :  { %v2753_v20 = vrot.slane %v8326_v62, 1  ;;  %v3398_v17 = vshrl.u32 %v8326_v62, 16 }
 0x19f   :  { %7814 = vmatmul.msk.bf16.gmra.mxu3 %vm962_vm3, %v2752_v61  ;;  %v9459_v37 = vadd.f32 %v3806_v41, %v3172_v48 }
 0x1a0   :  { %v3808_v5 = vpop.f32.mrf.mxu0  ;;  %v1703_v40 = vpop.f32.mrf.mxu1  ;;  %v2754_v25 = vsel %vm1893_vm4, %v2751_v51, %v2753_v20 }
 0x1a1   :  { %v1704_v13 = vadd.f32 %v1703_v40, %v9241_v30  ;;  %v8410_v40 = vld [vmem:[#allocation2 + $0x80] sm:$0xff] }
 0x1a2   :  { %v2147_v54 = vpop.f32.mrf.mxu2  ;;  %v2978_v39 = vpop.f32.mrf.mxu3 }
 0x1a3   :  { %v2345_v55 = vadd.f32 %v2147_v54, %v1701_v45  ;;  %7562 = vmatmul.msk.bf16.gmra.mxu1 %vm962_vm3, %v8241_v27 }
 0x1a5   :  { %v3173_v61 = vadd.f32 %v2975_v10, %v2345_v55  ;;  %v3401_v10 = vshll.u32 %v8326_v62, 16  ;;  %v1925_v55 = vrot.slane %v8410_v40, 1 }
 0x1a7   :  { %7606 = vmatmul.msk.bf16.gmra.mxu2 %vm962_vm3, %v1924_v6  ;;  %v9465_v41 = vadd.f32 %v3808_v5, %v3173_v61  ;;  %v3400_v6 = vrot.slane %v3398_v17, 1  ;;  %v3403_v61 = vrot.slane %v3401_v10, 2 }
 0x1a8   :  { %v3811_v48 = vpop.f32.mrf.mxu0  ;;  %v1705_v24 = vpop.f32.mrf.mxu1 }
 0x1aa   :  { %v2150_v34 = vpop.f32.mrf.mxu2  ;;  %v2980_v45 = vpop.f32.mrf.mxu3 }
 0x1ab   :  { %7858 = vmatmul.msk.bf16.gmra.mxu0 %vm962_vm3, %v3396_v32  ;;  %v2346_v27 = vadd.f32 %v2150_v34, %v1704_v13  ;;  %v1706_v32 = vadd.f32 %v1705_v24, %v9256_v19  ;;  %v3404_v34 = vor.u32 %v3403_v61, %v3400_v6 }
 0x1ad   :  { %v3174_v31 = vadd.f32 %v2978_v39, %v2346_v27  ;;  %v1926_v39 = vsel %vm1893_vm4, %v1923_v1, %v1925_v55  ;;  %v8327_v27 = vld [vmem:[#allocation2 + $0x90] sm:$0xff]  ;;  %v3405_v17 = vsel %vm3253_vm5, %v3395_v53, %v3404_v34  ;;  %v8243_v53 = vld [vmem:[%s11136_s0 + $0x80] sm:$0xff] }
 0x1ae   :  { %v2755_v40 = vrot.slane %v8327_v27, 1  ;;  %v3407_v6 = vshrl.u32 %v8327_v27, 16 }
 0x1af   :  { %7815 = vmatmul.msk.bf16.gmra.mxu3 %vm962_vm3, %v2754_v25  ;;  %v9475_v5 = vadd.f32 %v3811_v48, %v3174_v31 }
 0x1b0   :  { %v3813_v54 = vpop.f32.mrf.mxu0  ;;  %v1708_v30 = vpop.f32.mrf.mxu1  ;;  %v2756_v1 = vsel %vm1893_vm4, %v2753_v20, %v2755_v40 }
 0x1b1   :  { %v1709_v19 = vadd.f32 %v1708_v30, %v9268_v0  ;;  %v8411_v30 = vld [vmem:[#allocation2 + $0x88] sm:$0xff] }
 0x1b2   :  { %v2152_v51 = vpop.f32.mrf.mxu2  ;;  %v2983_v13 = vpop.f32.mrf.mxu3 }
 0x1b3   :  { %v2347_v62 = vadd.f32 %v2152_v51, %v1706_v32  ;;  %7563 = vmatmul.msk.bf16.gmra.mxu1 %vm962_vm3, %v8242_v11 }
 0x1b5   :  { %v3175_v25 = vadd.f32 %v2980_v45, %v2347_v62  ;;  %v3410_v45 = vshll.u32 %v8327_v27, 16  ;;  %v1927_v62 = vrot.slane %v8411_v30, 1 }
 0x1b7   :  { %7607 = vmatmul.msk.bf16.gmra.mxu2 %vm962_vm3, %v1926_v39  ;;  %v9481_v48 = vadd.f32 %v3813_v54, %v3175_v25  ;;  %v3409_v39 = vrot.slane %v3407_v6, 1  ;;  %v3412_v25 = vrot.slane %v3410_v45, 2 }
 0x1b8   :  { %v3816_v31 = vpop.f32.mrf.mxu0  ;;  %v1710_v10 = vpop.f32.mrf.mxu1 }
 0x1ba   :  { %v2155_v24 = vpop.f32.mrf.mxu2  ;;  %v2985_v32 = vpop.f32.mrf.mxu3 }
 0x1bb   :  { %7859 = vmatmul.msk.bf16.gmra.mxu0 %vm962_vm3, %v3405_v17  ;;  %v2348_v11 = vadd.f32 %v2155_v24, %v1709_v19  ;;  %v1711_v17 = vadd.f32 %v1710_v10, %v9283_v23  ;;  %v3413_v24 = vor.u32 %v3412_v25, %v3409_v39 }
 0x1bd   :  { %v3176_v61 = vadd.f32 %v2983_v13, %v2348_v11  ;;  %v1928_v13 = vsel %vm1893_vm4, %v1925_v55, %v1927_v62  ;;  %v8328_v11 = vld [vmem:[#allocation2 + $0x98] sm:$0xff]  ;;  %v3414_v6 = vsel %vm3253_vm5, %v3404_v34, %v3413_v24  ;;  %v8244_v34 = vld [vmem:[%s11136_s0 + $0x88] sm:$0xff] }
 0x1be   :  { %v2757_v30 = vrot.slane %v8328_v11, 1  ;;  %v3416_v39 = vshrl.u32 %v8328_v11, 16 }
 0x1bf   :  { %7816 = vmatmul.msk.bf16.gmra.mxu3 %vm962_vm3, %v2756_v1  ;;  %v9491_v54 = vadd.f32 %v3816_v31, %v3176_v61 }
 0x1c0   :  { %v3818_v51 = vpop.f32.mrf.mxu0  ;;  %v1713_v0 = vpop.f32.mrf.mxu1  ;;  %v2758_v55 = vsel %vm1893_vm4, %v2755_v40, %v2757_v30 }
 0x1c1   :  { %v1714_v23 = vadd.f32 %v1713_v0, %v9295_v49  ;;  %v8412_v0 = vld [vmem:[#allocation2 + $0x90] sm:$0xff] }
 0x1c2   :  { %v2157_v20 = vpop.f32.mrf.mxu2  ;;  %v2988_v19 = vpop.f32.mrf.mxu3 }
 0x1c3   :  { %v2349_v27 = vadd.f32 %v2157_v20, %v1711_v17  ;;  %7564 = vmatmul.msk.bf16.gmra.mxu1 %vm962_vm3, %v8243_v53 }
 0x1c5   :  { %v3177_v1 = vadd.f32 %v2985_v32, %v2349_v27  ;;  %v3419_v32 = vshll.u32 %v8328_v11, 16  ;;  %v1929_v27 = vrot.slane %v8412_v0, 1 }
 0x1c7   :  { %7608 = vmatmul.msk.bf16.gmra.mxu2 %vm962_vm3, %v1928_v13  ;;  %v9497_v31 = vadd.f32 %v3818_v51, %v3177_v1  ;;  %v3418_v13 = vrot.slane %v3416_v39, 1  ;;  %v3421_v1 = vrot.slane %v3419_v32, 2 }
 0x1c8   :  { %v3821_v61 = vpop.f32.mrf.mxu0  ;;  %v1715_v45 = vpop.f32.mrf.mxu1 }
 0x1ca   :  { %v2160_v10 = vpop.f32.mrf.mxu2  ;;  %v2990_v17 = vpop.f32.mrf.mxu3 }
 0x1cb   :  { %7860 = vmatmul.msk.bf16.gmra.mxu0 %vm962_vm3, %v3414_v6  ;;  %v2350_v53 = vadd.f32 %v2160_v10, %v1714_v23  ;;  %v1716_v6 = vadd.f32 %v1715_v45, %v9310_v50  ;;  %v3422_v10 = vor.u32 %v3421_v1, %v3418_v13 }
 0x1cd   :  { %v3178_v25 = vadd.f32 %v2988_v19, %v2350_v53  ;;  %v1930_v19 = vsel %vm1893_vm4, %v1927_v62, %v1929_v27  ;;  %v8329_v53 = vld [vmem:[#allocation2 + $0xa0] sm:$0xff]  ;;  %v3423_v39 = vsel %vm3253_vm5, %v3413_v24, %v3422_v10  ;;  %v8245_v24 = vld [vmem:[%s11136_s0 + $0x90] sm:$0xff] }
 0x1ce   :  { %v2759_v0 = vrot.slane %v8329_v53, 1  ;;  %v3425_v13 = vshrl.u32 %v8329_v53, 16 }
 0x1cf   :  { %7817 = vmatmul.msk.bf16.gmra.mxu3 %vm962_vm3, %v2758_v55  ;;  %v9507_v51 = vadd.f32 %v3821_v61, %v3178_v25 }
 0x1d0   :  { %v3823_v20 = vpop.f32.mrf.mxu0  ;;  %v1718_v49 = vpop.f32.mrf.mxu1  ;;  %v2760_v62 = vsel %vm1893_vm4, %v2757_v30, %v2759_v0 }
 0x1d1   :  { %v1719_v50 = vadd.f32 %v1718_v49, %v9322_v35  ;;  %v8413_v49 = vld [vmem:[#allocation2 + $0x98] sm:$0xff] }
 0x1d2   :  { %v2162_v40 = vpop.f32.mrf.mxu2  ;;  %v2993_v23 = vpop.f32.mrf.mxu3 }
 0x1d3   :  { %v2351_v11 = vadd.f32 %v2162_v40, %v1716_v6  ;;  %7565 = vmatmul.msk.bf16.gmra.mxu1 %vm962_vm3, %v8244_v34 }
 0x1d5   :  { %v3179_v55 = vadd.f32 %v2990_v17, %v2351_v11  ;;  %v3428_v17 = vshll.u32 %v8329_v53, 16  ;;  %v1931_v11 = vrot.slane %v8413_v49, 1 }
 0x1d7   :  { %7609 = vmatmul.msk.bf16.gmra.mxu2 %vm962_vm3, %v1930_v19  ;;  %v9513_v61 = vadd.f32 %v3823_v20, %v3179_v55  ;;  %v3427_v19 = vrot.slane %v3425_v13, 1  ;;  %v3430_v55 = vrot.slane %v3428_v17, 2 }
 0x1d8   :  { %v3826_v25 = vpop.f32.mrf.mxu0  ;;  %v1720_v32 = vpop.f32.mrf.mxu1 }
 0x1da   :  { %v2165_v45 = vpop.f32.mrf.mxu2  ;;  %v2995_v6 = vpop.f32.mrf.mxu3 }
 0x1db   :  { %7861 = vmatmul.msk.bf16.gmra.mxu0 %vm962_vm3, %v3423_v39  ;;  %v2352_v34 = vadd.f32 %v2165_v45, %v1719_v50  ;;  %v1721_v39 = vadd.f32 %v1720_v32, %v9337_v7  ;;  %v3431_v45 = vor.u32 %v3430_v55, %v3427_v19 }
 0x1dd   :  { %v3180_v1 = vadd.f32 %v2993_v23, %v2352_v34  ;;  %v1932_v23 = vsel %vm1893_vm4, %v1929_v27, %v1931_v11  ;;  %v8330_v34 = vld [vmem:[#allocation2 + $0xa8] sm:$0xff]  ;;  %v3432_v13 = vsel %vm3253_vm5, %v3422_v10, %v3431_v45  ;;  %v8246_v10 = vld [vmem:[%s11136_s0 + $0x98] sm:$0xff] }
 0x1de   :  { %v2761_v49 = vrot.slane %v8330_v34, 1  ;;  %v3434_v19 = vshrl.u32 %v8330_v34, 16 }
 0x1df   :  { %7818 = vmatmul.msk.bf16.gmra.mxu3 %vm962_vm3, %v2760_v62  ;;  %v9523_v20 = vadd.f32 %v3826_v25, %v3180_v1 }
 0x1e0   :  { %v3828_v40 = vpop.f32.mrf.mxu0  ;;  %v1723_v35 = vpop.f32.mrf.mxu1  ;;  %v2762_v27 = vsel %vm1893_vm4, %v2759_v0, %v2761_v49 }
 0x1e1   :  { %v1724_v7 = vadd.f32 %v1723_v35, %v9349_v28  ;;  %v8414_v35 = vld [vmem:[#allocation2 + $0xa0] sm:$0xff] }
 0x1e2   :  { %v2167_v30 = vpop.f32.mrf.mxu2  ;;  %v2998_v50 = vpop.f32.mrf.mxu3 }
 0x1e3   :  { %v2353_v53 = vadd.f32 %v2167_v30, %v1721_v39  ;;  %7566 = vmatmul.msk.bf16.gmra.mxu1 %vm962_vm3, %v8245_v24 }
 0x1e5   :  { %v3181_v62 = vadd.f32 %v2995_v6, %v2353_v53  ;;  %v3437_v6 = vshll.u32 %v8330_v34, 16  ;;  %v1933_v53 = vrot.slane %v8414_v35, 1 }
 0x1e7   :  { %7610 = vmatmul.msk.bf16.gmra.mxu2 %vm962_vm3, %v1932_v23  ;;  %v9529_v25 = vadd.f32 %v3828_v40, %v3181_v62  ;;  %v3436_v23 = vrot.slane %v3434_v19, 1  ;;  %v3439_v62 = vrot.slane %v3437_v6, 2 }
 0x1e8   :  { %v3831_v1 = vpop.f32.mrf.mxu0  ;;  %v1725_v17 = vpop.f32.mrf.mxu1 }
 0x1ea   :  { %v2170_v32 = vpop.f32.mrf.mxu2  ;;  %v3000_v39 = vpop.f32.mrf.mxu3 }
 0x1eb   :  { %7862 = vmatmul.msk.bf16.gmra.mxu0 %vm962_vm3, %v3432_v13  ;;  %v2354_v24 = vadd.f32 %v2170_v32, %v1724_v7  ;;  %v1726_v13 = vadd.f32 %v1725_v17, %v9362_v60  ;;  %v3440_v32 = vor.u32 %v3439_v62, %v3436_v23 }
 0x1ed   :  { %v3182_v55 = vadd.f32 %v2998_v50, %v2354_v24  ;;  %v1934_v50 = vsel %vm1893_vm4, %v1931_v11, %v1933_v53  ;;  %v8331_v24 = vld [vmem:[#allocation2 + $0xb0] sm:$0xff]  ;;  %v3441_v19 = vsel %vm3253_vm5, %v3431_v45, %v3440_v32  ;;  %v8247_v45 = vld [vmem:[%s11136_s0 + $0xa0] sm:$0xff] }
 0x1ee   :  { %v2763_v35 = vrot.slane %v8331_v24, 1  ;;  %v3443_v23 = vshrl.u32 %v8331_v24, 16 }
 0x1ef   :  { %7819 = vmatmul.msk.bf16.gmra.mxu3 %vm962_vm3, %v2762_v27  ;;  %v9539_v40 = vadd.f32 %v3831_v1, %v3182_v55 }
 0x1f0   :  { %v3833_v30 = vpop.f32.mrf.mxu0  ;;  %v1728_v28 = vpop.f32.mrf.mxu1  ;;  %v2764_v11 = vsel %vm1893_vm4, %v2761_v49, %v2763_v35 }
 0x1f1   :  { %v1729_v60 = vadd.f32 %v1728_v28, %v9049_v22  ;;  %v8415_v28 = vld [vmem:[#allocation2 + $0xa8] sm:$0xff] }
 0x1f2   :  { %v2172_v0 = vpop.f32.mrf.mxu2  ;;  %v3003_v7 = vpop.f32.mrf.mxu3 }
 0x1f3   :  { %v2355_v34 = vadd.f32 %v2172_v0, %v1726_v13  ;;  %7567 = vmatmul.msk.bf16.gmra.mxu1 %vm962_vm3, %v8246_v10 }
 0x1f5   :  { %v3183_v27 = vadd.f32 %v3000_v39, %v2355_v34  ;;  %v3446_v39 = vshll.u32 %v8331_v24, 16  ;;  %v1935_v34 = vrot.slane %v8415_v28, 1 }
 0x1f7   :  { %7611 = vmatmul.msk.bf16.gmra.mxu2 %vm962_vm3, %v1934_v50  ;;  %v9545_v1 = vadd.f32 %v3833_v30, %v3183_v27  ;;  %v3445_v50 = vrot.slane %v3443_v23, 1  ;;  %v3448_v27 = vrot.slane %v3446_v39, 2 }
 0x1f8   :  { %v3836_v55 = vpop.f32.mrf.mxu0  ;;  %v1730_v6 = vpop.f32.mrf.mxu1 }
 0x1fa   :  { %v2175_v17 = vpop.f32.mrf.mxu2  ;;  %v3005_v13 = vpop.f32.mrf.mxu3 }
 0x1fb   :  { %7863 = vmatmul.msk.bf16.gmra.mxu0 %vm962_vm3, %v3441_v19  ;;  %v2356_v10 = vadd.f32 %v2175_v17, %v1729_v60  ;;  %v1731_v19 = vadd.f32 %v1730_v6, %v9061_v38  ;;  %v3449_v17 = vor.u32 %v3448_v27, %v3445_v50 }
 0x1fd   :  { %v3184_v62 = vadd.f32 %v3003_v7, %v2356_v10  ;;  %v1936_v7 = vsel %vm1893_vm4, %v1933_v53, %v1935_v34  ;;  %v8332_v10 = vld [vmem:[#allocation2 + $0xb8] sm:$0xff]  ;;  %v3450_v23 = vsel %vm3253_vm5, %v3440_v32, %v3449_v17  ;;  %v8248_v32 = vld [vmem:[%s11136_s0 + $0xa8] sm:$0xff] }
 0x1fe   :  { %v2765_v28 = vrot.slane %v8332_v10, 1  ;;  %v3452_v50 = vshrl.u32 %v8332_v10, 16 }
 0x1ff   :  { %7820 = vmatmul.msk.bf16.gmra.mxu3 %vm962_vm3, %v2764_v11  ;;  %v9555_v30 = vadd.f32 %v3836_v55, %v3184_v62 }
 0x200   :  { %v3838_v0 = vpop.f32.mrf.mxu0  ;;  %v1733_v22 = vpop.f32.mrf.mxu1  ;;  %v2766_v53 = vsel %vm1893_vm4, %v2763_v35, %v2765_v28 }
 0x201   :  { %v1734_v38 = vadd.f32 %v1733_v22, %v9072_v56  ;;  %v8416_v22 = vld [vmem:[#allocation2 + $0xb0] sm:$0xff] }
 0x202   :  { %v2177_v49 = vpop.f32.mrf.mxu2  ;;  %v3008_v60 = vpop.f32.mrf.mxu3 }
 0x203   :  { %v2357_v24 = vadd.f32 %v2177_v49, %v1731_v19  ;;  %7568 = vmatmul.msk.bf16.gmra.mxu1 %vm962_vm3, %v8247_v45 }
 0x205   :  { %v3185_v11 = vadd.f32 %v3005_v13, %v2357_v24  ;;  %v3455_v13 = vshll.u32 %v8332_v10, 16  ;;  %v1937_v24 = vrot.slane %v8416_v22, 1 }
 0x207   :  { %7612 = vmatmul.msk.bf16.gmra.mxu2 %vm962_vm3, %v1936_v7  ;;  %v9561_v55 = vadd.f32 %v3838_v0, %v3185_v11  ;;  %v3454_v7 = vrot.slane %v3452_v50, 1  ;;  %v3457_v11 = vrot.slane %v3455_v13, 2 }
 0x208   :  { %v3841_v62 = vpop.f32.mrf.mxu0  ;;  %v1735_v39 = vpop.f32.mrf.mxu1 }
 0x20a   :  { %v2180_v6 = vpop.f32.mrf.mxu2  ;;  %v3010_v19 = vpop.f32.mrf.mxu3 }
 0x20b   :  { %7864 = vmatmul.msk.bf16.gmra.mxu0 %vm962_vm3, %v3450_v23  ;;  %v2358_v45 = vadd.f32 %v2180_v6, %v1734_v38  ;;  %v1736_v23 = vadd.f32 %v1735_v39, %v9088_v8  ;;  %v3458_v6 = vor.u32 %v3457_v11, %v3454_v7 }
 0x20d   :  { %v3186_v27 = vadd.f32 %v3008_v60, %v2358_v45  ;;  %v1938_v60 = vsel %vm1893_vm4, %v1935_v34, %v1937_v24  ;;  %v8333_v45 = vld [vmem:[#allocation2 + $0xc0] sm:$0xff]  ;;  %v3459_v50 = vsel %vm3253_vm5, %v3449_v17, %v3458_v6  ;;  %v8249_v17 = vld [vmem:[%s11136_s0 + $0xb0] sm:$0xff] }
 0x20e   :  { %v2767_v22 = vrot.slane %v8333_v45, 1  ;;  %v3461_v7 = vshrl.u32 %v8333_v45, 16 }
 0x20f   :  { %7821 = vmatmul.msk.bf16.gmra.mxu3 %vm962_vm3, %v2766_v53  ;;  %v9571_v0 = vadd.f32 %v3841_v62, %v3186_v27 }
 0x210   :  { %v3843_v49 = vpop.f32.mrf.mxu0  ;;  %v1738_v56 = vpop.f32.mrf.mxu1  ;;  %v2768_v34 = vsel %vm1893_vm4, %v2765_v28, %v2767_v22 }
 0x211   :  { %v1739_v8 = vadd.f32 %v1738_v56, %v9113_v33  ;;  %v8417_v56 = vld [vmem:[#allocation2 + $0xb8] sm:$0xff] }
 0x212   :  { %v2182_v35 = vpop.f32.mrf.mxu2  ;;  %v3013_v38 = vpop.f32.mrf.mxu3 }
 0x213   :  { %v2359_v10 = vadd.f32 %v2182_v35, %v1736_v23  ;;  %7569 = vmatmul.msk.bf16.gmra.mxu1 %vm962_vm3, %v8248_v32 }
 0x215   :  { %v3187_v53 = vadd.f32 %v3010_v19, %v2359_v10  ;;  %v3464_v19 = vshll.u32 %v8333_v45, 16  ;;  %v1939_v10 = vrot.slane %v8417_v56, 1 }
 0x217   :  { %7613 = vmatmul.msk.bf16.gmra.mxu2 %vm962_vm3, %v1938_v60  ;;  %v9577_v62 = vadd.f32 %v3843_v49, %v3187_v53  ;;  %v3463_v60 = vrot.slane %v3461_v7, 1  ;;  %v3466_v53 = vrot.slane %v3464_v19, 2 }
 0x218   :  { %v3846_v27 = vpop.f32.mrf.mxu0  ;;  %v1740_v13 = vpop.f32.mrf.mxu1 }
 0x21a   :  { %v2185_v39 = vpop.f32.mrf.mxu2  ;;  %v3015_v23 = vpop.f32.mrf.mxu3 }
 0x21b   :  { %7865 = vmatmul.msk.bf16.gmra.mxu0 %vm962_vm3, %v3459_v50  ;;  %v2360_v32 = vadd.f32 %v2185_v39, %v1739_v8  ;;  %v1741_v50 = vadd.f32 %v1740_v13, %v9136_v59  ;;  %v3467_v39 = vor.u32 %v3466_v53, %v3463_v60 }
 0x21d   :  { %v3188_v11 = vadd.f32 %v3013_v38, %v2360_v32  ;;  %v1940_v38 = vsel %vm1893_vm4, %v1937_v24, %v1939_v10  ;;  %v8334_v32 = vld [vmem:[#allocation2 + $0xc8] sm:$0xff]  ;;  %v3468_v7 = vsel %vm3253_vm5, %v3458_v6, %v3467_v39  ;;  %v8250_v6 = vld [vmem:[%s11136_s0 + $0xb8] sm:$0xff] }
 0x21e   :  { %v2769_v56 = vrot.slane %v8334_v32, 1  ;;  %v3470_v60 = vshrl.u32 %v8334_v32, 16 }
 0x21f   :  { %7822 = vmatmul.msk.bf16.gmra.mxu3 %vm962_vm3, %v2768_v34  ;;  %v9587_v49 = vadd.f32 %v3846_v27, %v3188_v11 }
 0x220   :  { %v3848_v35 = vpop.f32.mrf.mxu0  ;;  %v1743_v33 = vpop.f32.mrf.mxu1  ;;  %v2770_v24 = vsel %vm1893_vm4, %v2767_v22, %v2769_v56 }
 0x221   :  { %v1744_v59 = vadd.f32 %v1743_v33, %v9151_v18  ;;  %v8418_v33 = vld [vmem:[#allocation2 + $0xc0] sm:$0xff] }
 0x222   :  { %v2187_v28 = vpop.f32.mrf.mxu2  ;;  %v3018_v8 = vpop.f32.mrf.mxu3 }
 0x223   :  { %v2361_v45 = vadd.f32 %v2187_v28, %v1741_v50  ;;  %7570 = vmatmul.msk.bf16.gmra.mxu1 %vm962_vm3, %v8249_v17 }
 0x225   :  { %v3189_v34 = vadd.f32 %v3015_v23, %v2361_v45  ;;  %v3473_v23 = vshll.u32 %v8334_v32, 16  ;;  %v1941_v45 = vrot.slane %v8418_v33, 1 }
 0x227   :  { %7614 = vmatmul.msk.bf16.gmra.mxu2 %vm962_vm3, %v1940_v38  ;;  %v9593_v27 = vadd.f32 %v3848_v35, %v3189_v34  ;;  %v3472_v38 = vrot.slane %v3470_v60, 1  ;;  %v3475_v34 = vrot.slane %v3473_v23, 2 }
 0x228   :  { %v3851_v11 = vpop.f32.mrf.mxu0  ;;  %v1745_v19 = vpop.f32.mrf.mxu1 }
 0x22a   :  { %v2190_v13 = vpop.f32.mrf.mxu2  ;;  %v3020_v50 = vpop.f32.mrf.mxu3 }
 0x22b   :  { %7866 = vmatmul.msk.bf16.gmra.mxu0 %vm962_vm3, %v3468_v7  ;;  %v2362_v17 = vadd.f32 %v2190_v13, %v1744_v59  ;;  %v1746_v7 = vadd.f32 %v1745_v19, %v9163_v46  ;;  %v3476_v13 = vor.u32 %v3475_v34, %v3472_v38 }
 0x22d   :  { %v3190_v53 = vadd.f32 %v3018_v8, %v2362_v17  ;;  %v1942_v8 = vsel %vm1893_vm4, %v1939_v10, %v1941_v45  ;;  %v8335_v17 = vld [vmem:[#allocation2 + $0xd0] sm:$0xff]  ;;  %v3477_v60 = vsel %vm3253_vm5, %v3467_v39, %v3476_v13  ;;  %v8251_v39 = vld [vmem:[%s11136_s0 + $0xc0] sm:$0xff] }
 0x22e   :  { %v2771_v33 = vrot.slane %v8335_v17, 1  ;;  %v3479_v38 = vshrl.u32 %v8335_v17, 16 }
 0x22f   :  { %7823 = vmatmul.msk.bf16.gmra.mxu3 %vm962_vm3, %v2770_v24  ;;  %v9603_v35 = vadd.f32 %v3851_v11, %v3190_v53 }
 0x230   :  { %v3853_v28 = vpop.f32.mrf.mxu0  ;;  %v1748_v18 = vpop.f32.mrf.mxu1  ;;  %v2772_v10 = vsel %vm1893_vm4, %v2769_v56, %v2771_v33 }
 0x231   :  { %v1749_v46 = vadd.f32 %v1748_v18, %v9177_v3  ;;  %v8419_v18 = vld [vmem:[#allocation2 + $0xc8] sm:$0xff] }
 0x232   :  { %v2192_v22 = vpop.f32.mrf.mxu2  ;;  %v3023_v59 = vpop.f32.mrf.mxu3 }
 0x233   :  { %v2363_v32 = vadd.f32 %v2192_v22, %v1746_v7  ;;  %7571 = vmatmul.msk.bf16.gmra.mxu1 %vm962_vm3, %v8250_v6 }
 0x235   :  { %v3191_v24 = vadd.f32 %v3020_v50, %v2363_v32  ;;  %v3482_v50 = vshll.u32 %v8335_v17, 16  ;;  %v1943_v32 = vrot.slane %v8419_v18, 1 }
 0x237   :  { %7615 = vmatmul.msk.bf16.gmra.mxu2 %vm962_vm3, %v1942_v8  ;;  %v9609_v11 = vadd.f32 %v3853_v28, %v3191_v24  ;;  %v3481_v8 = vrot.slane %v3479_v38, 1  ;;  %v3484_v24 = vrot.slane %v3482_v50, 2 }
 0x238   :  { %v3856_v53 = vpop.f32.mrf.mxu0  ;;  %v1750_v23 = vpop.f32.mrf.mxu1 }
 0x23a   :  { %v2195_v19 = vpop.f32.mrf.mxu2  ;;  %v3025_v7 = vpop.f32.mrf.mxu3 }
 0x23b   :  { %7867 = vmatmul.msk.bf16.gmra.mxu0 %vm962_vm3, %v3477_v60  ;;  %v2364_v6 = vadd.f32 %v2195_v19, %v1749_v46  ;;  %v1751_v60 = vadd.f32 %v1750_v23, %v9190_v26  ;;  %v3485_v19 = vor.u32 %v3484_v24, %v3481_v8 }
 0x23d   :  { %v3192_v34 = vadd.f32 %v3023_v59, %v2364_v6  ;;  %v1944_v59 = vsel %vm1893_vm4, %v1941_v45, %v1943_v32  ;;  %v8336_v6 = vld [vmem:[#allocation2 + $0xd8] sm:$0xff]  ;;  %v3486_v38 = vsel %vm3253_vm5, %v3476_v13, %v3485_v19  ;;  %v8252_v13 = vld [vmem:[%s11136_s0 + $0xc8] sm:$0xff] }
 0x23e   :  { %v2773_v18 = vrot.slane %v8336_v6, 1  ;;  %v3488_v8 = vshrl.u32 %v8336_v6, 16 }
 0x23f   :  { %7824 = vmatmul.msk.bf16.gmra.mxu3 %vm962_vm3, %v2772_v10  ;;  %v9619_v28 = vadd.f32 %v3856_v53, %v3192_v34 }
 0x240   :  { %v3858_v22 = vpop.f32.mrf.mxu0  ;;  %v1753_v3 = vpop.f32.mrf.mxu1  ;;  %v2774_v45 = vsel %vm1893_vm4, %v2771_v33, %v2773_v18 }
 0x241   :  { %v1754_v26 = vadd.f32 %v1753_v3, %v9204_v57  ;;  %v8420_v3 = vld [vmem:[#allocation2 + $0xd0] sm:$0xff] }
 0x242   :  { %v2197_v56 = vpop.f32.mrf.mxu2  ;;  %v3028_v46 = vpop.f32.mrf.mxu3 }
 0x243   :  { %v2365_v17 = vadd.f32 %v2197_v56, %v1751_v60  ;;  %7572 = vmatmul.msk.bf16.gmra.mxu1 %vm962_vm3, %v8251_v39 }
 0x245   :  { %v3193_v10 = vadd.f32 %v3025_v7, %v2365_v17  ;;  %v3491_v7 = vshll.u32 %v8336_v6, 16  ;;  %v1945_v17 = vrot.slane %v8420_v3, 1 }
 0x247   :  { %7616 = vmatmul.msk.bf16.gmra.mxu2 %vm962_vm3, %v1944_v59  ;;  %v9625_v53 = vadd.f32 %v3858_v22, %v3193_v10  ;;  %v3490_v59 = vrot.slane %v3488_v8, 1  ;;  %v3493_v10 = vrot.slane %v3491_v7, 2 }
 0x248   :  { %v3861_v34 = vpop.f32.mrf.mxu0  ;;  %v1755_v50 = vpop.f32.mrf.mxu1 }
 0x24a   :  { %v2200_v23 = vpop.f32.mrf.mxu2  ;;  %v3030_v60 = vpop.f32.mrf.mxu3 }
 0x24b   :  { %7868 = vmatmul.msk.bf16.gmra.mxu0 %vm962_vm3, %v3486_v38  ;;  %v2366_v39 = vadd.f32 %v2200_v23, %v1754_v26  ;;  %v1756_v38 = vadd.f32 %v1755_v50, %v9217_v36  ;;  %v3494_v23 = vor.u32 %v3493_v10, %v3490_v59 }
 0x24d   :  { %v3194_v24 = vadd.f32 %v3028_v46, %v2366_v39  ;;  %v1946_v46 = vsel %vm1893_vm4, %v1943_v32, %v1945_v17  ;;  %v8337_v39 = vld [vmem:[#allocation2 + $0xe0] sm:$0xff]  ;;  %v3495_v8 = vsel %vm3253_vm5, %v3485_v19, %v3494_v23  ;;  %v8253_v19 = vld [vmem:[%s11136_s0 + $0xd0] sm:$0xff] }
 0x24e   :  { %v2775_v3 = vrot.slane %v8337_v39, 1  ;;  %v3497_v59 = vshrl.u32 %v8337_v39, 16 }
 0x24f   :  { %7825 = vmatmul.msk.bf16.gmra.mxu3 %vm962_vm3, %v2774_v45  ;;  %v9635_v22 = vadd.f32 %v3861_v34, %v3194_v24 }
 0x250   :  { %v3863_v56 = vpop.f32.mrf.mxu0  ;;  %v1758_v57 = vpop.f32.mrf.mxu1  ;;  %v2776_v32 = vsel %vm1893_vm4, %v2773_v18, %v2775_v3 }
 0x251   :  { %11193 = vst [vmem:[#allocation50_spill] sm:$0xff] %v9635_v22  ;;  %v1759_v36 = vadd.f32 %v1758_v57, %v9231_v43  ;;  %v8421_v57 = vld [vmem:[#allocation2 + $0xd8] sm:$0xff] }
 0x252   :  { %v2202_v33 = vpop.f32.mrf.mxu2  ;;  %v3033_v26 = vpop.f32.mrf.mxu3 }
 0x253   :  { %v2367_v6 = vadd.f32 %v2202_v33, %v1756_v38  ;;  %7573 = vmatmul.msk.bf16.gmra.mxu1 %vm962_vm3, %v8252_v13 }
 0x255   :  { %v3195_v45 = vadd.f32 %v3030_v60, %v2367_v6  ;;  %v3500_v60 = vshll.u32 %v8337_v39, 16  ;;  %v1947_v6 = vrot.slane %v8421_v57, 1 }
 0x257   :  { %7617 = vmatmul.msk.bf16.gmra.mxu2 %vm962_vm3, %v1946_v46  ;;  %v9641_v34 = vadd.f32 %v3863_v56, %v3195_v45  ;;  %v3499_v46 = vrot.slane %v3497_v59, 1  ;;  %v3502_v45 = vrot.slane %v3500_v60, 2 }
 0x258   :  { %v3866_v24 = vpop.f32.mrf.mxu0  ;;  %v1760_v7 = vpop.f32.mrf.mxu1 }
 0x259   :  { %11194 = vst [vmem:[#allocation51_spill] sm:$0xff] %v9641_v34 }
 0x25a   :  { %v2205_v50 = vpop.f32.mrf.mxu2  ;;  %v3035_v38 = vpop.f32.mrf.mxu3 }
 0x25b   :  { %7869 = vmatmul.msk.bf16.gmra.mxu0 %vm962_vm3, %v3495_v8  ;;  %v2368_v13 = vadd.f32 %v2205_v50, %v1759_v36  ;;  %v1761_v8 = vadd.f32 %v1760_v7, %v9244_v44  ;;  %v3503_v50 = vor.u32 %v3502_v45, %v3499_v46 }
 0x25d   :  { %v3196_v10 = vadd.f32 %v3033_v26, %v2368_v13  ;;  %v1948_v26 = vsel %vm1893_vm4, %v1945_v17, %v1947_v6  ;;  %v8338_v13 = vld [vmem:[#allocation2 + $0xe8] sm:$0xff]  ;;  %v3504_v59 = vsel %vm3253_vm5, %v3494_v23, %v3503_v50  ;;  %v8254_v23 = vld [vmem:[%s11136_s0 + $0xd8] sm:$0xff] }
 0x25e   :  { %v2777_v57 = vrot.slane %v8338_v13, 1  ;;  %v3506_v46 = vshrl.u32 %v8338_v13, 16 }
 0x25f   :  { %7826 = vmatmul.msk.bf16.gmra.mxu3 %vm962_vm3, %v2776_v32  ;;  %v9651_v56 = vadd.f32 %v3866_v24, %v3196_v10 }
 0x260   :  { %v3868_v33 = vpop.f32.mrf.mxu0  ;;  %v1763_v43 = vpop.f32.mrf.mxu1  ;;  %v2778_v17 = vsel %vm1893_vm4, %v2775_v3, %v2777_v57 }
 0x261   :  { %11195 = vst [vmem:[#allocation52_spill] sm:$0xff] %v9651_v56  ;;  %v1764_v44 = vadd.f32 %v1763_v43, %v9258_v21  ;;  %v8422_v43 = vld [vmem:[#allocation2 + $0xe0] sm:$0xff] }
 0x262   :  { %v2207_v18 = vpop.f32.mrf.mxu2  ;;  %v3038_v36 = vpop.f32.mrf.mxu3 }
 0x263   :  { %v2369_v39 = vadd.f32 %v2207_v18, %v1761_v8  ;;  %7574 = vmatmul.msk.bf16.gmra.mxu1 %vm962_vm3, %v8253_v19 }
 0x265   :  { %v3197_v32 = vadd.f32 %v3035_v38, %v2369_v39  ;;  %v3509_v38 = vshll.u32 %v8338_v13, 16  ;;  %v1949_v39 = vrot.slane %v8422_v43, 1 }
 0x267   :  { %7618 = vmatmul.msk.bf16.gmra.mxu2 %vm962_vm3, %v1948_v26  ;;  %v9657_v24 = vadd.f32 %v3868_v33, %v3197_v32  ;;  %v3508_v26 = vrot.slane %v3506_v46, 1  ;;  %v3511_v32 = vrot.slane %v3509_v38, 2 }
 0x268   :  { %v3871_v10 = vpop.f32.mrf.mxu0  ;;  %v1765_v60 = vpop.f32.mrf.mxu1 }
 0x269   :  { %11196 = vst [vmem:[#allocation53_spill] sm:$0xff] %v9657_v24 }
 0x26a   :  { %v2210_v7 = vpop.f32.mrf.mxu2  ;;  %v3040_v8 = vpop.f32.mrf.mxu3 }
 0x26b   :  { %7870 = vmatmul.msk.bf16.gmra.mxu0 %vm962_vm3, %v3504_v59  ;;  %v2370_v19 = vadd.f32 %v2210_v7, %v1764_v44  ;;  %v1766_v59 = vadd.f32 %v1765_v60, %v9271_v4  ;;  %v3512_v7 = vor.u32 %v3511_v32, %v3508_v26 }
 0x26d   :  { %v3198_v45 = vadd.f32 %v3038_v36, %v2370_v19  ;;  %v1950_v36 = vsel %vm1893_vm4, %v1947_v6, %v1949_v39  ;;  %v8339_v19 = vld [vmem:[#allocation2 + $0xf0] sm:$0xff]  ;;  %v3513_v46 = vsel %vm3253_vm5, %v3503_v50, %v3512_v7  ;;  %v8255_v50 = vld [vmem:[%s11136_s0 + $0xe0] sm:$0xff] }
 0x26e   :  { %v2779_v43 = vrot.slane %v8339_v19, 1  ;;  %v3515_v26 = vshrl.u32 %v8339_v19, 16 }
 0x26f   :  { %7827 = vmatmul.msk.bf16.gmra.mxu3 %vm962_vm3, %v2778_v17  ;;  %v9667_v33 = vadd.f32 %v3871_v10, %v3198_v45 }
 0x270   :  { %v3873_v18 = vpop.f32.mrf.mxu0  ;;  %v1768_v21 = vpop.f32.mrf.mxu1  ;;  %v2780_v6 = vsel %vm1893_vm4, %v2777_v57, %v2779_v43 }
 0x271   :  { %11197 = vst [vmem:[#allocation54_spill] sm:$0xff] %v9667_v33  ;;  %v1769_v4 = vadd.f32 %v1768_v21, %v9285_v58  ;;  %v8423_v21 = vld [vmem:[#allocation2 + $0xe8] sm:$0xff] }
 0x272   :  { %v2212_v3 = vpop.f32.mrf.mxu2  ;;  %v3043_v44 = vpop.f32.mrf.mxu3 }
 0x273   :  { %v2371_v13 = vadd.f32 %v2212_v3, %v1766_v59  ;;  %7575 = vmatmul.msk.bf16.gmra.mxu1 %vm962_vm3, %v8254_v23 }
 0x275   :  { %v3199_v17 = vadd.f32 %v3040_v8, %v2371_v13  ;;  %v3518_v8 = vshll.u32 %v8339_v19, 16  ;;  %v1951_v13 = vrot.slane %v8423_v21, 1 }
 0x277   :  { %7619 = vmatmul.msk.bf16.gmra.mxu2 %vm962_vm3, %v1950_v36  ;;  %v9673_v10 = vadd.f32 %v3873_v18, %v3199_v17  ;;  %v3517_v36 = vrot.slane %v3515_v26, 1  ;;  %v3520_v17 = vrot.slane %v3518_v8, 2 }
 0x278   :  { %v3876_v45 = vpop.f32.mrf.mxu0  ;;  %v1770_v38 = vpop.f32.mrf.mxu1 }
 0x279   :  { %11198 = vst [vmem:[#allocation55_spill] sm:$0xff] %v9673_v10 }
 0x27a   :  { %v2215_v60 = vpop.f32.mrf.mxu2  ;;  %v3045_v59 = vpop.f32.mrf.mxu3 }
 0x27b   :  { %7871 = vmatmul.msk.bf16.gmra.mxu0 %vm962_vm3, %v3513_v46  ;;  %v2372_v23 = vadd.f32 %v2215_v60, %v1769_v4  ;;  %v1771_v46 = vadd.f32 %v1770_v38, %v9298_v9  ;;  %v3521_v60 = vor.u32 %v3520_v17, %v3517_v36  ;;  %v11201_v9 = vld [vmem:[#allocation38_spill] sm:$0xff] }
 0x27d   :  { %v3200_v32 = vadd.f32 %v3043_v44, %v2372_v23  ;;  %v1952_v44 = vsel %vm1893_vm4, %v1949_v39, %v1951_v13  ;;  %v8340_v23 = vld [vmem:[#allocation2 + $0xf8] sm:$0xff]  ;;  %v3522_v26 = vsel %vm3253_vm5, %v3512_v7, %v3521_v60  ;;  %v8256_v7 = vld [vmem:[%s11136_s0 + $0xe8] sm:$0xff] }
 0x27e   :  { %v2781_v21 = vrot.slane %v8340_v23, 1  ;;  %v3524_v36 = vshrl.u32 %v8340_v23, 16 }
 0x27f   :  { %7828 = vmatmul.msk.bf16.gmra.mxu3 %vm962_vm3, %v2780_v6  ;;  %v9683_v18 = vadd.f32 %v3876_v45, %v3200_v32 }
 0x280   :  { %v3878_v3 = vpop.f32.mrf.mxu0  ;;  %v1773_v58 = vpop.f32.mrf.mxu1  ;;  %v2782_v39 = vsel %vm1893_vm4, %v2779_v43, %v2781_v21 }
 0x281   :  { %11199 = vst [vmem:[#allocation56_spill] sm:$0xff] %v9683_v18  ;;  %v1774_v38 = vadd.f32 %v1773_v58, %v11201_v9 }
 0x282   :  { %v2217_v57 = vpop.f32.mrf.mxu2  ;;  %v3048_v4 = vpop.f32.mrf.mxu3 }
 0x283   :  { %v2373_v19 = vadd.f32 %v2217_v57, %v1771_v46  ;;  %7576 = vmatmul.msk.bf16.gmra.mxu1 %vm962_vm3, %v8255_v50 }
 0x285   :  { %v3201_v6 = vadd.f32 %v3045_v59, %v2373_v19  ;;  %v3527_v59 = vshll.u32 %v8340_v23, 16  ;;  %v8424_v19 = vld [vmem:[#allocation2 + $0xf0] sm:$0xff] }
 0x287   :  { %7620 = vmatmul.msk.bf16.gmra.mxu2 %vm962_vm3, %v1952_v44  ;;  %v9689_v45 = vadd.f32 %v3878_v3, %v3201_v6  ;;  %v1953_v44 = vrot.slane %v8424_v19, 1  ;;  %v3526_v6 = vrot.slane %v3524_v36, 1 }
 0x288   :  { %v3881_v32 = vpop.f32.mrf.mxu0  ;;  %v1775_v8 = vpop.f32.mrf.mxu1 }
 0x289   :  { %11200 = vst [vmem:[#allocation57_spill] sm:$0xff] %v9689_v45 }
 0x28a   :  { %v2220_v18 = vpop.f32.mrf.mxu2  ;;  %v3050_v46 = vpop.f32.mrf.mxu3 }
 0x28b   :  { %7872 = vmatmul.msk.bf16.gmra.mxu0 %vm962_vm3, %v3522_v26  ;;  %v2374_v50 = vadd.f32 %v2220_v18, %v1774_v38  ;;  %v3529_v26 = vrot.slane %v3527_v59, 2  ;;  %v11203_v18 = vld [vmem:[#allocation41_spill] sm:$0xff] }
 0x28c   :  { %v1776_v9 = vadd.f32 %v1775_v8, %v11203_v18  ;;  %v11205_v8 = vld [vmem:[#allocation44_spill] sm:$0xff] }
 0x28d   :  { %v3202_v17 = vadd.f32 %v3048_v4, %v2374_v50  ;;  %v1954_v4 = vsel %vm1893_vm4, %v1951_v13, %v1953_v44  ;;  %v3530_v50 = vor.u32 %v3529_v26, %v3526_v6 }
 0x28f   :  { %7829 = vmatmul.msk.bf16.gmra.mxu3 %vm962_vm3, %v2782_v39  ;;  %v9699_v3 = vadd.f32 %v3881_v32, %v3202_v17  ;;  %v8341_v39 = vld [vmem:[#allocation2 + $0x100] sm:$0xff]  ;;  %v3531_v36 = vsel %vm3253_vm5, %v3521_v60, %v3530_v50  ;;  %v8257_v60 = vld [vmem:[%s11136_s0 + $0xf0] sm:$0xff] }
 0x290   :  { %v3883_v57 = vpop.f32.mrf.mxu0  ;;  %v1778_v58 = vpop.f32.mrf.mxu1  ;;  %v2783_v19 = vrot.slane %v8341_v39, 1  ;;  %v3533_v6 = vshrl.u32 %v8341_v39, 16 }
 0x291   :  { %11202 = vst [vmem:[#allocation38_spill] sm:$0xff] %v9699_v3  ;;  %v1779_v18 = vadd.f32 %v1778_v58, %v11205_v8 }
 0x292   :  { %v2222_v43 = vpop.f32.mrf.mxu2  ;;  %v3053_v38 = vpop.f32.mrf.mxu3  ;;  %v2784_v13 = vsel %vm1893_vm4, %v2781_v21, %v2783_v19 }
 0x293   :  { %v2375_v23 = vadd.f32 %v2222_v43, %v1776_v9  ;;  %7577 = vmatmul.msk.bf16.gmra.mxu1 %vm962_vm3, %v8256_v7  ;;  %v8425_v43 = vld [vmem:[#allocation2 + $0xf8] sm:$0xff] }
 0x295   :  { %v3203_v45 = vadd.f32 %v3050_v46, %v2375_v23  ;;  %v3536_v46 = vshll.u32 %v8341_v39, 16  ;;  %v1955_v23 = vrot.slane %v8425_v43, 1 }
 0x297   :  { %7621 = vmatmul.msk.bf16.gmra.mxu2 %vm962_vm3, %v1954_v4  ;;  %v9705_v32 = vadd.f32 %v3883_v57, %v3203_v45  ;;  %v3535_v4 = vrot.slane %v3533_v6, 1 }
 0x298   :  { %v3886_v17 = vpop.f32.mrf.mxu0  ;;  %v1780_v59 = vpop.f32.mrf.mxu1 }
 0x299   :  { %11204 = vst [vmem:[#allocation41_spill] sm:$0xff] %v9705_v32 }
 0x29a   :  { %v2225_v3 = vpop.f32.mrf.mxu2  ;;  %v3055_v9 = vpop.f32.mrf.mxu3 }
 0x29b   :  { %7873 = vmatmul.msk.bf16.gmra.mxu0 %vm962_vm3, %v3531_v36  ;;  %v2376_v7 = vadd.f32 %v2225_v3, %v1779_v18  ;;  %v3538_v36 = vrot.slane %v3536_v46, 2  ;;  %v11207_v3 = vld [vmem:[#allocation47_spill] sm:$0xff] }
 0x29c   :  { %v1781_v8 = vadd.f32 %v1780_v59, %v11207_v3  ;;  %v11209_v59 = vld [vmem:[#allocation4_spill] sm:$0xff] }
 0x29d   :  { %v3204_v26 = vadd.f32 %v3053_v38, %v2376_v7  ;;  %v1956_v38 = vsel %vm1893_vm4, %v1953_v44, %v1955_v23  ;;  %v3539_v7 = vor.u32 %v3538_v36, %v3535_v4 }
 0x29f   :  { %7830 = vmatmul.msk.bf16.gmra.mxu3 %vm962_vm3, %v2784_v13  ;;  %v9715_v45 = vadd.f32 %v3886_v17, %v3204_v26  ;;  %v8342_v13 = vld [vmem:[#allocation2 + $0x108] sm:$0xff]  ;;  %v3540_v6 = vsel %vm3253_vm5, %v3530_v50, %v3539_v7  ;;  %v8258_v50 = vld [vmem:[%s11136_s0 + $0xf8] sm:$0xff] }
 0x2a0   :  { %v3888_v57 = vpop.f32.mrf.mxu0  ;;  %v1783_v58 = vpop.f32.mrf.mxu1  ;;  %v2785_v43 = vrot.slane %v8342_v13, 1  ;;  %v3542_v4 = vshrl.u32 %v8342_v13, 16 }
 0x2a1   :  { %11206 = vst [vmem:[#allocation44_spill] sm:$0xff] %v9715_v45  ;;  %v1784_v3 = vadd.f32 %v1783_v58, %v11209_v59 }
 0x2a2   :  { %v2227_v21 = vpop.f32.mrf.mxu2  ;;  %v3058_v18 = vpop.f32.mrf.mxu3  ;;  %v2786_v44 = vsel %vm1893_vm4, %v2783_v19, %v2785_v43 }
 0x2a3   :  { %v2377_v39 = vadd.f32 %v2227_v21, %v1781_v8  ;;  %7578 = vmatmul.msk.bf16.gmra.mxu1 %vm962_vm3, %v8257_v60  ;;  %v8426_v21 = vld [vmem:[#allocation2 + $0x100] sm:$0xff] }
 0x2a5   :  { %v3205_v32 = vadd.f32 %v3055_v9, %v2377_v39  ;;  %v3545_v9 = vshll.u32 %v8342_v13, 16  ;;  %v1957_v39 = vrot.slane %v8426_v21, 1 }
 0x2a7   :  { %7622 = vmatmul.msk.bf16.gmra.mxu2 %vm962_vm3, %v1956_v38  ;;  %v9721_v17 = vadd.f32 %v3888_v57, %v3205_v32  ;;  %v3544_v38 = vrot.slane %v3542_v4, 1 }
 0x2a8   :  { %v3891_v26 = vpop.f32.mrf.mxu0  ;;  %v1785_v46 = vpop.f32.mrf.mxu1 }
 0x2a9   :  { %11208 = vst [vmem:[#allocation47_spill] sm:$0xff] %v9721_v17 }
 0x2aa   :  { %v2230_v45 = vpop.f32.mrf.mxu2  ;;  %v3060_v8 = vpop.f32.mrf.mxu3 }
 0x2ab   :  { %7874 = vmatmul.msk.bf16.gmra.mxu0 %vm962_vm3, %v3540_v6  ;;  %v2378_v60 = vadd.f32 %v2230_v45, %v1784_v3  ;;  %v3547_v6 = vrot.slane %v3545_v9, 2  ;;  %v11211_v45 = vld [vmem:[#allocation5_spill] sm:$0xff] }
 0x2ac   :  { %v1786_v59 = vadd.f32 %v1785_v46, %v11211_v45  ;;  %v11213_v46 = vld [vmem:[#allocation7_spill] sm:$0xff] }
 0x2ad   :  { %v3206_v36 = vadd.f32 %v3058_v18, %v2378_v60  ;;  %v1958_v18 = vsel %vm1893_vm4, %v1955_v23, %v1957_v39  ;;  %v3548_v60 = vor.u32 %v3547_v6, %v3544_v38 }
 0x2af   :  { %7831 = vmatmul.msk.bf16.gmra.mxu3 %vm962_vm3, %v2786_v44  ;;  %v9731_v32 = vadd.f32 %v3891_v26, %v3206_v36  ;;  %v8343_v44 = vld [vmem:[#allocation2 + $0x110] sm:$0xff]  ;;  %v3549_v4 = vsel %vm3253_vm5, %v3539_v7, %v3548_v60  ;;  %v8259_v7 = vld [vmem:[%s11136_s0 + $0x100] sm:$0xff] }
 0x2b0   :  { %v3893_v57 = vpop.f32.mrf.mxu0  ;;  %v1788_v58 = vpop.f32.mrf.mxu1  ;;  %v2787_v21 = vrot.slane %v8343_v44, 1  ;;  %v3551_v38 = vshrl.u32 %v8343_v44, 16 }
 0x2b1   :  { %11210 = vst [vmem:[#allocation4_spill] sm:$0xff] %v9731_v32  ;;  %v1789_v45 = vadd.f32 %v1788_v58, %v11213_v46 }
 0x2b2   :  { %v2232_v19 = vpop.f32.mrf.mxu2  ;;  %v3063_v3 = vpop.f32.mrf.mxu3  ;;  %v2788_v23 = vsel %vm1893_vm4, %v2785_v43, %v2787_v21 }
 0x2b3   :  { %v2379_v13 = vadd.f32 %v2232_v19, %v1786_v59  ;;  %7579 = vmatmul.msk.bf16.gmra.mxu1 %vm962_vm3, %v8258_v50  ;;  %v8427_v19 = vld [vmem:[#allocation2 + $0x108] sm:$0xff] }
 0x2b5   :  { %v3207_v17 = vadd.f32 %v3060_v8, %v2379_v13  ;;  %v3554_v8 = vshll.u32 %v8343_v44, 16  ;;  %v1959_v13 = vrot.slane %v8427_v19, 1 }
 0x2b7   :  { %7623 = vmatmul.msk.bf16.gmra.mxu2 %vm962_vm3, %v1958_v18  ;;  %v9737_v26 = vadd.f32 %v3893_v57, %v3207_v17  ;;  %v3553_v18 = vrot.slane %v3551_v38, 1 }
 0x2b8   :  { %v3896_v36 = vpop.f32.mrf.mxu0  ;;  %v1790_v9 = vpop.f32.mrf.mxu1 }
 0x2b9   :  { %11212 = vst [vmem:[#allocation5_spill] sm:$0xff] %v9737_v26 }
 0x2ba   :  { %v2235_v32 = vpop.f32.mrf.mxu2  ;;  %v3065_v59 = vpop.f32.mrf.mxu3 }
 0x2bb   :  { %7875 = vmatmul.msk.bf16.gmra.mxu0 %vm962_vm3, %v3549_v4  ;;  %v2380_v50 = vadd.f32 %v2235_v32, %v1789_v45  ;;  %v3556_v4 = vrot.slane %v3554_v8, 2  ;;  %v11215_v32 = vld [vmem:[#allocation10_spill] sm:$0xff] }
 0x2bc   :  { %v1791_v46 = vadd.f32 %v1790_v9, %v11215_v32  ;;  %v11217_v9 = vld [vmem:[#allocation12_spill] sm:$0xff] }
 0x2bd   :  { %v3208_v6 = vadd.f32 %v3063_v3, %v2380_v50  ;;  %v1960_v3 = vsel %vm1893_vm4, %v1957_v39, %v1959_v13  ;;  %v3557_v50 = vor.u32 %v3556_v4, %v3553_v18 }
 0x2bf   :  { %7832 = vmatmul.msk.bf16.gmra.mxu3 %vm962_vm3, %v2788_v23  ;;  %v9747_v17 = vadd.f32 %v3896_v36, %v3208_v6  ;;  %v8344_v23 = vld [vmem:[#allocation2 + $0x118] sm:$0xff]  ;;  %v3558_v38 = vsel %vm3253_vm5, %v3548_v60, %v3557_v50  ;;  %v8260_v60 = vld [vmem:[%s11136_s0 + $0x108] sm:$0xff] }
 0x2c0   :  { %v3898_v57 = vpop.f32.mrf.mxu0  ;;  %v1793_v58 = vpop.f32.mrf.mxu1  ;;  %v2789_v19 = vrot.slane %v8344_v23, 1  ;;  %v3560_v18 = vshrl.u32 %v8344_v23, 16 }
 0x2c1   :  { %11214 = vst [vmem:[#allocation7_spill] sm:$0xff] %v9747_v17  ;;  %v1794_v32 = vadd.f32 %v1793_v58, %v11217_v9 }
 0x2c2   :  { %v2237_v43 = vpop.f32.mrf.mxu2  ;;  %v3068_v45 = vpop.f32.mrf.mxu3  ;;  %v2790_v39 = vsel %vm1893_vm4, %v2787_v21, %v2789_v19 }
 0x2c3   :  { %v2381_v44 = vadd.f32 %v2237_v43, %v1791_v46  ;;  %7580 = vmatmul.msk.bf16.gmra.mxu1 %vm962_vm3, %v8259_v7  ;;  %v8428_v43 = vld [vmem:[#allocation2 + $0x110] sm:$0xff] }
 0x2c5   :  { %v3209_v26 = vadd.f32 %v3065_v59, %v2381_v44  ;;  %v3563_v59 = vshll.u32 %v8344_v23, 16  ;;  %v1961_v44 = vrot.slane %v8428_v43, 1 }
 0x2c7   :  { %7624 = vmatmul.msk.bf16.gmra.mxu2 %vm962_vm3, %v1960_v3  ;;  %v9753_v36 = vadd.f32 %v3898_v57, %v3209_v26  ;;  %v3562_v3 = vrot.slane %v3560_v18, 1 }
 0x2c8   :  { %v3901_v6 = vpop.f32.mrf.mxu0  ;;  %v1795_v8 = vpop.f32.mrf.mxu1 }
 0x2c9   :  { %11216 = vst [vmem:[#allocation10_spill] sm:$0xff] %v9753_v36 }
 0x2ca   :  { %v2240_v17 = vpop.f32.mrf.mxu2  ;;  %v3070_v46 = vpop.f32.mrf.mxu3 }
 0x2cb   :  { %7876 = vmatmul.msk.bf16.gmra.mxu0 %vm962_vm3, %v3558_v38  ;;  %v2382_v7 = vadd.f32 %v2240_v17, %v1794_v32  ;;  %v3565_v38 = vrot.slane %v3563_v59, 2  ;;  %v11219_v17 = vld [vmem:[#allocation14_spill] sm:$0xff] }
 0x2cc   :  { %v1796_v9 = vadd.f32 %v1795_v8, %v11219_v17  ;;  %v11221_v8 = vld [vmem:[#allocation16_spill] sm:$0xff] }
 0x2cd   :  { %v3210_v4 = vadd.f32 %v3068_v45, %v2382_v7  ;;  %v1962_v45 = vsel %vm1893_vm4, %v1959_v13, %v1961_v44  ;;  %v3566_v7 = vor.u32 %v3565_v38, %v3562_v3 }
 0x2cf   :  { %7833 = vmatmul.msk.bf16.gmra.mxu3 %vm962_vm3, %v2790_v39  ;;  %v9763_v26 = vadd.f32 %v3901_v6, %v3210_v4  ;;  %v8345_v39 = vld [vmem:[#allocation2 + $0x120] sm:$0xff]  ;;  %v3567_v18 = vsel %vm3253_vm5, %v3557_v50, %v3566_v7  ;;  %v8261_v50 = vld [vmem:[%s11136_s0 + $0x110] sm:$0xff] }
 0x2d0   :  { %v3903_v57 = vpop.f32.mrf.mxu0  ;;  %v1798_v58 = vpop.f32.mrf.mxu1  ;;  %v2791_v43 = vrot.slane %v8345_v39, 1  ;;  %v3569_v3 = vshrl.u32 %v8345_v39, 16 }
 0x2d1   :  { %11218 = vst [vmem:[#allocation12_spill] sm:$0xff] %v9763_v26  ;;  %v1799_v17 = vadd.f32 %v1798_v58, %v11221_v8 }
 0x2d2   :  { %v2242_v21 = vpop.f32.mrf.mxu2  ;;  %v3073_v32 = vpop.f32.mrf.mxu3  ;;  %v2792_v13 = vsel %vm1893_vm4, %v2789_v19, %v2791_v43 }
 0x2d3   :  { %v2383_v23 = vadd.f32 %v2242_v21, %v1796_v9  ;;  %7581 = vmatmul.msk.bf16.gmra.mxu1 %vm962_vm3, %v8260_v60  ;;  %v8429_v21 = vld [vmem:[#allocation2 + $0x118] sm:$0xff] }
 0x2d5   :  { %v3211_v36 = vadd.f32 %v3070_v46, %v2383_v23  ;;  %v3572_v46 = vshll.u32 %v8345_v39, 16  ;;  %v1963_v23 = vrot.slane %v8429_v21, 1 }
 0x2d7   :  { %7625 = vmatmul.msk.bf16.gmra.mxu2 %vm962_vm3, %v1962_v45  ;;  %v9769_v6 = vadd.f32 %v3903_v57, %v3211_v36  ;;  %v3571_v45 = vrot.slane %v3569_v3, 1 }
 0x2d8   :  { %v3906_v4 = vpop.f32.mrf.mxu0  ;;  %v1800_v59 = vpop.f32.mrf.mxu1 }
 0x2d9   :  { %11220 = vst [vmem:[#allocation14_spill] sm:$0xff] %v9769_v6 }
 0x2da   :  { %v2245_v26 = vpop.f32.mrf.mxu2  ;;  %v3075_v9 = vpop.f32.mrf.mxu3 }
 0x2db   :  { %7877 = vmatmul.msk.bf16.gmra.mxu0 %vm962_vm3, %v3567_v18  ;;  %v2384_v60 = vadd.f32 %v2245_v26, %v1799_v17  ;;  %v3574_v18 = vrot.slane %v3572_v46, 2  ;;  %v11223_v26 = vld [vmem:[#allocation18_spill] sm:$0xff] }
 0x2dc   :  { %v1801_v8 = vadd.f32 %v1800_v59, %v11223_v26  ;;  %v11225_v59 = vld [vmem:[#allocation20_spill] sm:$0xff] }
 0x2dd   :  { %v3212_v38 = vadd.f32 %v3073_v32, %v2384_v60  ;;  %v1964_v32 = vsel %vm1893_vm4, %v1961_v44, %v1963_v23  ;;  %v3575_v60 = vor.u32 %v3574_v18, %v3571_v45 }
 0x2df   :  { %7834 = vmatmul.msk.bf16.gmra.mxu3 %vm962_vm3, %v2792_v13  ;;  %v9779_v36 = vadd.f32 %v3906_v4, %v3212_v38  ;;  %v8346_v13 = vld [vmem:[#allocation2 + $0x128] sm:$0xff]  ;;  %v3576_v3 = vsel %vm3253_vm5, %v3566_v7, %v3575_v60  ;;  %v8262_v7 = vld [vmem:[%s11136_s0 + $0x118] sm:$0xff] }
 0x2e0   :  { %v3908_v57 = vpop.f32.mrf.mxu0  ;;  %v1803_v58 = vpop.f32.mrf.mxu1  ;;  %v2793_v21 = vrot.slane %v8346_v13, 1  ;;  %v3578_v45 = vshrl.u32 %v8346_v13, 16 }
 0x2e1   :  { %11222 = vst [vmem:[#allocation16_spill] sm:$0xff] %v9779_v36  ;;  %v1804_v26 = vadd.f32 %v1803_v58, %v11225_v59 }
 0x2e2   :  { %v2247_v19 = vpop.f32.mrf.mxu2  ;;  %v3078_v17 = vpop.f32.mrf.mxu3  ;;  %v2794_v44 = vsel %vm1893_vm4, %v2791_v43, %v2793_v21 }
 0x2e3   :  { %v2385_v39 = vadd.f32 %v2247_v19, %v1801_v8  ;;  %7582 = vmatmul.msk.bf16.gmra.mxu1 %vm962_vm3, %v8261_v50  ;;  %v8430_v19 = vld [vmem:[#allocation2 + $0x120] sm:$0xff] }
 0x2e5   :  { %v3213_v6 = vadd.f32 %v3075_v9, %v2385_v39  ;;  %v3581_v9 = vshll.u32 %v8346_v13, 16  ;;  %v1965_v39 = vrot.slane %v8430_v19, 1 }
 0x2e7   :  { %7626 = vmatmul.msk.bf16.gmra.mxu2 %vm962_vm3, %v1964_v32  ;;  %v9785_v4 = vadd.f32 %v3908_v57, %v3213_v6  ;;  %v3580_v32 = vrot.slane %v3578_v45, 1 }
 0x2e8   :  { %v3911_v38 = vpop.f32.mrf.mxu0  ;;  %v1805_v46 = vpop.f32.mrf.mxu1 }
 0x2e9   :  { %11224 = vst [vmem:[#allocation18_spill] sm:$0xff] %v9785_v4 }
 0x2ea   :  { %v2250_v36 = vpop.f32.mrf.mxu2  ;;  %v3080_v8 = vpop.f32.mrf.mxu3 }
 0x2eb   :  { %7878 = vmatmul.msk.bf16.gmra.mxu0 %vm962_vm3, %v3576_v3  ;;  %v2386_v50 = vadd.f32 %v2250_v36, %v1804_v26  ;;  %v3583_v3 = vrot.slane %v3581_v9, 2  ;;  %v11227_v36 = vld [vmem:[#allocation22_spill] sm:$0xff] }
 0x2ec   :  { %v1806_v59 = vadd.f32 %v1805_v46, %v11227_v36  ;;  %v11229_v46 = vld [vmem:[#allocation24_spill] sm:$0xff] }
 0x2ed   :  { %v3214_v18 = vadd.f32 %v3078_v17, %v2386_v50  ;;  %v1966_v17 = vsel %vm1893_vm4, %v1963_v23, %v1965_v39  ;;  %v3584_v50 = vor.u32 %v3583_v3, %v3580_v32 }
 0x2ef   :  { %7835 = vmatmul.msk.bf16.gmra.mxu3 %vm962_vm3, %v2794_v44  ;;  %v9795_v6 = vadd.f32 %v3911_v38, %v3214_v18  ;;  %v8347_v44 = vld [vmem:[#allocation2 + $0x130] sm:$0xff]  ;;  %v3585_v45 = vsel %vm3253_vm5, %v3575_v60, %v3584_v50  ;;  %v8263_v60 = vld [vmem:[%s11136_s0 + $0x120] sm:$0xff] }
 0x2f0   :  { %v3913_v57 = vpop.f32.mrf.mxu0  ;;  %v1808_v58 = vpop.f32.mrf.mxu1  ;;  %v2795_v19 = vrot.slane %v8347_v44, 1  ;;  %v3587_v32 = vshrl.u32 %v8347_v44, 16 }
 0x2f1   :  { %11226 = vst [vmem:[#allocation20_spill] sm:$0xff] %v9795_v6  ;;  %v1809_v36 = vadd.f32 %v1808_v58, %v11229_v46 }
 0x2f2   :  { %v2252_v43 = vpop.f32.mrf.mxu2  ;;  %v3083_v26 = vpop.f32.mrf.mxu3  ;;  %v2796_v23 = vsel %vm1893_vm4, %v2793_v21, %v2795_v19 }
 0x2f3   :  { %v2387_v13 = vadd.f32 %v2252_v43, %v1806_v59  ;;  %7583 = vmatmul.msk.bf16.gmra.mxu1 %vm962_vm3, %v8262_v7  ;;  %v8431_v43 = vld [vmem:[#allocation2 + $0x128] sm:$0xff] }
 0x2f5   :  { %v3215_v4 = vadd.f32 %v3080_v8, %v2387_v13  ;;  %v3590_v8 = vshll.u32 %v8347_v44, 16  ;;  %v1967_v13 = vrot.slane %v8431_v43, 1 }
 0x2f7   :  { %7627 = vmatmul.msk.bf16.gmra.mxu2 %vm962_vm3, %v1966_v17  ;;  %v9801_v38 = vadd.f32 %v3913_v57, %v3215_v4  ;;  %v3589_v17 = vrot.slane %v3587_v32, 1 }
 0x2f8   :  { %v3916_v18 = vpop.f32.mrf.mxu0  ;;  %v1810_v9 = vpop.f32.mrf.mxu1 }
 0x2f9   :  { %11228 = vst [vmem:[#allocation22_spill] sm:$0xff] %v9801_v38 }
 0x2fa   :  { %v2255_v6 = vpop.f32.mrf.mxu2  ;;  %v3085_v59 = vpop.f32.mrf.mxu3 }
 0x2fb   :  { %7879 = vmatmul.msk.bf16.gmra.mxu0 %vm962_vm3, %v3585_v45  ;;  %v2388_v7 = vadd.f32 %v2255_v6, %v1809_v36  ;;  %v3592_v45 = vrot.slane %v3590_v8, 2  ;;  %v11231_v6 = vld [vmem:[#allocation26_spill] sm:$0xff] }
 0x2fc   :  { %v1811_v46 = vadd.f32 %v1810_v9, %v11231_v6  ;;  %v11233_v9 = vld [vmem:[#allocation28_spill] sm:$0xff] }
 0x2fd   :  { %v3216_v3 = vadd.f32 %v3083_v26, %v2388_v7  ;;  %v1968_v26 = vsel %vm1893_vm4, %v1965_v39, %v1967_v13  ;;  %v3593_v7 = vor.u32 %v3592_v45, %v3589_v17 }
 0x2ff   :  { %7836 = vmatmul.msk.bf16.gmra.mxu3 %vm962_vm3, %v2796_v23  ;;  %v9811_v4 = vadd.f32 %v3916_v18, %v3216_v3  ;;  %v8348_v23 = vld [vmem:[#allocation2 + $0x138] sm:$0xff]  ;;  %v3594_v32 = vsel %vm3253_vm5, %v3584_v50, %v3593_v7  ;;  %v8264_v50 = vld [vmem:[%s11136_s0 + $0x128] sm:$0xff] }
 0x300   :  { %v3918_v57 = vpop.f32.mrf.mxu0  ;;  %v1813_v58 = vpop.f32.mrf.mxu1  ;;  %v2797_v43 = vrot.slane %v8348_v23, 1  ;;  %v3596_v17 = vshrl.u32 %v8348_v23, 16 }
 0x301   :  { %11230 = vst [vmem:[#allocation24_spill] sm:$0xff] %v9811_v4  ;;  %v1814_v6 = vadd.f32 %v1813_v58, %v11233_v9 }
 0x302   :  { %v2257_v21 = vpop.f32.mrf.mxu2  ;;  %v3088_v36 = vpop.f32.mrf.mxu3  ;;  %v2798_v39 = vsel %vm1893_vm4, %v2795_v19, %v2797_v43 }
 0x303   :  { %v2389_v44 = vadd.f32 %v2257_v21, %v1811_v46  ;;  %7584 = vmatmul.msk.bf16.gmra.mxu1 %vm962_vm3, %v8263_v60  ;;  %v8432_v21 = vld [vmem:[#allocation2 + $0x130] sm:$0xff] }
 0x305   :  { %v3217_v38 = vadd.f32 %v3085_v59, %v2389_v44  ;;  %v3599_v59 = vshll.u32 %v8348_v23, 16  ;;  %v1969_v44 = vrot.slane %v8432_v21, 1 }
 0x307   :  { %7628 = vmatmul.msk.bf16.gmra.mxu2 %vm962_vm3, %v1968_v26  ;;  %v9817_v18 = vadd.f32 %v3918_v57, %v3217_v38  ;;  %v3598_v26 = vrot.slane %v3596_v17, 1 }
 0x308   :  { %v3921_v3 = vpop.f32.mrf.mxu0  ;;  %v1815_v8 = vpop.f32.mrf.mxu1 }
 0x309   :  { %11232 = vst [vmem:[#allocation26_spill] sm:$0xff] %v9817_v18 }
 0x30a   :  { %v2260_v4 = vpop.f32.mrf.mxu2  ;;  %v3090_v46 = vpop.f32.mrf.mxu3 }
 0x30b   :  { %7880 = vmatmul.msk.bf16.gmra.mxu0 %vm962_vm3, %v3594_v32  ;;  %v2390_v60 = vadd.f32 %v2260_v4, %v1814_v6  ;;  %v3601_v32 = vrot.slane %v3599_v59, 2  ;;  %v11235_v4 = vld [vmem:[#allocation30_spill] sm:$0xff] }
 0x30c   :  { %v1816_v9 = vadd.f32 %v1815_v8, %v11235_v4  ;;  %v11237_v8 = vld [vmem:[#allocation32_spill] sm:$0xff] }
 0x30d   :  { %v3218_v45 = vadd.f32 %v3088_v36, %v2390_v60  ;;  %v1970_v36 = vsel %vm1893_vm4, %v1967_v13, %v1969_v44  ;;  %v3602_v60 = vor.u32 %v3601_v32, %v3598_v26 }
 0x30f   :  { %7837 = vmatmul.msk.bf16.gmra.mxu3 %vm962_vm3, %v2798_v39  ;;  %v9827_v38 = vadd.f32 %v3921_v3, %v3218_v45  ;;  %v8349_v39 = vld [vmem:[#allocation2 + $0x140] sm:$0xff]  ;;  %v3603_v17 = vsel %vm3253_vm5, %v3593_v7, %v3602_v60  ;;  %v8265_v7 = vld [vmem:[%s11136_s0 + $0x130] sm:$0xff] }
 0x310   :  { %v3923_v57 = vpop.f32.mrf.mxu0  ;;  %v1818_v58 = vpop.f32.mrf.mxu1  ;;  %v2799_v21 = vrot.slane %v8349_v39, 1  ;;  %v3605_v26 = vshrl.u32 %v8349_v39, 16 }
 0x311   :  { %11234 = vst [vmem:[#allocation28_spill] sm:$0xff] %v9827_v38  ;;  %v1819_v4 = vadd.f32 %v1818_v58, %v11237_v8 }
 0x312   :  { %v2262_v19 = vpop.f32.mrf.mxu2  ;;  %v3093_v6 = vpop.f32.mrf.mxu3  ;;  %v2800_v13 = vsel %vm1893_vm4, %v2797_v43, %v2799_v21 }
 0x313   :  { %v2391_v23 = vadd.f32 %v2262_v19, %v1816_v9  ;;  %7585 = vmatmul.msk.bf16.gmra.mxu1 %vm962_vm3, %v8264_v50  ;;  %v8433_v19 = vld [vmem:[#allocation2 + $0x138] sm:$0xff] }
 0x315   :  { %v3219_v18 = vadd.f32 %v3090_v46, %v2391_v23  ;;  %v3608_v46 = vshll.u32 %v8349_v39, 16  ;;  %v1971_v23 = vrot.slane %v8433_v19, 1 }
 0x317   :  { %7629 = vmatmul.msk.bf16.gmra.mxu2 %vm962_vm3, %v1970_v36  ;;  %v9833_v3 = vadd.f32 %v3923_v57, %v3219_v18  ;;  %v3607_v36 = vrot.slane %v3605_v26, 1  ;;  %v8350_v26 = vld [vmem:[#allocation2 + $0x148] sm:$0xff] }
 0x318   :  { %v3926_v45 = vpop.f32.mrf.mxu0  ;;  %v1820_v59 = vpop.f32.mrf.mxu1 }
 0x319   :  { %11236 = vst [vmem:[#allocation30_spill] sm:$0xff] %v9833_v3 }
 0x31a   :  { %v2265_v38 = vpop.f32.mrf.mxu2  ;;  %v3095_v9 = vpop.f32.mrf.mxu3 }
 0x31b   :  { %7881 = vmatmul.msk.bf16.gmra.mxu0 %vm962_vm3, %v3603_v17  ;;  %v2392_v50 = vadd.f32 %v2265_v38, %v1819_v4  ;;  %v3610_v17 = vrot.slane %v3608_v46, 2  ;;  %v11239_v38 = vld [vmem:[#allocation34_spill] sm:$0xff] }
 0x31c   :  { %v1821_v8 = vadd.f32 %v1820_v59, %v11239_v38  ;;  %v2801_v38 = vrot.slane %v8350_v26, 1 }
 0x31d   :  { %v3220_v32 = vadd.f32 %v3093_v6, %v2392_v50  ;;  %v7164_v6 = vld [vmem:[%s11137_s1 + $0x158] sm:$0xf]  ;;  %v1972_v50 = vsel %vm1893_vm4, %v1969_v44, %v1971_v23 }
 0x31e   :  { %225 = vst.msk [vmem:[#allocation2 + $0x158] sm:$0xf] %vm133_vm1, %v7164_v6 }
 0x31f   :  { %7838 = vmatmul.msk.bf16.gmra.mxu3 %vm962_vm3, %v2800_v13  ;;  %v9843_v18 = vadd.f32 %v3926_v45, %v3220_v32  ;;  %v7165_v45 = vld [vmem:[%s11137_s1 + $0x15c] sm:$0xf]  ;;  %v3611_v13 = vor.u32 %v3610_v17, %v3607_v36  ;;  %v3614_v17 = vshrl.u32 %v8350_v26, 16 }
 0x320   :  { %v3928_v57 = vpop.f32.mrf.mxu0  ;;  %v1823_v58 = vpop.f32.mrf.mxu1  ;;  %226 = vst.msk [vmem:[#allocation2 + $0x15c] sm:$0xf] %vm133_vm1, %v7165_v45 }
 0x321   :  { %11238 = vst [vmem:[#allocation32_spill] sm:$0xff] %v9843_v18 }
 0x322   :  { %v2267_v43 = vpop.f32.mrf.mxu2  ;;  %v3098_v4 = vpop.f32.mrf.mxu3 }
 0x323   :  { %v2393_v39 = vadd.f32 %v2267_v43, %v1821_v8  ;;  %7586 = vmatmul.msk.bf16.gmra.mxu1 %vm962_vm3, %v8265_v7  ;;  %v3612_v7 = vsel %vm3253_vm5, %v3602_v60, %v3611_v13  ;;  %v11241_v8 = vld [vmem:[#allocation36_spill] sm:$0xff]  ;;  %v8266_v60 = vld [vmem:[%s11136_s0 + $0x138] sm:$0xff] }
 0x324   :  { %v1824_v43 = vadd.f32 %v1823_v58, %v11241_v8  ;;  %v3616_v8 = vrot.slane %v3614_v17, 1 }
 0x325   :  { %v3221_v59 = vadd.f32 %v3095_v9, %v2393_v39  ;;  %v2802_v9 = vsel %vm1893_vm4, %v2799_v21, %v2801_v38  ;;  %v3617_v39 = vshll.u32 %v8350_v26, 16 }
 0x327   :  { %7630 = vmatmul.msk.bf16.gmra.mxu2 %vm962_vm3, %v1972_v50  ;;  %v9857_v46 = vadd.f32 %v3928_v57, %v3221_v59  ;;  %v8434_v50 = vld [vmem:[#allocation2 + $0x140] sm:$0xff] }
 0x328   :  { %v3931_v32 = vpop.f32.mrf.mxu0  ;;  %v1825_v19 = vpop.f32.mrf.mxu1  ;;  %v1973_v59 = vrot.slane %v8434_v50, 1 }
 0x329   :  { %11240 = vst [vmem:[#allocation34_spill] sm:$0xff] %v9857_v46 }
 0x32a   :  { %v2270_v18 = vpop.f32.mrf.mxu2  ;;  %v3100_v44 = vpop.f32.mrf.mxu3 }
 0x32b   :  { %7882 = vmatmul.msk.bf16.gmra.mxu0 %vm962_vm3, %v3612_v7  ;;  %v2394_v36 = vadd.f32 %v2270_v18, %v1824_v43  ;;  %v3619_v7 = vrot.slane %v3617_v39, 2  ;;  %v11243_v18 = vld [vmem:[#allocation39_spill] sm:$0xff] }
 0x32c   :  { %v1826_v43 = vadd.f32 %v1825_v19, %v11243_v18  ;;  %v11245_v19 = vld [vmem:[#allocation42_spill] sm:$0xff] }
 0x32d   :  { %v3222_v6 = vadd.f32 %v3098_v4, %v2394_v36  ;;  %v1974_v4 = vsel %vm1893_vm4, %v1971_v23, %v1973_v59  ;;  %v3620_v36 = vor.u32 %v3619_v7, %v3616_v8 }
 0x32f   :  { %7839 = vmatmul.msk.bf16.gmra.mxu3 %vm962_vm3, %v2802_v9  ;;  %v9867_v57 = vadd.f32 %v3931_v32, %v3222_v6  ;;  %v8351_v9 = vld [vmem:[#allocation2 + $0x150] sm:$0xff]  ;;  %v3621_v17 = vsel %vm3253_vm5, %v3611_v13, %v3620_v36  ;;  %v8267_v13 = vld [vmem:[%s11136_s0 + $0x140] sm:$0xff] }
 0x330   :  { %v3933_v45 = vpop.f32.mrf.mxu0  ;;  %v1828_v58 = vpop.f32.mrf.mxu1  ;;  %v2803_v50 = vrot.slane %v8351_v9, 1  ;;  %v3623_v8 = vshrl.u32 %v8351_v9, 16 }
 0x331   :  { %11242 = vst [vmem:[#allocation36_spill] sm:$0xff] %v9867_v57  ;;  %v1829_v18 = vadd.f32 %v1828_v58, %v11245_v19 }
 0x332   :  { %v2272_v21 = vpop.f32.mrf.mxu2  ;;  %v3103_v46 = vpop.f32.mrf.mxu3  ;;  %v2804_v23 = vsel %vm1893_vm4, %v2801_v38, %v2803_v50 }
 0x333   :  { %v2395_v26 = vadd.f32 %v2272_v21, %v1826_v43  ;;  %7587 = vmatmul.msk.bf16.gmra.mxu1 %vm962_vm3, %v8266_v60  ;;  %v2503_v21 = vld [vmem:[#allocation2 + $0x158] sm:$0xf] }
 0x334   :  { %v2677_v38 = vunpack.c.l.b16 %v2503_v21 }
 0x335   :  { %v3223_v3 = vadd.f32 %v3100_v44, %v2395_v26  ;;  %v3626_v44 = vshll.u32 %v8351_v9, 16  ;;  %v11247_v9 = vld [vmem:[#allocation45_spill] sm:$0xff] }
 0x337   :  { %7631 = vmatmul.msk.bf16.gmra.mxu2 %vm962_vm3, %v1974_v4  ;;  %v9873_v32 = vadd.f32 %v3933_v45, %v3223_v3  ;;  %v2504_v3 = vld [vmem:[#allocation2 + $0x15c] sm:$0x1]  ;;  %v8435_v45 = vld [vmem:[#allocation2 + $0x148] sm:$0xff]  ;;  %v3628_v19 = vrot.slane %v3626_v44, 2 }
 0x338   :  { %v3936_v6 = vpop.f32.mrf.mxu0  ;;  %v1830_v39 = vpop.f32.mrf.mxu1  ;;  %v1975_v58 = vrot.slane %v8435_v45, 1 }
 0x339   :  { %11244 = vst [vmem:[#allocation39_spill] sm:$0xff] %v9873_v32 }
 0x33a   :  { %v2275_v57 = vpop.f32.mrf.mxu2  ;;  %v3105_v43 = vpop.f32.mrf.mxu3  ;;  %v1976_v33 = vsel %vm1893_vm4, %v1973_v59, %v1975_v58 }
 0x33b   :  { %7883 = vmatmul.msk.bf16.gmra.mxu0 %vm962_vm3, %v3621_v17  ;;  %v2396_v60 = vadd.f32 %v2275_v57, %v1829_v18  ;;  %v3625_v57 = vrot.slane %v3623_v8, 1  ;;  %v2678_v18 = vunpack.c.l.b16 %v2504_v3 }
 0x33d   :  { %v3224_v7 = vadd.f32 %v3103_v46, %v2396_v60  ;;  %v1831_v46 = vadd.f32 %v1830_v39, %v11247_v9  ;;  %v3247_v60 = vld [vmem:[#allocation2 + $0x15c] sm:$0x3]  ;;  %v3629_v24 = vor.u32 %v3628_v19, %v3625_v57  ;;  %v2721_v45 = vpack.c.b16 %v2678_v18, %v2677_v38  ;;  %v11252_v18 = vld [vmem:[#allocation3_spill] sm:$0xff] }
 0x33f   :  { %7840 = vmatmul.msk.bf16.gmra.mxu3 %vm962_vm3, %v2804_v23  ;;  %v9883_v26 = vadd.f32 %v3936_v6, %v3224_v7  ;;  %v3251_v6 = vunpack.c.l.b16 %v3247_v60  ;;  %v3630_v21 = vsel %vm3253_vm5, %v3620_v36, %v3629_v24  ;;  %v2805_v3 = vrot.slane %v2721_v45, 1  ;;  %v8268_v36 = vld [vmem:[%s11136_s0 + $0x148] sm:$0xff] }
 0x340   :  { %v3938_v4 = vpop.f32.mrf.mxu0  ;;  %v1833_v17 = vpop.f32.mrf.mxu1  ;;  %v1977_v60 = vrot.slane %v11252_v18, 1 }
 0x341   :  { %11246 = vst [vmem:[#allocation42_spill] sm:$0xff] %v9883_v26  ;;  %v9892_v9 = vpack.c.b16 %v3251_v6, %v2677_v38 }
 0x342   :  { %v2277_v32 = vpop.f32.mrf.mxu2  ;;  %v3108_v10 = vpop.f32.mrf.mxu3 }
 0x343   :  { %v2397_v23 = vadd.f32 %v2277_v32, %v1831_v46  ;;  %7588 = vmatmul.msk.bf16.gmra.mxu1 %vm962_vm3, %v8267_v13  ;;  %11249 = vst [vmem:[#allocation58_spill] sm:$0xff] %v9892_v9  ;;  %v11250_v32 = vld [vmem:[#allocation48_spill] sm:$0xff] }
 0x344   :  { %v1834_v46 = vadd.f32 %v1833_v17, %v11250_v32 }
 0x345   :  { %v3225_v7 = vadd.f32 %v3105_v43, %v2397_v23  ;;  %v2806_v43 = vsel %vm1893_vm4, %v2803_v50, %v2805_v3  ;;  %v11253_v50 = vld [vmem:[#allocation49_spill] sm:$0xff] }
 0x347   :  { %7632 = vmatmul.msk.bf16.gmra.mxu2 %vm962_vm3, %v1976_v33  ;;  %v9889_v8 = vadd.f32 %v3938_v4, %v3225_v7  ;;  %v3632_v33 = vshrl.u32 %v9892_v9, 16  ;;  %v3635_v4 = vshll.u32 %v9892_v9, 16 }
 0x348   :  { %v3941_v44 = vpop.f32.mrf.mxu0  ;;  %v1835_v39 = vpop.f32.mrf.mxu1 }
 0x349   :  { %11248 = vst [vmem:[#allocation45_spill] sm:$0xff] %v9889_v8  ;;  %v3634_v23 = vrot.slane %v3632_v33, 1  ;;  %v3637_v45 = vrot.slane %v3635_v4, 2  ;;  %v1836_v6 = vadd.f32 %v1835_v39, %v11253_v50 }
 0x34a   :  { %v2280_v13 = vpop.f32.mrf.mxu2  ;;  %v3110_v26 = vpop.f32.mrf.mxu3 }
 0x34b   :  { %7884 = vmatmul.msk.bf16.gmra.mxu0 %vm962_vm3, %v3630_v21  ;;  %v2398_v59 = vadd.f32 %v2280_v13, %v1834_v46  ;;  %v3638_v46 = vor.u32 %v3637_v45, %v3634_v23  ;;  %v4612_v13 = vld [vmem:[#allocation2 + $0x10] sm:$0xc] }
 0x34d   :  { %v3226_v57 = vadd.f32 %v3108_v10, %v2398_v59  ;;  %v1978_v10 = vsel %vm1893_vm4, %v1975_v58, %v1977_v60  ;;  %v9909_v59 = vld [vmem:[#allocation2 + $0x14] sm:$0xf]  ;;  %v313_v58 = vld [vmem:[%s11136_s0 + $0x150] sm:$0xf] }
 0x34e   :  { %v11144_v33 = vunpack.c.l.b16 %v9909_v59 }
 0x34f   :  { %7841 = vmatmul.msk.bf16.gmra.mxu3 %vm962_vm3, %v2806_v43  ;;  %v9903_v19 = vadd.f32 %v3941_v44, %v3226_v57  ;;  %v4786_v43 = vunpack.c.l.b16 %v4612_v13  ;;  %v3639_v57 = vsel %vm3253_vm5, %v3629_v24, %v3638_v46 }
 0x350   :  { %v3943_v17 = vpop.f32.mrf.mxu0  ;;  %v1838_v38 = vpop.f32.mrf.mxu1 }
 0x351   :  { %11251 = vst [vmem:[#allocation48_spill] sm:$0xff] %v9903_v19 }
 0x352   :  { %v2282_v7 = vpop.f32.mrf.mxu2  ;;  %v3113_v21 = vpop.f32.mrf.mxu3 }
 0x353   :  { %v2399_v32 = vadd.f32 %v2282_v7, %v1836_v6  ;;  %7589 = vmatmul.msk.bf16.gmra.mxu1 %vm962_vm3, %v8268_v36  ;;  %v11255_v36 = vld [vmem:[#allocation6_spill] sm:$0xff]  ;;  %v1488_v6 = vunpack.c.l.b16 %v313_v58  ;;  %v9925_v7 = vld [vmem:[#allocation2 + $0x18] sm:$0xff] }
 0x354   :  { %v1839_v23 = vadd.f32 %v1838_v38, %v11255_v36  ;;  %v5456_v58 = vshrl.u32 %v9925_v7, 16  ;;  %v5459_v36 = vshll.u32 %v9925_v7, 16 }
 0x355   :  { %v3227_v44 = vadd.f32 %v3110_v26, %v2399_v32  ;;  %v1531_v32 = vpack.c.b16 %v1488_v6, %v1488_v6 }
 0x357   :  { %7633 = vmatmul.msk.bf16.gmra.mxu2 %vm962_vm3, %v1978_v10  ;;  %v9913_v4 = vadd.f32 %v3943_v17, %v3227_v44  ;;  %v9923_v17 = vpack.c.b16 %v11144_v33, %v4786_v43  ;;  %v11257_v43 = vld [vmem:[#allocation8_spill] sm:$0xff] }
 0x358   :  { %v3946_v39 = vpop.f32.mrf.mxu0  ;;  %v1840_v18 = vpop.f32.mrf.mxu1 }
 0x359   :  { %11254 = vst [vmem:[#allocation3_spill] sm:$0xff] %v9913_v4  ;;  %v5448_v10 = vshrl.u32 %v9923_v17, 16 }
 0x35a   :  { %v2285_v45 = vpop.f32.mrf.mxu2  ;;  %v3115_v50 = vpop.f32.mrf.mxu3 }
 0x35b   :  { %7885 = vmatmul.msk.bf16.gmra.mxu0 %vm962_vm3, %v3639_v57  ;;  %v2400_v26 = vadd.f32 %v2285_v45, %v1839_v23  ;;  %v5451_v57 = vshll.u32 %v9923_v17, 16  ;;  %v1841_v23 = vadd.f32 %v1840_v18, %v11257_v43  ;;  %v4080_v45 = vld [vmem:[#allocation2 + $0x8] sm:$0xc]  ;;  %v11258_v43 = vld [vmem:[#allocation9_spill] sm:$0xff] }
 0x35c   :  { %v11259_v34 = vunpack.c.l.b16 %v11258_v43 }
 0x35d   :  { %v3228_v24 = vadd.f32 %v3113_v21, %v2400_v26  ;;  %v5453_v6 = vrot.slane %v5451_v57, 3 }
 0x35f   :  { %7842 = vmatmul.msk.bf16.gmra.mxu3 %vm962_vm3, %v2805_v3  ;;  %v9929_v13 = vadd.f32 %v3946_v39, %v3228_v24  ;;  %v5450_v3 = vrot.slane %v5448_v10, 2  ;;  %v5458_v39 = vrot.slane %v5456_v58, 2  ;;  %v5461_v24 = vrot.slane %v5459_v36, 3 }
 0x360   :  { %v3948_v38 = vpop.f32.mrf.mxu0  ;;  %v1843_v44 = vpop.f32.mrf.mxu1 }
 0x361   :  { %11256 = vst [vmem:[#allocation49_spill] sm:$0xff] %v9929_v13  ;;  %v4084_v13 = vunpack.c.l.b16 %v4080_v45  ;;  %v5454_v56 = vor.u32 %v5453_v6, %v5450_v3  ;;  %v5462_v18 = vor.u32 %v5461_v24, %v5458_v39  ;;  %v9944_v45 = vld [vmem:[#allocation2 + $0x20] sm:$0xff]  ;;  %v11262_v24 = vld [vmem:[#allocation13_spill] sm:$0xff] }
 0x362   :  { %v2287_v33 = vpop.f32.mrf.mxu2  ;;  %v3118_v21 = vpop.f32.mrf.mxu3  ;;  %v5465_v39 = vshrl.u32 %v9944_v45, 16 }
 0x363   :  { %v2401_v26 = vadd.f32 %v2287_v33, %v1841_v23  ;;  %7590 = vmatmul.msk.bf16.gmra.mxu1 %vm962_vm3, %v1531_v32  ;;  %v4085_v22 = vpack.c.b16 %v11259_v34, %v4084_v13  ;;  %v11260_v33 = vld [vmem:[#allocation11_spill] sm:$0xff]  ;;  %v6273_v32 = vld [vmem:[#allocation2 + $0x10] sm:$0x8]  ;;  %v4915_v34 = vrot.slane %v9923_v17, 2  ;;  %v4916_v13 = vrot.slane %v9925_v7, 2 }
 0x364   :  { %v1844_v23 = vadd.f32 %v1843_v44, %v11260_v33  ;;  %v6277_v36 = vunpack.c.l.b16 %v6273_v32 }
 0x365   :  { %v3229_v4 = vadd.f32 %v3115_v50, %v2401_v26 }
 0x367   :  { %7634 = vmatmul.msk.bf16.gmra.mxu2 %vm962_vm3, %v1977_v60  ;;  %v9937_v9 = vadd.f32 %v3948_v38, %v3229_v4  ;;  %v5463_v60 = vsel %vm5446_vm6, %v5454_v56, %v5462_v18  ;;  %v4087_v4 = vrot.slane %v4085_v22, 2  ;;  %v8436_v38 = vld [vmem:[#allocation2 + $0x10] sm:$0xff]  ;;  %v11261_v22 = vunpack.c.l.b16 %v9909_v59 }
 0x368   :  { %v3951_v19 = vpop.f32.mrf.mxu0  ;;  %v1845_v8 = vpop.f32.mrf.mxu1  ;;  %v4088_v58 = vrot.slane %v8436_v38, 2 }
 0x369   :  { %v6278_v6 = vpack.c.b16 %v11261_v22, %v6277_v36  ;;  %v1846_v43 = vadd.f32 %v1845_v8, %v11262_v24  ;;  %v11263_v22 = vld [vmem:[#allocation15_spill] sm:$0xff] }
 0x36a   :  { %v2290_v10 = vpop.f32.mrf.mxu2  ;;  %v3120_v57 = vpop.f32.mrf.mxu3  ;;  %v4089_v56 = vsel %vm4086_vm7, %v4087_v4, %v4088_v58 }
 0x36b   :  { %7886 = vmatmul.msk.bf16.gmra.mxu0 %vm962_vm3, %v3638_v46  ;;  %v2402_v50 = vadd.f32 %v2290_v10, %v1844_v23  ;;  %v6280_v32 = vrot.slane %v6278_v6, 3  ;;  %v6281_v10 = vrot.slane %v9925_v7, 3 }
 0x36d   :  { %v3230_v26 = vadd.f32 %v3118_v21, %v2402_v50  ;;  %v5468_v21 = vshll.u32 %v9944_v45, 16  ;;  %v5467_v50 = vrot.slane %v5465_v39, 2  ;;  %v6282_v8 = vsel %vm6279_vm8, %v6280_v32, %v6281_v10 }
 0x36f   :  { %8140 = vmatmul.msk.bf16.vlgmr.msra.gmra.mxu3 %vm962_vm3, %v5463_v60  ;;  %v9949_v44 = vadd.f32 %v3951_v19, %v3230_v26  ;;  %v4917_v19 = vsel %vm4086_vm7, %v4915_v34, %v4916_v13  ;;  %v5470_v60 = vrot.slane %v5468_v21, 3  ;;  %v9967_v21 = vld [vmem:[#allocation2 + $0x28] sm:$0xff] }
 0x370   :  { %v3953_v46 = vpop.f32.mrf.mxu0  ;;  %v1848_v3 = vpop.f32.mrf.mxu1  ;;  %v5474_v32 = vshrl.u32 %v9967_v21, 16 }
 0x371   :  { %v5471_v26 = vor.u32 %v5470_v60, %v5467_v50  ;;  %v5477_v50 = vshll.u32 %v9967_v21, 16 }
 0x372   :  { %v2292_v33 = vpop.f32.mrf.mxu2  ;;  %v3123_v23 = vpop.f32.mrf.mxu3 }
 0x373   :  { %v2403_v17 = vadd.f32 %v2292_v33, %v1846_v43  ;;  %7888 = vmatmul.msk.bf16.vlgmr.msra.gmra.mxu1 %vm962_vm3, %v4089_v56  ;;  %v1849_v56 = vadd.f32 %v1848_v3, %v11263_v22  ;;  %v5472_v6 = vsel %vm5446_vm6, %v5462_v18, %v5471_v26  ;;  %v11264_v18 = vld [vmem:[#allocation17_spill] sm:$0xff] }
 0x375   :  { %v3231_v59 = vadd.f32 %v3120_v57, %v2403_v17  ;;  %v8437_v57 = vld [vmem:[#allocation2 + $0x18] sm:$0xff] }
 0x376   :  { %v4090_v39 = vrot.slane %v8437_v57, 2 }
 0x377   :  { %8096 = vmatmul.msk.bf16.vlgmr.msra.gmra.mxu2 %vm962_vm3, %v4917_v19  ;;  %v9961_v4 = vadd.f32 %v3953_v46, %v3231_v59  ;;  %v4918_v19 = vrot.slane %v9944_v45, 2 }
 0x378   :  { %v3956_v38 = vpop.f32.mrf.mxu0  ;;  %v1850_v36 = vpop.f32.mrf.mxu1  ;;  %v4091_v3 = vsel %vm4086_vm7, %v4088_v58, %v4090_v39 }
 0x379   :  { %v1851_v60 = vadd.f32 %v1850_v36, %v11264_v18  ;;  %v11266_v18 = vld [vmem:[#allocation19_spill] sm:$0xff] }
 0x37a   :  { %v2295_v24 = vpop.f32.mrf.mxu2  ;;  %v3125_v34 = vpop.f32.mrf.mxu3 }
 0x37b   :  { %8184 = vmatmul.msk.bf16.vlgmr.msra.gmra.mxu0 %vm962_vm3, %v6282_v8  ;;  %v2404_v7 = vadd.f32 %v2295_v24, %v1849_v56  ;;  %v5476_v56 = vrot.slane %v5474_v32, 2  ;;  %v5479_v24 = vrot.slane %v5477_v50, 3  ;;  %v8438_v32 = vld [vmem:[#allocation2 + $0x20] sm:$0xff]  ;;  %v9987_v50 = vld [vmem:[#allocation2 + $0x30] sm:$0xff] }
 0x37d   :  { %v3232_v46 = vadd.f32 %v3123_v23, %v2404_v7  ;;  %v4919_v23 = vsel %vm4086_vm7, %v4916_v13, %v4918_v19 }
 0x37f   :  { %8141 = vmatmul.msk.bf16.gmra.mxu3 %vm962_vm3, %v5472_v6  ;;  %v9970_v43 = vadd.f32 %v3956_v38, %v3232_v46  ;;  %v6283_v38 = vrot.slane %v9944_v45, 3  ;;  %v5480_v46 = vor.u32 %v5479_v24, %v5476_v56  ;;  %v4920_v56 = vrot.slane %v9967_v21, 2 }
 0x380   :  { %v3958_v33 = vpop.f32.mrf.mxu0  ;;  %v1853_v17 = vpop.f32.mrf.mxu1  ;;  %v5483_v24 = vshrl.u32 %v9987_v50, 16 }
 0x381   :  { %v6284_v57 = vsel %vm6279_vm8, %v6281_v10, %v6283_v38  ;;  %v5481_v45 = vsel %vm5446_vm6, %v5471_v26, %v5480_v46  ;;  %v11268_v26 = vld [vmem:[#allocation21_spill] sm:$0xff] }
 0x382   :  { %v2297_v59 = vpop.f32.mrf.mxu2  ;;  %v3128_v8 = vpop.f32.mrf.mxu3 }
 0x383   :  { %v2405_v22 = vadd.f32 %v2297_v59, %v1851_v60  ;;  %7889 = vmatmul.msk.bf16.gmra.mxu1 %vm962_vm3, %v4091_v3  ;;  %v1854_v60 = vadd.f32 %v1853_v17, %v11266_v18 }
 0x385   :  { %v3233_v58 = vadd.f32 %v3125_v34, %v2405_v22  ;;  %v4092_v34 = vrot.slane %v8438_v32, 2 }
 0x387   :  { %8097 = vmatmul.msk.bf16.gmra.mxu2 %vm962_vm3, %v4919_v23  ;;  %v9981_v7 = vadd.f32 %v3958_v33, %v3233_v58  ;;  %v4093_v17 = vsel %vm4086_vm7, %v4090_v39, %v4092_v34  ;;  %v5486_v58 = vshll.u32 %v9987_v50, 16 }
 0x388   :  { %v3961_v6 = vpop.f32.mrf.mxu0  ;;  %v1855_v36 = vpop.f32.mrf.mxu1 }
 0x389   :  { %11265 = vst [vmem:[#allocation6_spill] sm:$0xff] %v9981_v7  ;;  %v11270_v7 = vld [vmem:[#allocation23_spill] sm:$0xff] }
 0x38a   :  { %v2300_v59 = vpop.f32.mrf.mxu2  ;;  %v3130_v3 = vpop.f32.mrf.mxu3 }
 0x38b   :  { %8185 = vmatmul.msk.bf16.gmra.mxu0 %vm962_vm3, %v6284_v57  ;;  %v2406_v13 = vadd.f32 %v2300_v59, %v1854_v60  ;;  %v1856_v57 = vadd.f32 %v1855_v36, %v11268_v26 }
 0x38d   :  { %v3234_v33 = vadd.f32 %v3128_v8, %v2406_v13  ;;  %v4921_v8 = vsel %vm4086_vm7, %v4918_v19, %v4920_v56  ;;  %v5485_v13 = vrot.slane %v5483_v24, 2  ;;  %v8439_v24 = vld [vmem:[#allocation2 + $0x28] sm:$0xff] }
 0x38f   :  { %8142 = vmatmul.msk.bf16.gmra.mxu3 %vm962_vm3, %v5481_v45  ;;  %v9990_v22 = vadd.f32 %v3961_v6, %v3234_v33  ;;  %v6285_v6 = vrot.slane %v9967_v21, 3  ;;  %v5488_v45 = vrot.slane %v5486_v58, 3  ;;  %v10007_v58 = vld [vmem:[#allocation2 + $0x38] sm:$0xff] }
 0x390   :  { %v3963_v10 = vpop.f32.mrf.mxu0  ;;  %v1858_v23 = vpop.f32.mrf.mxu1 }
 0x391   :  { %11267 = vst [vmem:[#allocation8_spill] sm:$0xff] %v9990_v22  ;;  %v6286_v22 = vsel %vm6279_vm8, %v6283_v38, %v6285_v6  ;;  %v5489_v26 = vor.u32 %v5488_v45, %v5485_v13  ;;  %v5495_v13 = vshll.u32 %v10007_v58, 16 }
 0x392   :  { %v2302_v18 = vpop.f32.mrf.mxu2  ;;  %v3133_v60 = vpop.f32.mrf.mxu3 }
 0x393   :  { %v2407_v59 = vadd.f32 %v2302_v18, %v1856_v57  ;;  %7890 = vmatmul.msk.bf16.gmra.mxu1 %vm962_vm3, %v4093_v17  ;;  %v1859_v57 = vadd.f32 %v1858_v23, %v11270_v7  ;;  %v5490_v21 = vsel %vm5446_vm6, %v5480_v46, %v5489_v26  ;;  %v4922_v23 = vrot.slane %v9987_v50, 2  ;;  %v11272_v46 = vld [vmem:[#allocation25_spill] sm:$0xff] }
 0x395   :  { %v3235_v39 = vadd.f32 %v3130_v3, %v2407_v59  ;;  %v4094_v3 = vrot.slane %v8439_v24, 2 }
 0x397   :  { %8098 = vmatmul.msk.bf16.gmra.mxu2 %vm962_vm3, %v4921_v8  ;;  %v10001_v32 = vadd.f32 %v3963_v10, %v3235_v39  ;;  %v4095_v7 = vsel %vm4086_vm7, %v4092_v34, %v4094_v3 }
 0x398   :  { %v3966_v33 = vpop.f32.mrf.mxu0  ;;  %v1860_v36 = vpop.f32.mrf.mxu1 }
 0x399   :  { %11269 = vst [vmem:[#allocation9_spill] sm:$0xff] %v10001_v32  ;;  %v1861_v45 = vadd.f32 %v1860_v36, %v11272_v46  ;;  %v11274_v32 = vld [vmem:[#allocation27_spill] sm:$0xff] }
 0x39a   :  { %v2305_v18 = vpop.f32.mrf.mxu2  ;;  %v3135_v17 = vpop.f32.mrf.mxu3 }
 0x39b   :  { %8186 = vmatmul.msk.bf16.gmra.mxu0 %vm962_vm3, %v6286_v22  ;;  %v2408_v19 = vadd.f32 %v2305_v18, %v1859_v57  ;;  %v5492_v22 = vshrl.u32 %v10007_v58, 16 }
 0x39d   :  { %v3236_v10 = vadd.f32 %v3133_v60, %v2408_v19  ;;  %v4923_v60 = vsel %vm4086_vm7, %v4920_v56, %v4922_v23  ;;  %v5494_v19 = vrot.slane %v5492_v22, 2  ;;  %v8440_v22 = vld [vmem:[#allocation2 + $0x30] sm:$0xff] }
 0x39f   :  { %8143 = vmatmul.msk.bf16.gmra.mxu3 %vm962_vm3, %v5490_v21  ;;  %v10010_v59 = vadd.f32 %v3966_v33, %v3236_v10  ;;  %v6287_v33 = vrot.slane %v9987_v50, 3  ;;  %v5497_v21 = vrot.slane %v5495_v13, 3  ;;  %v10027_v13 = vld [vmem:[#allocation2 + $0x40] sm:$0xff] }
 0x3a0   :  { %v3968_v38 = vpop.f32.mrf.mxu0  ;;  %v1863_v8 = vpop.f32.mrf.mxu1 }
 0x3a1   :  { %11271 = vst [vmem:[#allocation11_spill] sm:$0xff] %v10010_v59  ;;  %v6288_v59 = vsel %vm6279_vm8, %v6285_v6, %v6287_v33  ;;  %v5498_v46 = vor.u32 %v5497_v21, %v5494_v19  ;;  %v5504_v19 = vshll.u32 %v10027_v13, 16 }
 0x3a2   :  { %v2307_v39 = vpop.f32.mrf.mxu2  ;;  %v3138_v57 = vpop.f32.mrf.mxu3 }
 0x3a3   :  { %v2409_v18 = vadd.f32 %v2307_v39, %v1861_v45  ;;  %7891 = vmatmul.msk.bf16.gmra.mxu1 %vm962_vm3, %v4095_v7  ;;  %v1864_v45 = vadd.f32 %v1863_v8, %v11274_v32  ;;  %v5499_v50 = vsel %vm5446_vm6, %v5489_v26, %v5498_v46  ;;  %v4924_v8 = vrot.slane %v10007_v58, 2  ;;  %v11276_v26 = vld [vmem:[#allocation29_spill] sm:$0xff] }
 0x3a5   :  { %v3237_v34 = vadd.f32 %v3135_v17, %v2409_v18  ;;  %v4096_v17 = vrot.slane %v8440_v22, 2 }
 0x3a7   :  { %8099 = vmatmul.msk.bf16.gmra.mxu2 %vm962_vm3, %v4923_v60  ;;  %v10021_v24 = vadd.f32 %v3968_v38, %v3237_v34  ;;  %v4097_v32 = vsel %vm4086_vm7, %v4094_v3, %v4096_v17 }
 0x3a8   :  { %v3971_v10 = vpop.f32.mrf.mxu0  ;;  %v1865_v36 = vpop.f32.mrf.mxu1 }
 0x3a9   :  { %11273 = vst [vmem:[#allocation13_spill] sm:$0xff] %v10021_v24  ;;  %v1866_v21 = vadd.f32 %v1865_v36, %v11276_v26  ;;  %v11278_v24 = vld [vmem:[#allocation31_spill] sm:$0xff] }
 0x3aa   :  { %v2310_v39 = vpop.f32.mrf.mxu2  ;;  %v3140_v7 = vpop.f32.mrf.mxu3 }
 0x3ab   :  { %8187 = vmatmul.msk.bf16.gmra.mxu0 %vm962_vm3, %v6288_v59  ;;  %v2410_v56 = vadd.f32 %v2310_v39, %v1864_v45  ;;  %v5501_v59 = vshrl.u32 %v10027_v13, 16 }
 0x3ad   :  { %v3238_v38 = vadd.f32 %v3138_v57, %v2410_v56  ;;  %v4925_v57 = vsel %vm4086_vm7, %v4922_v23, %v4924_v8  ;;  %v5503_v56 = vrot.slane %v5501_v59, 2  ;;  %v8441_v59 = vld [vmem:[#allocation2 + $0x38] sm:$0xff] }
 0x3af   :  { %8144 = vmatmul.msk.bf16.gmra.mxu3 %vm962_vm3, %v5499_v50  ;;  %v10030_v18 = vadd.f32 %v3971_v10, %v3238_v38  ;;  %v6289_v10 = vrot.slane %v10007_v58, 3  ;;  %v5506_v50 = vrot.slane %v5504_v19, 3  ;;  %v10047_v19 = vld [vmem:[#allocation2 + $0x48] sm:$0xff] }
 0x3b0   :  { %v3973_v6 = vpop.f32.mrf.mxu0  ;;  %v1868_v60 = vpop.f32.mrf.mxu1 }
 0x3b1   :  { %11275 = vst [vmem:[#allocation15_spill] sm:$0xff] %v10030_v18  ;;  %v6290_v18 = vsel %vm6279_vm8, %v6287_v33, %v6289_v10  ;;  %v5507_v26 = vor.u32 %v5506_v50, %v5503_v56  ;;  %v5513_v56 = vshll.u32 %v10047_v19, 16 }
 0x3b2   :  { %v2312_v34 = vpop.f32.mrf.mxu2  ;;  %v3143_v45 = vpop.f32.mrf.mxu3 }
 0x3b3   :  { %v2411_v39 = vadd.f32 %v2312_v34, %v1866_v21  ;;  %7892 = vmatmul.msk.bf16.gmra.mxu1 %vm962_vm3, %v4097_v32  ;;  %v1869_v21 = vadd.f32 %v1868_v60, %v11278_v24  ;;  %v5508_v58 = vsel %vm5446_vm6, %v5498_v46, %v5507_v26  ;;  %v4926_v60 = vrot.slane %v10027_v13, 2  ;;  %v11280_v46 = vld [vmem:[#allocation33_spill] sm:$0xff] }
 0x3b5   :  { %v3239_v3 = vadd.f32 %v3140_v7, %v2411_v39  ;;  %v4098_v7 = vrot.slane %v8441_v59, 2 }
 0x3b7   :  { %8100 = vmatmul.msk.bf16.gmra.mxu2 %vm962_vm3, %v4925_v57  ;;  %v10041_v22 = vadd.f32 %v3973_v6, %v3239_v3  ;;  %v4099_v24 = vsel %vm4086_vm7, %v4096_v17, %v4098_v7 }
 0x3b8   :  { %v3976_v38 = vpop.f32.mrf.mxu0  ;;  %v1870_v36 = vpop.f32.mrf.mxu1 }
 0x3b9   :  { %11277 = vst [vmem:[#allocation17_spill] sm:$0xff] %v10041_v22  ;;  %v1871_v50 = vadd.f32 %v1870_v36, %v11280_v46  ;;  %v11282_v22 = vld [vmem:[#allocation35_spill] sm:$0xff] }
 0x3ba   :  { %v2315_v34 = vpop.f32.mrf.mxu2  ;;  %v3145_v32 = vpop.f32.mrf.mxu3 }
 0x3bb   :  { %8188 = vmatmul.msk.bf16.gmra.mxu0 %vm962_vm3, %v6290_v18  ;;  %v2412_v23 = vadd.f32 %v2315_v34, %v1869_v21  ;;  %v5510_v18 = vshrl.u32 %v10047_v19, 16 }
 0x3bd   :  { %v3240_v6 = vadd.f32 %v3143_v45, %v2412_v23  ;;  %v4927_v45 = vsel %vm4086_vm7, %v4924_v8, %v4926_v60  ;;  %v5512_v23 = vrot.slane %v5510_v18, 2  ;;  %v8442_v18 = vld [vmem:[#allocation2 + $0x40] sm:$0xff] }
 0x3bf   :  { %8145 = vmatmul.msk.bf16.gmra.mxu3 %vm962_vm3, %v5508_v58  ;;  %v10050_v39 = vadd.f32 %v3976_v38, %v3240_v6  ;;  %v6291_v38 = vrot.slane %v10027_v13, 3  ;;  %v5515_v58 = vrot.slane %v5513_v56, 3  ;;  %v10067_v56 = vld [vmem:[#allocation2 + $0x50] sm:$0xff] }
 0x3c0   :  { %v3978_v33 = vpop.f32.mrf.mxu0  ;;  %v1873_v57 = vpop.f32.mrf.mxu1 }
 0x3c1   :  { %11279 = vst [vmem:[#allocation19_spill] sm:$0xff] %v10050_v39  ;;  %v6292_v39 = vsel %vm6279_vm8, %v6289_v10, %v6291_v38  ;;  %v5516_v46 = vor.u32 %v5515_v58, %v5512_v23  ;;  %v5522_v23 = vshll.u32 %v10067_v56, 16 }
 0x3c2   :  { %v2317_v3 = vpop.f32.mrf.mxu2  ;;  %v3148_v21 = vpop.f32.mrf.mxu3 }
 0x3c3   :  { %v2413_v34 = vadd.f32 %v2317_v3, %v1871_v50  ;;  %7893 = vmatmul.msk.bf16.gmra.mxu1 %vm962_vm3, %v4099_v24  ;;  %v1874_v50 = vadd.f32 %v1873_v57, %v11282_v22  ;;  %v5517_v13 = vsel %vm5446_vm6, %v5507_v26, %v5516_v46  ;;  %v4928_v57 = vrot.slane %v10047_v19, 2  ;;  %v11284_v26 = vld [vmem:[#allocation37_spill] sm:$0xff] }
 0x3c5   :  { %v3241_v17 = vadd.f32 %v3145_v32, %v2413_v34  ;;  %v4100_v32 = vrot.slane %v8442_v18, 2 }
 0x3c7   :  { %8101 = vmatmul.msk.bf16.gmra.mxu2 %vm962_vm3, %v4927_v45  ;;  %v10061_v59 = vadd.f32 %v3978_v33, %v3241_v17  ;;  %v4101_v22 = vsel %vm4086_vm7, %v4098_v7, %v4100_v32 }
 0x3c8   :  { %v3981_v6 = vpop.f32.mrf.mxu0  ;;  %v1875_v36 = vpop.f32.mrf.mxu1 }
 0x3c9   :  { %11281 = vst [vmem:[#allocation21_spill] sm:$0xff] %v10061_v59  ;;  %v1876_v58 = vadd.f32 %v1875_v36, %v11284_v26  ;;  %v11286_v59 = vld [vmem:[#allocation40_spill] sm:$0xff] }
 0x3ca   :  { %v2320_v3 = vpop.f32.mrf.mxu2  ;;  %v3150_v24 = vpop.f32.mrf.mxu3 }
 0x3cb   :  { %8189 = vmatmul.msk.bf16.gmra.mxu0 %vm962_vm3, %v6292_v39  ;;  %v2414_v8 = vadd.f32 %v2320_v3, %v1874_v50  ;;  %v5519_v39 = vshrl.u32 %v10067_v56, 16 }
 0x3cd   :  { %v3242_v33 = vadd.f32 %v3148_v21, %v2414_v8  ;;  %v4929_v21 = vsel %vm4086_vm7, %v4926_v60, %v4928_v57  ;;  %v5521_v8 = vrot.slane %v5519_v39, 2  ;;  %v8443_v39 = vld [vmem:[#allocation2 + $0x48] sm:$0xff] }
 0x3cf   :  { %8146 = vmatmul.msk.bf16.gmra.mxu3 %vm962_vm3, %v5517_v13  ;;  %v10070_v34 = vadd.f32 %v3981_v6, %v3242_v33  ;;  %v6293_v6 = vrot.slane %v10047_v19, 3  ;;  %v5524_v13 = vrot.slane %v5522_v23, 3  ;;  %v10087_v23 = vld [vmem:[#allocation2 + $0x58] sm:$0xff] }
 0x3d0   :  { %v3983_v10 = vpop.f32.mrf.mxu0  ;;  %v1878_v45 = vpop.f32.mrf.mxu1 }
 0x3d1   :  { %11283 = vst [vmem:[#allocation23_spill] sm:$0xff] %v10070_v34  ;;  %v6294_v34 = vsel %vm6279_vm8, %v6291_v38, %v6293_v6  ;;  %v5525_v26 = vor.u32 %v5524_v13, %v5521_v8  ;;  %v5531_v8 = vshll.u32 %v10087_v23, 16 }
 0x3d2   :  { %v2322_v17 = vpop.f32.mrf.mxu2  ;;  %v3153_v50 = vpop.f32.mrf.mxu3 }
 0x3d3   :  { %v2415_v3 = vadd.f32 %v2322_v17, %v1876_v58  ;;  %7894 = vmatmul.msk.bf16.gmra.mxu1 %vm962_vm3, %v4101_v22  ;;  %v1879_v58 = vadd.f32 %v1878_v45, %v11286_v59  ;;  %v5526_v19 = vsel %vm5446_vm6, %v5516_v46, %v5525_v26  ;;  %v4930_v45 = vrot.slane %v10067_v56, 2  ;;  %v11288_v46 = vld [vmem:[#allocation43_spill] sm:$0xff] }
 0x3d5   :  { %v3243_v7 = vadd.f32 %v3150_v24, %v2415_v3  ;;  %v4102_v24 = vrot.slane %v8443_v39, 2 }
 0x3d7   :  { %8102 = vmatmul.msk.bf16.gmra.mxu2 %vm962_vm3, %v4929_v21  ;;  %v10081_v18 = vadd.f32 %v3983_v10, %v3243_v7  ;;  %v4103_v59 = vsel %vm4086_vm7, %v4100_v32, %v4102_v24 }
 0x3d8   :  { %v3986_v33 = vpop.f32.mrf.mxu0  ;;  %v1880_v36 = vpop.f32.mrf.mxu1 }
 0x3d9   :  { %11285 = vst [vmem:[#allocation25_spill] sm:$0xff] %v10081_v18  ;;  %v1881_v13 = vadd.f32 %v1880_v36, %v11288_v46  ;;  %v11290_v18 = vld [vmem:[#allocation46_spill] sm:$0xff] }
 0x3da   :  { %v2325_v17 = vpop.f32.mrf.mxu2  ;;  %v3155_v22 = vpop.f32.mrf.mxu3 }
 0x3db   :  { %8190 = vmatmul.msk.bf16.gmra.mxu0 %vm962_vm3, %v6294_v34  ;;  %v2416_v60 = vadd.f32 %v2325_v17, %v1879_v58  ;;  %v5528_v34 = vshrl.u32 %v10087_v23, 16 }
 0x3dd   :  { %v3244_v10 = vadd.f32 %v3153_v50, %v2416_v60  ;;  %v4931_v50 = vsel %vm4086_vm7, %v4928_v57, %v4930_v45  ;;  %v5530_v60 = vrot.slane %v5528_v34, 2  ;;  %v8444_v34 = vld [vmem:[#allocation2 + $0x50] sm:$0xff] }
 0x3df   :  { %8147 = vmatmul.msk.bf16.gmra.mxu3 %vm962_vm3, %v5526_v19  ;;  %v10090_v3 = vadd.f32 %v3986_v33, %v3244_v10  ;;  %v6295_v33 = vrot.slane %v10067_v56, 3  ;;  %v5533_v19 = vrot.slane %v5531_v8, 3  ;;  %v10107_v8 = vld [vmem:[#allocation2 + $0x60] sm:$0xff] }
 0x3e0   :  { %v3988_v38 = vpop.f32.mrf.mxu0  ;;  %v1883_v21 = vpop.f32.mrf.mxu1 }
 0x3e1   :  { %11287 = vst [vmem:[#allocation27_spill] sm:$0xff] %v10090_v3  ;;  %v6296_v3 = vsel %vm6279_vm8, %v6293_v6, %v6295_v33  ;;  %v5534_v46 = vor.u32 %v5533_v19, %v5530_v60  ;;  %v5540_v60 = vshll.u32 %v10107_v8, 16 }
 0x3e2   :  { %v2327_v7 = vpop.f32.mrf.mxu2  ;;  %v3158_v58 = vpop.f32.mrf.mxu3 }
 0x3e3   :  { %v2417_v17 = vadd.f32 %v2327_v7, %v1881_v13  ;;  %7895 = vmatmul.msk.bf16.gmra.mxu1 %vm962_vm3, %v4103_v59  ;;  %v1884_v13 = vadd.f32 %v1883_v21, %v11290_v18  ;;  %v5535_v56 = vsel %vm5446_vm6, %v5525_v26, %v5534_v46  ;;  %v4932_v21 = vrot.slane %v10087_v23, 2 }
 0x3e5   :  { %v3245_v32 = vadd.f32 %v3155_v22, %v2417_v17  ;;  %v4104_v22 = vrot.slane %v8444_v34, 2 }
 0x3e7   :  { %8103 = vmatmul.msk.bf16.gmra.mxu2 %vm962_vm3, %v4931_v50  ;;  %v10101_v39 = vadd.f32 %v3988_v38, %v3245_v32  ;;  %v4105_v18 = vsel %vm4086_vm7, %v4102_v24, %v4104_v22  ;;  %v6297_v32 = vrot.slane %v10087_v23, 3 }
 0x3e8   :  { %v3991_v10 = vpop.f32.mrf.mxu0  ;;  %v1885_v36 = vpop.f32.mrf.mxu1 }
 0x3e9   :  { %11289 = vst [vmem:[#allocation29_spill] sm:$0xff] %v10101_v39  ;;  %v5542_v36 = vrot.slane %v5540_v60, 3  ;;  %v6298_v24 = vsel %vm6279_vm8, %v6295_v33, %v6297_v32  ;;  %v10129_v33 = vld [vmem:[%s11138_s3] ss:$0 sm:$0xff] }
 0x3ea   :  { %v2330_v7 = vpop.f32.mrf.mxu2  ;;  %v3160_v59 = vpop.f32.mrf.mxu3 }
 0x3eb   :  { %8191 = vmatmul.msk.bf16.gmra.mxu0 %vm962_vm3, %v6296_v3  ;;  %v2418_v57 = vadd.f32 %v2330_v7, %v1884_v13  ;;  %v5537_v3 = vshrl.u32 %v10107_v8, 16 }
 0x3ed   :  { %v3246_v38 = vadd.f32 %v3158_v58, %v2418_v57  ;;  %v4933_v58 = vsel %vm4086_vm7, %v4930_v45, %v4932_v21 }
 0x3ef   :  { %8148 = vmatmul.msk.bf16.gmra.mxu3 %vm962_vm3, %v5535_v56  ;;  %v10110_v17 = vadd.f32 %v3991_v10, %v3246_v38  ;;  %v5539_v10 = vrot.slane %v5537_v3, 2 }
 0x3f0   :  { %v3993_v6 = vpop.f32.mrf.mxu0  ;;  %v4313_v50 = vpop.f32.mrf.mxu1 }
 0x3f1   :  { %11291 = vst [vmem:[#allocation31_spill] sm:$0xff] %v10110_v17  ;;  %v5543_v59 = vor.u32 %v5542_v36, %v5539_v10  ;;  %v4527_v57 = vadd.f32 %v4313_v50, %v9378_v2  ;;  %v8445_v6 = vld [vmem:[#allocation2 + $0x58] sm:$0xff]  ;;  %v10134_v2 = vld [vmem:[%s11139_s4] ss:$0 sm:$0xff] }
 0x3f2   :  { %v2332_v26 = vpop.f32.mrf.mxu2  ;;  %v5974_v19 = vpop.f32.mrf.mxu3  ;;  %v4106_v23 = vrot.slane %v8445_v6, 2 }
 0x3f3   :  { %7896 = vmatmul.msk.bf16.gmra.mxu1 %vm962_vm3, %v4105_v18  ;;  %v5544_v45 = vsel %vm5446_vm6, %v5534_v46, %v5543_v59  ;;  %v10124_v18 = vld [vmem:[#allocation2 + $0x68] sm:$0xff] }
 0x3f4   :  { %v4107_v26 = vsel %vm4086_vm7, %v4104_v22, %v4106_v23  ;;  %v5549_v10 = vshll.u32 %v10124_v18, 16  ;;  %v6299_v22 = vrot.slane %v10107_v8, 3 }
 0x3f7   :  { %8104 = vmatmul.msk.bf16.gmra.mxu2 %vm962_vm3, %v4933_v58  ;;  %v4934_v58 = vrot.slane %v10107_v8, 2 }
 0x3f8   :  { %v6506_v13 = vpop.f32.mrf.mxu0  ;;  %v4315_v7 = vpop.f32.mrf.mxu1 }
 0x3fa   :  { %v5141_v56 = vpop.f32.mrf.mxu2  ;;  %v5976_v34 = vpop.f32.mrf.mxu3 }
 0x3fb   :  { %8192 = vmatmul.msk.bf16.gmra.mxu0 %vm962_vm3, %v6298_v24  ;;  %v5355_v38 = vadd.f32 %v5141_v56, %v4527_v57 }
 0x3fd   :  { %v6188_v3 = vadd.f32 %v5974_v19, %v5355_v38  ;;  %v5546_v19 = vshrl.u32 %v10124_v18, 16 }
 0x3ff   :  { %v6720_v60 = vadd.f32 %v6506_v13, %v6188_v3  ;;  %8149 = vmatmul.msk.bf16.gmra.mxu3 %vm962_vm3, %v5544_v45  ;;  %v4528_v13 = vadd.f32 %v4315_v7, %v9385_v14  ;;  %v4935_v45 = vsel %vm4086_vm7, %v4932_v21, %v4934_v58  ;;  %v5548_v6 = vrot.slane %v5546_v19, 2 }
 0x400   :  { %v6508_v50 = vpop.f32.mrf.mxu0  ;;  %v4318_v46 = vpop.f32.mrf.mxu1  ;;  %v5551_v3 = vrot.slane %v5549_v10, 3 }
 0x401   :  { %v6809_v36 = vmul.f32 %v10129_v33, %v6720_v60  ;;  %v6300_v60 = vsel %vm6279_vm8, %v6297_v32, %v6299_v22  ;;  %v4529_v8 = vadd.f32 %v4318_v46, %v9395_v29 }
 0x402   :  { %v5143_v24 = vpop.f32.mrf.mxu2  ;;  %v5979_v57 = vpop.f32.mrf.mxu3 }
 0x403   :  { %v6898_v56 = vadd.f32 %v10134_v2, %v6809_v36  ;;  %v5356_v38 = vadd.f32 %v5143_v24, %v4528_v13  ;;  %7897 = vmatmul.msk.bf16.gmra.mxu1 %vm962_vm3, %v4107_v26  ;;  %v5552_v26 = vor.u32 %v5551_v3, %v5548_v6  ;;  %v10157_v24 = vld [vmem:[#allocation2 + $0x70] sm:$0xff]  ;;  %v4936_v6 = vrot.slane %v10124_v18, 2 }
 0x404   :  { %v5558_v3 = vshll.u32 %v10157_v24, 16 }
 0x405   :  { %v6983_v17 = vmax.f32 %v6898_v56, 0.0  ;;  %v6189_v39 = vadd.f32 %v5976_v34, %v5356_v38 }
 0x407   :  { %7068 = vst [vmem:[%s11140_s5] sm:$0xff] %v6983_v17  ;;  %v6721_v14 = vadd.f32 %v6508_v50, %v6189_v39  ;;  %8105 = vmatmul.msk.bf16.gmra.mxu2 %vm962_vm3, %v4935_v45  ;;  %v5553_v39 = vsel %vm5446_vm6, %v5543_v59, %v5552_v26  ;;  %v8446_v17 = vld [vmem:[#allocation2 + $0x60] sm:$0xff]  ;;  %v5555_v59 = vshrl.u32 %v10157_v24, 16 }
 0x408   :  { %v6511_v7 = vpop.f32.mrf.mxu0  ;;  %v4320_v36 = vpop.f32.mrf.mxu1  ;;  %v4108_v50 = vrot.slane %v8446_v17, 2 }
 0x409   :  { %v6810_v21 = vmul.f32 %v10129_v33, %v6721_v14 }
 0x40a   :  { %v5146_v19 = vpop.f32.mrf.mxu2  ;;  %v5981_v10 = vpop.f32.mrf.mxu3  ;;  %v4109_v45 = vsel %vm4086_vm7, %v4106_v23, %v4108_v50  ;;  %v6301_v23 = vrot.slane %v10124_v18, 3 }
 0x40b   :  { %v6899_v34 = vadd.f32 %v10134_v2, %v6810_v21  ;;  %8193 = vmatmul.msk.bf16.gmra.mxu0 %vm962_vm3, %v6300_v60  ;;  %v5357_v13 = vadd.f32 %v5146_v19, %v4529_v8  ;;  %v4937_v19 = vsel %vm4086_vm7, %v4934_v58, %v4936_v6 }
 0x40d   :  { %v6984_v32 = vmax.f32 %v6899_v34, 0.0  ;;  %v6190_v56 = vadd.f32 %v5979_v57, %v5357_v13  ;;  %v4530_v57 = vadd.f32 %v4320_v36, %v9401_v15  ;;  %v5557_v34 = vrot.slane %v5555_v59, 2 }
 0x40e   :  { %v5560_v13 = vrot.slane %v5558_v3, 3 }
 0x40f   :  { %7069 = vst [vmem:[%s11140_s5 + $0x8] sm:$0xff] %v6984_v32  ;;  %v6722_v29 = vadd.f32 %v6511_v7, %v6190_v56  ;;  %8150 = vmatmul.msk.bf16.gmra.mxu3 %vm962_vm3, %v5553_v39  ;;  %v6302_v32 = vsel %vm6279_vm8, %v6299_v22, %v6301_v23 }
 0x410   :  { %v6513_v46 = vpop.f32.mrf.mxu0  ;;  %v4323_v38 = vpop.f32.mrf.mxu1 }
 0x411   :  { %v6811_v14 = vmul.f32 %v10129_v33, %v6722_v29  ;;  %v5561_v29 = vor.u32 %v5560_v13, %v5557_v34  ;;  %v4531_v18 = vadd.f32 %v4323_v38, %v9411_v12  ;;  %v4938_v34 = vrot.slane %v10157_v24, 2 }
 0x412   :  { %v5148_v60 = vpop.f32.mrf.mxu2  ;;  %v5984_v21 = vpop.f32.mrf.mxu3 }
 0x413   :  { %v6900_v7 = vadd.f32 %v10134_v2, %v6811_v14  ;;  %v5358_v8 = vadd.f32 %v5148_v60, %v4530_v57  ;;  %7898 = vmatmul.msk.bf16.gmra.mxu1 %vm962_vm3, %v4109_v45  ;;  %v8447_v14 = vld [vmem:[#allocation2 + $0x68] sm:$0xff]  ;;  %v10183_v60 = vld [vmem:[#allocation2 + $0x78] sm:$0xff] }
 0x414   :  { %v4110_v57 = vrot.slane %v8447_v14, 2  ;;  %v5567_v13 = vshll.u32 %v10183_v60, 16 }
 0x415   :  { %v6985_v39 = vmax.f32 %v6900_v7, 0.0  ;;  %v6191_v17 = vadd.f32 %v5981_v10, %v5358_v8 }
 0x417   :  { %7070 = vst [vmem:[%s11140_s5 + $0x10] sm:$0xff] %v6985_v39  ;;  %v6723_v15 = vadd.f32 %v6513_v46, %v6191_v17  ;;  %8106 = vmatmul.msk.bf16.gmra.mxu2 %vm962_vm3, %v4937_v19  ;;  %v5562_v46 = vsel %vm5446_vm6, %v5552_v26, %v5561_v29  ;;  %v4111_v19 = vsel %vm4086_vm7, %v4108_v50, %v4110_v57  ;;  %v5564_v26 = vshrl.u32 %v10183_v60, 16 }
 0x418   :  { %v6516_v36 = vpop.f32.mrf.mxu0  ;;  %v4325_v56 = vpop.f32.mrf.mxu1  ;;  %v6303_v50 = vrot.slane %v10157_v24, 3 }
 0x419   :  { %v6812_v58 = vmul.f32 %v10129_v33, %v6723_v15 }
 0x41a   :  { %v5151_v45 = vpop.f32.mrf.mxu2  ;;  %v5986_v59 = vpop.f32.mrf.mxu3 }
 0x41b   :  { %v6901_v10 = vadd.f32 %v10134_v2, %v6812_v58  ;;  %8194 = vmatmul.msk.bf16.gmra.mxu0 %vm962_vm3, %v6302_v32  ;;  %v5359_v3 = vadd.f32 %v5151_v45, %v4531_v18  ;;  %v4939_v58 = vsel %vm4086_vm7, %v4936_v6, %v4938_v34  ;;  %v5566_v18 = vrot.slane %v5564_v26, 2  ;;  %v8448_v26 = vld [vmem:[#allocation2 + $0x70] sm:$0xff] }
 0x41c   :  { %v5569_v45 = vrot.slane %v5567_v13, 3  ;;  %v4112_v13 = vrot.slane %v8448_v26, 2 }
 0x41d   :  { %v6986_v22 = vmax.f32 %v6901_v10, 0.0  ;;  %v6192_v7 = vadd.f32 %v5984_v21, %v5359_v3  ;;  %v4532_v21 = vadd.f32 %v4325_v56, %v9417_v63 }
 0x41f   :  { %7071 = vst [vmem:[%s11140_s5 + $0x18] sm:$0xff] %v6986_v22  ;;  %v6724_v12 = vadd.f32 %v6516_v36, %v6192_v7  ;;  %8151 = vmatmul.msk.bf16.gmra.mxu3 %vm962_vm3, %v5562_v46  ;;  %v6304_v46 = vsel %vm6279_vm8, %v6301_v23, %v6303_v50  ;;  %v5570_v22 = vor.u32 %v5569_v45, %v5566_v18 }
 0x420   :  { %v6518_v38 = vpop.f32.mrf.mxu0  ;;  %v4328_v8 = vpop.f32.mrf.mxu1 }
 0x421   :  { %v6813_v39 = vmul.f32 %v10129_v33, %v6724_v12  ;;  %v4533_v24 = vadd.f32 %v4328_v8, %v9427_v42 }
 0x422   :  { %v5153_v17 = vpop.f32.mrf.mxu2  ;;  %v5989_v15 = vpop.f32.mrf.mxu3 }
 0x423   :  { %v6902_v36 = vadd.f32 %v10134_v2, %v6813_v39  ;;  %v5360_v32 = vadd.f32 %v5153_v17, %v4532_v21  ;;  %7899 = vmatmul.msk.bf16.gmra.mxu1 %vm962_vm3, %v4111_v19  ;;  %v10209_v39 = vld [vmem:[#allocation2 + $0x80] sm:$0xff] }
 0x425   :  { %v6987_v10 = vmax.f32 %v6902_v36, 0.0  ;;  %v6193_v3 = vadd.f32 %v5986_v59, %v5360_v32  ;;  %v4113_v36 = vsel %vm4086_vm7, %v4110_v57, %v4112_v13  ;;  %v4940_v32 = vrot.slane %v10183_v60, 2 }
 0x426   :  { %v6305_v57 = vrot.slane %v10183_v60, 3 }
 0x427   :  { %7072 = vst [vmem:[%s11140_s5 + $0x20] sm:$0xff] %v6987_v10  ;;  %v6725_v63 = vadd.f32 %v6518_v38, %v6193_v3  ;;  %8107 = vmatmul.msk.bf16.gmra.mxu2 %vm962_vm3, %v4939_v58  ;;  %v5571_v38 = vsel %vm5446_vm6, %v5561_v29, %v5570_v22  ;;  %v5573_v29 = vshrl.u32 %v10209_v39, 16  ;;  %v5576_v58 = vshll.u32 %v10209_v39, 16 }
 0x428   :  { %v6521_v56 = vpop.f32.mrf.mxu0  ;;  %v4330_v14 = vpop.f32.mrf.mxu1 }
 0x429   :  { %v6814_v6 = vmul.f32 %v10129_v33, %v6725_v63 }
 0x42a   :  { %v5156_v7 = vpop.f32.mrf.mxu2  ;;  %v5991_v12 = vpop.f32.mrf.mxu3 }
 0x42b   :  { %v6903_v59 = vadd.f32 %v10134_v2, %v6814_v6  ;;  %8195 = vmatmul.msk.bf16.gmra.mxu0 %vm962_vm3, %v6304_v46  ;;  %v5361_v19 = vadd.f32 %v5156_v7, %v4533_v24  ;;  %v5575_v46 = vrot.slane %v5573_v29, 2  ;;  %v5578_v6 = vrot.slane %v5576_v58, 3  ;;  %v10235_v29 = vld [vmem:[#allocation2 + $0x88] sm:$0xff] }
 0x42d   :  { %v6988_v23 = vmax.f32 %v6903_v59, 0.0  ;;  %v6194_v21 = vadd.f32 %v5989_v15, %v5361_v19  ;;  %v4534_v15 = vadd.f32 %v4330_v14, %v9433_v52  ;;  %v6306_v59 = vsel %vm6279_vm8, %v6303_v50, %v6305_v57 }
 0x42f   :  { %7073 = vst [vmem:[%s11140_s5 + $0x28] sm:$0xff] %v6988_v23  ;;  %v6726_v42 = vadd.f32 %v6521_v56, %v6194_v21  ;;  %8152 = vmatmul.msk.bf16.gmra.mxu3 %vm962_vm3, %v5571_v38  ;;  %v4941_v56 = vsel %vm4086_vm7, %v4938_v34, %v4940_v32  ;;  %v5579_v38 = vor.u32 %v5578_v6, %v5575_v46 }
 0x430   :  { %v6523_v8 = vpop.f32.mrf.mxu0  ;;  %v4333_v17 = vpop.f32.mrf.mxu1 }
 0x431   :  { %v6815_v18 = vmul.f32 %v10129_v33, %v6726_v42  ;;  %v4535_v60 = vadd.f32 %v4333_v17, %v9443_v16  ;;  %v5580_v42 = vsel %vm5446_vm6, %v5570_v22, %v5579_v38  ;;  %v5582_v22 = vshrl.u32 %v10235_v29, 16 }
 0x432   :  { %v5158_v45 = vpop.f32.mrf.mxu2  ;;  %v5994_v10 = vpop.f32.mrf.mxu3 }
 0x433   :  { %v6904_v3 = vadd.f32 %v10134_v2, %v6815_v18  ;;  %v5362_v63 = vadd.f32 %v5158_v45, %v4534_v15  ;;  %7900 = vmatmul.msk.bf16.gmra.mxu1 %vm962_vm3, %v4113_v36  ;;  %v4942_v45 = vrot.slane %v10209_v39, 2 }
 0x435   :  { %v6989_v24 = vmax.f32 %v6904_v3, 0.0  ;;  %v6195_v7 = vadd.f32 %v5991_v12, %v5362_v63  ;;  %v5585_v3 = vshll.u32 %v10235_v29, 16 }
 0x437   :  { %7074 = vst [vmem:[%s11140_s5 + $0x30] sm:$0xff] %v6989_v24  ;;  %v6727_v52 = vadd.f32 %v6523_v8, %v6195_v7  ;;  %8108 = vmatmul.msk.bf16.gmra.mxu2 %vm962_vm3, %v4941_v56  ;;  %v8449_v8 = vld [vmem:[#allocation2 + $0x78] sm:$0xff]  ;;  %v4943_v7 = vsel %vm4086_vm7, %v4940_v32, %v4942_v45 }
 0x438   :  { %v6526_v14 = vpop.f32.mrf.mxu0  ;;  %v4335_v19 = vpop.f32.mrf.mxu1  ;;  %v4114_v36 = vrot.slane %v8449_v8, 2 }
 0x439   :  { %v6816_v34 = vmul.f32 %v10129_v33, %v6727_v52  ;;  %v5584_v52 = vrot.slane %v5582_v22, 2 }
 0x43a   :  { %v5161_v26 = vpop.f32.mrf.mxu2  ;;  %v5996_v23 = vpop.f32.mrf.mxu3  ;;  %v4115_v15 = vsel %vm4086_vm7, %v4112_v13, %v4114_v36  ;;  %v6307_v13 = vrot.slane %v10209_v39, 3 }
 0x43b   :  { %v6905_v12 = vadd.f32 %v10134_v2, %v6816_v34  ;;  %8196 = vmatmul.msk.bf16.gmra.mxu0 %vm962_vm3, %v6306_v59  ;;  %v5363_v21 = vadd.f32 %v5161_v26, %v4535_v60 }
 0x43c   :  { %v6308_v60 = vsel %vm6279_vm8, %v6305_v57, %v6307_v13 }
 0x43d   :  { %v6990_v50 = vmax.f32 %v6905_v12, 0.0  ;;  %v6196_v58 = vadd.f32 %v5994_v10, %v5363_v21  ;;  %v4536_v10 = vadd.f32 %v4335_v19, %v9449_v47 }
 0x43f   :  { %7075 = vst [vmem:[%s11140_s5 + $0x38] sm:$0xff] %v6990_v50  ;;  %v6728_v16 = vadd.f32 %v6526_v14, %v6196_v58  ;;  %8153 = vmatmul.msk.bf16.gmra.mxu3 %vm962_vm3, %v5580_v42  ;;  %v5587_v14 = vrot.slane %v5585_v3, 3  ;;  %v8450_v58 = vld [vmem:[#allocation2 + $0x80] sm:$0xff] }
 0x440   :  { %v6528_v17 = vpop.f32.mrf.mxu0  ;;  %v4338_v18 = vpop.f32.mrf.mxu1 }
 0x441   :  { %v6817_v63 = vmul.f32 %v10129_v33, %v6728_v16  ;;  %v5588_v12 = vor.u32 %v5587_v14, %v5584_v52  ;;  %v4537_v39 = vadd.f32 %v4338_v18, %v9459_v37  ;;  %v4116_v16 = vrot.slane %v8450_v58, 2  ;;  %v8451_v58 = vld [vmem:[#allocation2 + $0x88] sm:$0xff] }
 0x442   :  { %v5163_v56 = vpop.f32.mrf.mxu2  ;;  %v5999_v46 = vpop.f32.mrf.mxu3 }
 0x443   :  { %v6906_v6 = vadd.f32 %v10134_v2, %v6817_v63  ;;  %v5364_v24 = vadd.f32 %v5163_v56, %v4536_v10  ;;  %7901 = vmatmul.msk.bf16.gmra.mxu1 %vm962_vm3, %v4115_v15  ;;  %v5589_v50 = vsel %vm5446_vm6, %v5579_v38, %v5588_v12  ;;  %v4117_v3 = vsel %vm4086_vm7, %v4114_v36, %v4116_v16 }
 0x444   :  { %v4944_v63 = vrot.slane %v10235_v29, 2  ;;  %v6309_v36 = vrot.slane %v10235_v29, 3 }
 0x445   :  { %v6991_v59 = vmax.f32 %v6906_v6, 0.0  ;;  %v6197_v34 = vadd.f32 %v5996_v23, %v5364_v24 }
 0x446   :  { %v4945_v14 = vsel %vm4086_vm7, %v4942_v45, %v4944_v63 }
 0x447   :  { %7076 = vst [vmem:[%s11140_s5 + $0x40] sm:$0xff] %v6991_v59  ;;  %v6729_v47 = vadd.f32 %v6528_v17, %v6197_v34  ;;  %8109 = vmatmul.msk.bf16.gmra.mxu2 %vm962_vm3, %v4943_v7  ;;  %v10261_v17 = vld [vmem:[#allocation2 + $0x90] sm:$0xff] }
 0x448   :  { %v6531_v19 = vpop.f32.mrf.mxu0  ;;  %v4340_v26 = vpop.f32.mrf.mxu1  ;;  %v5591_v38 = vshrl.u32 %v10261_v17, 16  ;;  %v5594_v10 = vshll.u32 %v10261_v17, 16 }
 0x449   :  { %v6818_v32 = vmul.f32 %v10129_v33, %v6729_v47 }
 0x44a   :  { %v5166_v21 = vpop.f32.mrf.mxu2  ;;  %v6001_v42 = vpop.f32.mrf.mxu3  ;;  %v5593_v59 = vrot.slane %v5591_v38, 2  ;;  %v5596_v34 = vrot.slane %v5594_v10, 3  ;;  %v4946_v38 = vrot.slane %v10261_v17, 2 }
 0x44b   :  { %v6907_v23 = vadd.f32 %v10134_v2, %v6818_v32  ;;  %8197 = vmatmul.msk.bf16.gmra.mxu0 %vm962_vm3, %v6308_v60  ;;  %v5365_v8 = vadd.f32 %v5166_v21, %v4537_v39 }
 0x44c   :  { %v5597_v39 = vor.u32 %v5596_v34, %v5593_v59 }
 0x44d   :  { %v6992_v57 = vmax.f32 %v6907_v23, 0.0  ;;  %v6198_v15 = vadd.f32 %v5999_v46, %v5365_v8  ;;  %v4538_v46 = vadd.f32 %v4340_v26, %v9465_v41  ;;  %v6310_v26 = vsel %vm6279_vm8, %v6307_v13, %v6309_v36 }
 0x44f   :  { %7077 = vst [vmem:[%s11140_s5 + $0x48] sm:$0xff] %v6992_v57  ;;  %v6730_v37 = vadd.f32 %v6531_v19, %v6198_v15  ;;  %8154 = vmatmul.msk.bf16.gmra.mxu3 %vm962_vm3, %v5589_v50  ;;  %v5598_v50 = vsel %vm5446_vm6, %v5588_v12, %v5597_v39  ;;  %v4118_v57 = vrot.slane %v8451_v58, 2  ;;  %v10287_v15 = vld [vmem:[#allocation2 + $0x98] sm:$0xff]  ;;  %v10313_v58 = vld [vmem:[#allocation2 + $0xa0] sm:$0xff] }
 0x450   :  { %v6533_v18 = vpop.f32.mrf.mxu0  ;;  %v4343_v22 = vpop.f32.mrf.mxu1  ;;  %v5600_v12 = vshrl.u32 %v10287_v15, 16  ;;  %v5603_v10 = vshll.u32 %v10287_v15, 16 }
 0x451   :  { %v6819_v56 = vmul.f32 %v10129_v33, %v6730_v37  ;;  %v4539_v29 = vadd.f32 %v4343_v22, %v9475_v5 }
 0x452   :  { %v5168_v6 = vpop.f32.mrf.mxu2  ;;  %v6004_v24 = vpop.f32.mrf.mxu3  ;;  %v5602_v59 = vrot.slane %v5600_v12, 2  ;;  %v5605_v34 = vrot.slane %v5603_v10, 3 }
 0x453   :  { %v6908_v7 = vadd.f32 %v10134_v2, %v6819_v56  ;;  %v5366_v52 = vadd.f32 %v5168_v6, %v4538_v46  ;;  %7902 = vmatmul.msk.bf16.gmra.mxu1 %vm962_vm3, %v4117_v3  ;;  %v4119_v3 = vsel %vm4086_vm7, %v4116_v16, %v4118_v57  ;;  %v6311_v16 = vrot.slane %v10261_v17, 3 }
 0x455   :  { %v6993_v47 = vmax.f32 %v6908_v7, 0.0  ;;  %v6199_v19 = vadd.f32 %v6001_v42, %v5366_v52 }
 0x457   :  { %7078 = vst [vmem:[%s11140_s5 + $0x50] sm:$0xff] %v6993_v47  ;;  %v6731_v41 = vadd.f32 %v6533_v18, %v6199_v19  ;;  %8110 = vmatmul.msk.bf16.gmra.mxu2 %vm962_vm3, %v4945_v14  ;;  %v4947_v14 = vsel %vm4086_vm7, %v4944_v63, %v4946_v38 }
 0x458   :  { %v6536_v60 = vpop.f32.mrf.mxu0  ;;  %v4345_v32 = vpop.f32.mrf.mxu1 }
 0x459   :  { %v6820_v45 = vmul.f32 %v10129_v33, %v6731_v41  ;;  %v4540_v46 = vadd.f32 %v4345_v32, %v9481_v48  ;;  %v5606_v32 = vor.u32 %v5605_v34, %v5602_v59 }
 0x45a   :  { %v5171_v21 = vpop.f32.mrf.mxu2  ;;  %v6006_v23 = vpop.f32.mrf.mxu3 }
 0x45b   :  { %v6909_v42 = vadd.f32 %v10134_v2, %v6820_v45  ;;  %8198 = vmatmul.msk.bf16.gmra.mxu0 %vm962_vm3, %v6310_v26  ;;  %v5367_v8 = vadd.f32 %v5171_v21, %v4539_v29 }
 0x45d   :  { %v6994_v13 = vmax.f32 %v6909_v42, 0.0  ;;  %v6200_v37 = vadd.f32 %v6004_v24, %v5367_v8  ;;  %v5607_v42 = vsel %vm5446_vm6, %v5597_v39, %v5606_v32  ;;  %v8452_v8 = vld [vmem:[#allocation2 + $0x90] sm:$0xff]  ;;  %v5609_v39 = vshrl.u32 %v10313_v58, 16 }
 0x45f   :  { %7079 = vst [vmem:[%s11140_s5 + $0x58] sm:$0xff] %v6994_v13  ;;  %v6732_v5 = vadd.f32 %v6536_v60, %v6200_v37  ;;  %8155 = vmatmul.msk.bf16.gmra.mxu3 %vm962_vm3, %v5598_v50  ;;  %v6312_v60 = vsel %vm6279_vm8, %v6309_v36, %v6311_v16  ;;  %v4120_v50 = vrot.slane %v8452_v8, 2 }
 0x460   :  { %v6538_v18 = vpop.f32.mrf.mxu0  ;;  %v4348_v22 = vpop.f32.mrf.mxu1 }
 0x461   :  { %v6821_v56 = vmul.f32 %v10129_v33, %v6732_v5  ;;  %v4541_v17 = vadd.f32 %v4348_v22, %v9491_v54  ;;  %v4948_v22 = vrot.slane %v10287_v15, 2 }
 0x462   :  { %v5173_v6 = vpop.f32.mrf.mxu2  ;;  %v6009_v24 = vpop.f32.mrf.mxu3 }
 0x463   :  { %v6910_v7 = vadd.f32 %v10134_v2, %v6821_v56  ;;  %v5368_v52 = vadd.f32 %v5173_v6, %v4540_v46  ;;  %7903 = vmatmul.msk.bf16.gmra.mxu1 %vm962_vm3, %v4119_v3  ;;  %v5612_v3 = vshll.u32 %v10313_v58, 16 }
 0x465   :  { %v6995_v47 = vmax.f32 %v6910_v7, 0.0  ;;  %v6201_v19 = vadd.f32 %v6006_v23, %v5368_v52  ;;  %v4949_v7 = vsel %vm4086_vm7, %v4946_v38, %v4948_v22  ;;  %v5611_v52 = vrot.slane %v5609_v39, 2 }
 0x467   :  { %7080 = vst [vmem:[%s11140_s5 + $0x60] sm:$0xff] %v6995_v47  ;;  %v6733_v48 = vadd.f32 %v6538_v18, %v6201_v19  ;;  %8111 = vmatmul.msk.bf16.gmra.mxu2 %vm962_vm3, %v4947_v14  ;;  %v4121_v18 = vsel %vm4086_vm7, %v4118_v57, %v4120_v50  ;;  %v6313_v57 = vrot.slane %v10287_v15, 3  ;;  %v5614_v14 = vrot.slane %v5612_v3, 3 }
 0x468   :  { %v6541_v41 = vpop.f32.mrf.mxu0  ;;  %v4350_v26 = vpop.f32.mrf.mxu1 }
 0x469   :  { %v6822_v63 = vmul.f32 %v10129_v33, %v6733_v48  ;;  %v4542_v10 = vadd.f32 %v4350_v26, %v9497_v31  ;;  %v6314_v19 = vsel %vm6279_vm8, %v6311_v16, %v6313_v57 }
 0x46a   :  { %v5176_v45 = vpop.f32.mrf.mxu2  ;;  %v6011_v29 = vpop.f32.mrf.mxu3 }
 0x46b   :  { %v6911_v21 = vadd.f32 %v10134_v2, %v6822_v63  ;;  %8199 = vmatmul.msk.bf16.gmra.mxu0 %vm962_vm3, %v6312_v60  ;;  %v5369_v23 = vadd.f32 %v5176_v45, %v4541_v17 }
 0x46d   :  { %v6996_v36 = vmax.f32 %v6911_v21, 0.0  ;;  %v6202_v13 = vadd.f32 %v6009_v24, %v5369_v23  ;;  %v10339_v23 = vld [vmem:[#allocation2 + $0xa8] sm:$0xff] }
 0x46f   :  { %7081 = vst [vmem:[%s11140_s5 + $0x68] sm:$0xff] %v6996_v36  ;;  %v6734_v54 = vadd.f32 %v6541_v41, %v6202_v13  ;;  %8156 = vmatmul.msk.bf16.gmra.mxu3 %vm962_vm3, %v5607_v42  ;;  %v5615_v41 = vor.u32 %v5614_v14, %v5611_v52 }
 0x470   :  { %v6543_v37 = vpop.f32.mrf.mxu0  ;;  %v4353_v5 = vpop.f32.mrf.mxu1 }
 0x471   :  { %v6823_v12 = vmul.f32 %v10129_v33, %v6734_v54  ;;  %v4543_v15 = vadd.f32 %v4353_v5, %v9507_v51  ;;  %v5616_v45 = vsel %vm5446_vm6, %v5606_v32, %v5615_v41  ;;  %v4950_v54 = vrot.slane %v10313_v58, 2 }
 0x472   :  { %v5178_v56 = vpop.f32.mrf.mxu2  ;;  %v6014_v46 = vpop.f32.mrf.mxu3  ;;  %v5618_v32 = vshrl.u32 %v10339_v23, 16 }
 0x473   :  { %v6912_v6 = vadd.f32 %v10134_v2, %v6823_v12  ;;  %v5370_v24 = vadd.f32 %v5178_v56, %v4542_v10  ;;  %7904 = vmatmul.msk.bf16.gmra.mxu1 %vm962_vm3, %v4121_v18  ;;  %v4951_v56 = vsel %vm4086_vm7, %v4948_v22, %v4950_v54 }
 0x475   :  { %v6997_v59 = vmax.f32 %v6912_v6, 0.0  ;;  %v6203_v34 = vadd.f32 %v6011_v29, %v5370_v24  ;;  %v8453_v29 = vld [vmem:[#allocation2 + $0x98] sm:$0xff] }
 0x476   :  { %v4122_v21 = vrot.slane %v8453_v29, 2 }
 0x477   :  { %7082 = vst [vmem:[%s11140_s5 + $0x70] sm:$0xff] %v6997_v59  ;;  %v6735_v31 = vadd.f32 %v6543_v37, %v6203_v34  ;;  %8112 = vmatmul.msk.bf16.gmra.mxu2 %vm962_vm3, %v4949_v7  ;;  %v5621_v37 = vshll.u32 %v10339_v23, 16 }
 0x478   :  { %v6546_v47 = vpop.f32.mrf.mxu0  ;;  %v4355_v48 = vpop.f32.mrf.mxu1  ;;  %v4123_v13 = vsel %vm4086_vm7, %v4120_v50, %v4122_v21  ;;  %v6315_v50 = vrot.slane %v10313_v58, 3 }
 0x479   :  { %v6824_v38 = vmul.f32 %v10129_v33, %v6735_v31  ;;  %v4544_v18 = vadd.f32 %v4355_v48, %v9513_v61  ;;  %v5623_v6 = vrot.slane %v5621_v37, 3 }
 0x47a   :  { %v5181_v60 = vpop.f32.mrf.mxu2  ;;  %v6016_v26 = vpop.f32.mrf.mxu3  ;;  %v6316_v14 = vsel %vm6279_vm8, %v6313_v57, %v6315_v50 }
 0x47b   :  { %v6913_v63 = vadd.f32 %v10134_v2, %v6824_v38  ;;  %8200 = vmatmul.msk.bf16.gmra.mxu0 %vm962_vm3, %v6314_v19  ;;  %v5371_v17 = vadd.f32 %v5181_v60, %v4543_v15  ;;  %v8454_v15 = vld [vmem:[#allocation2 + $0xa0] sm:$0xff] }
 0x47c   :  { %v4124_v60 = vrot.slane %v8454_v15, 2 }
 0x47d   :  { %v6998_v16 = vmax.f32 %v6913_v63, 0.0  ;;  %v6204_v42 = vadd.f32 %v6014_v46, %v5371_v17  ;;  %v5620_v46 = vrot.slane %v5618_v32, 2 }
 0x47e   :  { %v4125_v29 = vsel %vm4086_vm7, %v4122_v21, %v4124_v60  ;;  %v6317_v21 = vrot.slane %v10339_v23, 3 }
 0x47f   :  { %7083 = vst [vmem:[%s11140_s5 + $0x78] sm:$0xff] %v6998_v16  ;;  %v6736_v51 = vadd.f32 %v6546_v47, %v6204_v42  ;;  %8157 = vmatmul.msk.bf16.gmra.mxu3 %vm962_vm3, %v5616_v45  ;;  %v5624_v34 = vor.u32 %v5623_v6, %v5620_v46  ;;  %v4952_v16 = vrot.slane %v10339_v23, 2 }
 0x480   :  { %v6548_v8 = vpop.f32.mrf.mxu0  ;;  %v4358_v36 = vpop.f32.mrf.mxu1 }
 0x481   :  { %v6825_v5 = vmul.f32 %v10129_v33, %v6736_v51  ;;  %v4545_v58 = vadd.f32 %v4358_v36, %v9523_v20  ;;  %v5625_v38 = vsel %vm5446_vm6, %v5615_v41, %v5624_v34 }
 0x482   :  { %v5183_v39 = vpop.f32.mrf.mxu2  ;;  %v6019_v3 = vpop.f32.mrf.mxu3 }
 0x483   :  { %v6914_v12 = vadd.f32 %v10134_v2, %v6825_v5  ;;  %v5372_v10 = vadd.f32 %v5183_v39, %v4544_v18  ;;  %7905 = vmatmul.msk.bf16.gmra.mxu1 %vm962_vm3, %v4123_v13  ;;  %v4953_v5 = vsel %vm4086_vm7, %v4950_v54, %v4952_v16 }
 0x485   :  { %v6999_v24 = vmax.f32 %v6914_v12, 0.0  ;;  %v6205_v7 = vadd.f32 %v6016_v26, %v5372_v10  ;;  %v10365_v26 = vld [vmem:[#allocation2 + $0xb0] sm:$0xff] }
 0x486   :  { %v5627_v41 = vshrl.u32 %v10365_v26, 16  ;;  %v5630_v42 = vshll.u32 %v10365_v26, 16 }
 0x487   :  { %7084 = vst [vmem:[%s11140_s5 + $0x80] sm:$0xff] %v6999_v24  ;;  %v6737_v61 = vadd.f32 %v6548_v8, %v6205_v7  ;;  %8113 = vmatmul.msk.bf16.gmra.mxu2 %vm962_vm3, %v4951_v56  ;;  %v6318_v56 = vsel %vm6279_vm8, %v6315_v50, %v6317_v21 }
 0x488   :  { %v6551_v52 = vpop.f32.mrf.mxu0  ;;  %v4360_v59 = vpop.f32.mrf.mxu1  ;;  %v5629_v18 = vrot.slane %v5627_v41, 2  ;;  %v5632_v39 = vrot.slane %v5630_v42, 3 }
 0x489   :  { %v6826_v22 = vmul.f32 %v10129_v33, %v6737_v61  ;;  %v4546_v8 = vadd.f32 %v4360_v59, %v9529_v25  ;;  %v8455_v59 = vld [vmem:[#allocation2 + $0xa8] sm:$0xff] }
 0x48a   :  { %v5186_v31 = vpop.f32.mrf.mxu2  ;;  %v6021_v47 = vpop.f32.mrf.mxu3  ;;  %v5633_v6 = vor.u32 %v5632_v39, %v5629_v18 }
 0x48b   :  { %v6915_v19 = vadd.f32 %v10134_v2, %v6826_v22  ;;  %8201 = vmatmul.msk.bf16.gmra.mxu0 %vm962_vm3, %v6316_v14  ;;  %v5373_v48 = vadd.f32 %v5186_v31, %v4545_v58  ;;  %v4126_v22 = vrot.slane %v8455_v59, 2  ;;  %v10391_v58 = vld [vmem:[#allocation2 + $0xb8] sm:$0xff] }
 0x48c   :  { %v5634_v14 = vsel %vm5446_vm6, %v5624_v34, %v5633_v6  ;;  %v5636_v34 = vshrl.u32 %v10391_v58, 16  ;;  %v5639_v15 = vshll.u32 %v10391_v58, 16 }
 0x48d   :  { %v7000_v57 = vmax.f32 %v6915_v19, 0.0  ;;  %v6206_v63 = vadd.f32 %v6019_v3, %v5373_v48  ;;  %v4127_v48 = vsel %vm4086_vm7, %v4124_v60, %v4126_v22  ;;  %v6319_v60 = vrot.slane %v10365_v26, 3 }
 0x48e   :  { %v5638_v42 = vrot.slane %v5636_v34, 2 }
 0x48f   :  { %7085 = vst [vmem:[%s11140_s5 + $0x88] sm:$0xff] %v7000_v57  ;;  %v6738_v20 = vadd.f32 %v6551_v52, %v6206_v63  ;;  %8158 = vmatmul.msk.bf16.gmra.mxu3 %vm962_vm3, %v5625_v38  ;;  %v4954_v38 = vrot.slane %v10365_v26, 2 }
 0x490   :  { %v6553_v17 = vpop.f32.mrf.mxu0  ;;  %v4363_v45 = vpop.f32.mrf.mxu1 }
 0x491   :  { %v6827_v51 = vmul.f32 %v10129_v33, %v6738_v20  ;;  %v4547_v23 = vadd.f32 %v4363_v45, %v9539_v40  ;;  %v4955_v41 = vsel %vm4086_vm7, %v4952_v16, %v4954_v38 }
 0x492   :  { %v5188_v36 = vpop.f32.mrf.mxu2  ;;  %v6024_v13 = vpop.f32.mrf.mxu3 }
 0x493   :  { %v6916_v32 = vadd.f32 %v10134_v2, %v6827_v51  ;;  %v5374_v37 = vadd.f32 %v5188_v36, %v4546_v8  ;;  %7906 = vmatmul.msk.bf16.gmra.mxu1 %vm962_vm3, %v4125_v29  ;;  %v5641_v51 = vrot.slane %v5639_v15, 3 }
 0x495   :  { %v7001_v3 = vmax.f32 %v6916_v32, 0.0  ;;  %v6207_v12 = vadd.f32 %v6021_v47, %v5374_v37  ;;  %v6320_v32 = vsel %vm6279_vm8, %v6317_v21, %v6319_v60 }
 0x497   :  { %7086 = vst [vmem:[%s11140_s5 + $0x90] sm:$0xff] %v7001_v3  ;;  %v6739_v25 = vadd.f32 %v6553_v17, %v6207_v12  ;;  %8114 = vmatmul.msk.bf16.gmra.mxu2 %vm962_vm3, %v4953_v5  ;;  %v5642_v5 = vor.u32 %v5641_v51, %v5638_v42 }
 0x498   :  { %v6556_v10 = vpop.f32.mrf.mxu0  ;;  %v4365_v46 = vpop.f32.mrf.mxu1 }
 0x499   :  { %v6828_v54 = vmul.f32 %v10129_v33, %v6739_v25  ;;  %v4548_v63 = vadd.f32 %v4365_v46, %v9545_v1  ;;  %v5643_v25 = vsel %vm5446_vm6, %v5633_v6, %v5642_v5  ;;  %v10417_v46 = vld [vmem:[#allocation2 + $0xc0] sm:$0xff] }
 0x49a   :  { %v5191_v24 = vpop.f32.mrf.mxu2  ;;  %v6026_v7 = vpop.f32.mrf.mxu3  ;;  %v5645_v6 = vshrl.u32 %v10417_v46, 16 }
 0x49b   :  { %v6917_v61 = vadd.f32 %v10134_v2, %v6828_v54  ;;  %8202 = vmatmul.msk.bf16.gmra.mxu0 %vm962_vm3, %v6318_v56  ;;  %v5375_v52 = vadd.f32 %v5191_v24, %v4547_v23 }
 0x49d   :  { %v7002_v50 = vmax.f32 %v6917_v61, 0.0  ;;  %v6208_v31 = vadd.f32 %v6024_v13, %v5375_v52  ;;  %v4956_v61 = vrot.slane %v10391_v58, 2  ;;  %v5648_v52 = vshll.u32 %v10417_v46, 16 }
 0x49f   :  { %7087 = vst [vmem:[%s11140_s5 + $0x98] sm:$0xff] %v7002_v50  ;;  %v6740_v40 = vadd.f32 %v6556_v10, %v6208_v31  ;;  %8159 = vmatmul.msk.bf16.gmra.mxu3 %vm962_vm3, %v5634_v14  ;;  %v8456_v10 = vld [vmem:[#allocation2 + $0xb0] sm:$0xff]  ;;  %v5650_v34 = vrot.slane %v5648_v52, 3 }
 0x4a0   :  { %v6558_v47 = vpop.f32.mrf.mxu0  ;;  %v4368_v19 = vpop.f32.mrf.mxu1  ;;  %v4128_v56 = vrot.slane %v8456_v10, 2 }
 0x4a1   :  { %v6829_v57 = vmul.f32 %v10129_v33, %v6740_v40  ;;  %v4549_v26 = vadd.f32 %v4368_v19, %v9555_v30  ;;  %v4957_v19 = vsel %vm4086_vm7, %v4954_v38, %v4956_v61 }
 0x4a2   :  { %v5193_v20 = vpop.f32.mrf.mxu2  ;;  %v6029_v17 = vpop.f32.mrf.mxu3 }
 0x4a3   :  { %v6918_v45 = vadd.f32 %v10134_v2, %v6829_v57  ;;  %v5376_v29 = vadd.f32 %v5193_v20, %v4548_v63  ;;  %7907 = vmatmul.msk.bf16.gmra.mxu1 %vm962_vm3, %v4127_v48  ;;  %v5647_v48 = vrot.slane %v5645_v6, 2 }
 0x4a5   :  { %v7003_v8 = vmax.f32 %v6918_v45, 0.0  ;;  %v6209_v36 = vadd.f32 %v6026_v7, %v5376_v29  ;;  %v4129_v7 = vsel %vm4086_vm7, %v4126_v22, %v4128_v56  ;;  %v6321_v22 = vrot.slane %v10391_v58, 3 }
 0x4a6   :  { %v5651_v45 = vor.u32 %v5650_v34, %v5647_v48  ;;  %v8460_v48 = vld [vmem:[#allocation2 + $0xc0] sm:$0xff] }
 0x4a7   :  { %7088 = vst [vmem:[%s11140_s5 + $0xa0] sm:$0xff] %v7003_v8  ;;  %v6741_v1 = vadd.f32 %v6558_v47, %v6209_v36  ;;  %8115 = vmatmul.msk.bf16.gmra.mxu2 %vm962_vm3, %v4955_v41  ;;  %v6322_v20 = vsel %vm6279_vm8, %v6319_v60, %v6321_v22  ;;  %v8457_v36 = vld [vmem:[#allocation2 + $0xb8] sm:$0xff]  ;;  %v4132_v34 = vrot.slane %v8460_v48, 2 }
 0x4a8   :  { %v6561_v13 = vpop.f32.mrf.mxu0  ;;  %v4370_v37 = vpop.f32.mrf.mxu1  ;;  %v5652_v8 = vsel %vm5446_vm6, %v5642_v5, %v5651_v45 }
 0x4a9   :  { %v6830_v16 = vmul.f32 %v10129_v33, %v6741_v1  ;;  %v4550_v59 = vadd.f32 %v4370_v37, %v9561_v55  ;;  %v4130_v1 = vrot.slane %v8457_v36, 2 }
 0x4aa   :  { %v5196_v18 = vpop.f32.mrf.mxu2  ;;  %v6031_v39 = vpop.f32.mrf.mxu3 }
 0x4ab   :  { %v6919_v3 = vadd.f32 %v10134_v2, %v6830_v16  ;;  %8203 = vmatmul.msk.bf16.gmra.mxu0 %vm962_vm3, %v6320_v32  ;;  %v5377_v12 = vadd.f32 %v5196_v18, %v4549_v26  ;;  %v4131_v26 = vsel %vm4086_vm7, %v4128_v56, %v4130_v1  ;;  %v4958_v18 = vrot.slane %v10417_v46, 2 }
 0x4ac   :  { %v6323_v56 = vrot.slane %v10417_v46, 3  ;;  %v10467_v46 = vld [vmem:[%s11138_s3] ss:$0 sm:$0xff] }
 0x4ad   :  { %v7004_v21 = vmax.f32 %v6919_v3, 0.0  ;;  %v6210_v54 = vadd.f32 %v6029_v17, %v5377_v12 }
 0x4af   :  { %7089 = vst [vmem:[%s11140_s5 + $0xa8] sm:$0xff] %v7004_v21  ;;  %v6742_v30 = vadd.f32 %v6561_v13, %v6210_v54  ;;  %8160 = vmatmul.msk.bf16.gmra.mxu3 %vm962_vm3, %v5643_v25  ;;  %v10443_v13 = vld [vmem:[#allocation2 + $0xc8] sm:$0xff] }
 0x4b0   :  { %v6563_v23 = vpop.f32.mrf.mxu0  ;;  %v4373_v24 = vpop.f32.mrf.mxu1  ;;  %v5654_v5 = vshrl.u32 %v10443_v13, 16 }
 0x4b1   :  { %v6831_v14 = vmul.f32 %v10129_v33, %v6742_v30  ;;  %v4551_v58 = vadd.f32 %v4373_v24, %v9571_v0  ;;  %v4959_v30 = vsel %vm4086_vm7, %v4956_v61, %v4958_v18 }
 0x4b2   :  { %v5198_v50 = vpop.f32.mrf.mxu2  ;;  %v6034_v31 = vpop.f32.mrf.mxu3 }
 0x4b3   :  { %v6920_v40 = vadd.f32 %v10134_v2, %v6831_v14  ;;  %v5378_v47 = vadd.f32 %v5198_v50, %v4550_v59  ;;  %7908 = vmatmul.msk.bf16.gmra.mxu1 %vm962_vm3, %v4129_v7 }
 0x4b5   :  { %v7005_v15 = vmax.f32 %v6920_v40, 0.0  ;;  %v6211_v57 = vadd.f32 %v6031_v39, %v5378_v47  ;;  %v5657_v39 = vshll.u32 %v10443_v13, 16  ;;  %v10474_v40 = vld [vmem:[%s11139_s4] ss:$0 sm:$0xff] }
 0x4b7   :  { %7090 = vst [vmem:[%s11140_s5 + $0xb0] sm:$0xff] %v7005_v15  ;;  %v6743_v55 = vadd.f32 %v6563_v23, %v6211_v57  ;;  %8116 = vmatmul.msk.bf16.gmra.mxu2 %vm962_vm3, %v4957_v19  ;;  %v5656_v23 = vrot.slane %v5654_v5, 2  ;;  %v5659_v24 = vrot.slane %v5657_v39, 3  ;;  %v10479_v15 = vld [vmem:[#allocation2 + $0xd0] sm:$0xff] }
 0x4b8   :  { %v6566_v63 = vpop.f32.mrf.mxu0  ;;  %v4375_v17 = vpop.f32.mrf.mxu1  ;;  %v6327_v48 = vrot.slane %v10479_v15, 3 }
 0x4b9   :  { %v6832_v38 = vmul.f32 %v10129_v33, %v6743_v55  ;;  %v4552_v12 = vadd.f32 %v4375_v17, %v9577_v62  ;;  %v5660_v14 = vor.u32 %v5659_v24, %v5656_v23  ;;  %v4133_v17 = vsel %vm4086_vm7, %v4130_v1, %v4132_v34  ;;  %v10505_v24 = vld [vmem:[#allocation2 + $0xd8] sm:$0xff] }
 0x4ba   :  { %v5201_v29 = vpop.f32.mrf.mxu2  ;;  %v6036_v41 = vpop.f32.mrf.mxu3  ;;  %v6325_v1 = vrot.slane %v10443_v13, 3 }
 0x4bb   :  { %v6921_v42 = vadd.f32 %v10134_v2, %v6832_v38  ;;  %8204 = vmatmul.msk.bf16.gmra.mxu0 %vm962_vm3, %v6322_v20  ;;  %v5379_v51 = vadd.f32 %v5201_v29, %v4551_v58  ;;  %v4960_v38 = vrot.slane %v10443_v13, 2  ;;  %v5666_v58 = vshll.u32 %v10479_v15, 16 }
 0x4bc   :  { %v6326_v5 = vsel %vm6279_vm8, %v6323_v56, %v6325_v1 }
 0x4bd   :  { %v7006_v60 = vmax.f32 %v6921_v42, 0.0  ;;  %v6212_v32 = vadd.f32 %v6034_v31, %v5379_v51 }
 0x4bf   :  { %7091 = vst [vmem:[%s11140_s5 + $0xb8] sm:$0xff] %v7006_v60  ;;  %v6744_v0 = vadd.f32 %v6566_v63, %v6212_v32  ;;  %8161 = vmatmul.msk.bf16.gmra.mxu3 %vm962_vm3, %v5652_v8  ;;  %v4961_v60 = vsel %vm4086_vm7, %v4958_v18, %v4960_v38 }
 0x4c0   :  { %v6568_v37 = vpop.f32.mrf.mxu0  ;;  %v4378_v16 = vpop.f32.mrf.mxu1 }
 0x4c1   :  { %v6833_v3 = vmul.f32 %v10129_v33, %v6744_v0  ;;  %v4553_v59 = vadd.f32 %v4378_v16, %v9587_v49  ;;  %v5668_v0 = vrot.slane %v5666_v58, 3 }
 0x4c2   :  { %v5203_v25 = vpop.f32.mrf.mxu2  ;;  %v6039_v10 = vpop.f32.mrf.mxu3 }
 0x4c3   :  { %v6922_v21 = vadd.f32 %v10134_v2, %v6833_v3  ;;  %v5380_v54 = vadd.f32 %v5203_v25, %v4552_v12  ;;  %7909 = vmatmul.msk.bf16.gmra.mxu1 %vm962_vm3, %v4131_v26  ;;  %v6324_v2 = vsel %vm6279_vm8, %v6321_v22, %v6323_v56  ;;  %v5661_v22 = vsel %vm5446_vm6, %v5651_v45, %v5660_v14 }
 0x4c4   :  { %v5663_v45 = vshrl.u32 %v10479_v15, 16 }
 0x4c5   :  { %v7007_v7 = vmax.f32 %v6922_v21, 0.0  ;;  %v6213_v6 = vadd.f32 %v6036_v41, %v5380_v54 }
 0x4c6   :  { %v5665_v32 = vrot.slane %v5663_v45, 2 }
 0x4c7   :  { %7092 = vst [vmem:[%s11140_s5 + $0xc0] sm:$0xff] %v7007_v7  ;;  %v6745_v62 = vadd.f32 %v6568_v37, %v6213_v6  ;;  %8117 = vmatmul.msk.bf16.gmra.mxu2 %vm962_vm3, %v4959_v30  ;;  %v8461_v30 = vld [vmem:[#allocation2 + $0xc8] sm:$0xff] }
 0x4c8   :  { %v6571_v33 = vpop.f32.mrf.mxu0  ;;  %v4380_v52 = vpop.f32.mrf.mxu1  ;;  %v5669_v3 = vor.u32 %v5668_v0, %v5665_v32  ;;  %v4134_v23 = vrot.slane %v8461_v30, 2 }
 0x4c9   :  { %v6834_v61 = vmul.f32 %v10467_v46, %v6745_v62  ;;  %v4554_v41 = vadd.f32 %v4380_v52, %v9593_v27  ;;  %v5672_v52 = vshrl.u32 %v10505_v24, 16 }
 0x4ca   :  { %v5206_v50 = vpop.f32.mrf.mxu2  ;;  %v6041_v31 = vpop.f32.mrf.mxu3  ;;  %v5670_v54 = vsel %vm5446_vm6, %v5660_v14, %v5669_v3  ;;  %v5675_v14 = vshll.u32 %v10505_v24, 16 }
 0x4cb   :  { %v6923_v47 = vadd.f32 %v10474_v40, %v6834_v61  ;;  %8205 = vmatmul.msk.bf16.gmra.mxu0 %vm962_vm3, %v6324_v2  ;;  %v5381_v19 = vadd.f32 %v5206_v50, %v4553_v59  ;;  %v4962_v2 = vrot.slane %v10479_v15, 2 }
 0x4cd   :  { %v7008_v57 = vmax.f32 %v6923_v47, 0.0  ;;  %v6214_v49 = vadd.f32 %v6039_v10, %v5381_v19 }
 0x4cf   :  { %7093 = vst [vmem:[%s11140_s5 + $0xc8] sm:$0xff] %v7008_v57  ;;  %v6746_v55 = vadd.f32 %v6571_v33, %v6214_v49  ;;  %8162 = vmatmul.msk.bf16.gmra.mxu3 %vm962_vm3, %v5661_v22  ;;  %v4135_v33 = vsel %vm4086_vm7, %v4132_v34, %v4134_v23  ;;  %v4963_v22 = vsel %vm4086_vm7, %v4960_v38, %v4962_v2  ;;  %v5674_v34 = vrot.slane %v5672_v52, 2 }
 0x4d0   :  { %v6573_v63 = vpop.f32.mrf.mxu0  ;;  %v4383_v20 = vpop.f32.mrf.mxu1  ;;  %v5677_v57 = vrot.slane %v5675_v14, 3 }
 0x4d1   :  { %v6835_v29 = vmul.f32 %v10467_v46, %v6746_v55  ;;  %v4555_v13 = vadd.f32 %v4383_v20, %v9603_v35  ;;  %v6328_v20 = vsel %vm6279_vm8, %v6325_v1, %v6327_v48 }
 0x4d2   :  { %v5208_v42 = vpop.f32.mrf.mxu2  ;;  %v6044_v51 = vpop.f32.mrf.mxu3  ;;  %v5678_v45 = vor.u32 %v5677_v57, %v5674_v34 }
 0x4d3   :  { %v6924_v8 = vadd.f32 %v10474_v40, %v6835_v29  ;;  %v5382_v36 = vadd.f32 %v5208_v42, %v4554_v41  ;;  %7910 = vmatmul.msk.bf16.gmra.mxu1 %vm962_vm3, %v4133_v17 }
 0x4d5   :  { %v7009_v37 = vmax.f32 %v6924_v8, 0.0  ;;  %v6215_v16 = vadd.f32 %v6041_v31, %v5382_v36  ;;  %v8462_v8 = vld [vmem:[#allocation2 + $0xd0] sm:$0xff] }
 0x4d6   :  { %v4136_v36 = vrot.slane %v8462_v8, 2 }
 0x4d7   :  { %7094 = vst [vmem:[%s11140_s5 + $0xd0] sm:$0xff] %v7009_v37  ;;  %v6747_v27 = vadd.f32 %v6573_v63, %v6215_v16  ;;  %8118 = vmatmul.msk.bf16.gmra.mxu2 %vm962_vm3, %v4961_v60  ;;  %v10531_v60 = vld [vmem:[#allocation2 + $0xe0] sm:$0xff] }
 0x4d8   :  { %v6576_v26 = vpop.f32.mrf.mxu0  ;;  %v4385_v39 = vpop.f32.mrf.mxu1  ;;  %v4137_v16 = vsel %vm4086_vm7, %v4134_v23, %v4136_v36 }
 0x4d9   :  { %v6836_v18 = vmul.f32 %v10467_v46, %v6747_v27  ;;  %v4556_v59 = vadd.f32 %v4385_v39, %v9609_v11  ;;  %v4964_v27 = vrot.slane %v10505_v24, 2 }
 0x4da   :  { %v5211_v12 = vpop.f32.mrf.mxu2  ;;  %v6046_v25 = vpop.f32.mrf.mxu3 }
 0x4db   :  { %v6925_v10 = vadd.f32 %v10474_v40, %v6836_v18  ;;  %8206 = vmatmul.msk.bf16.gmra.mxu0 %vm962_vm3, %v6326_v5  ;;  %v5383_v21 = vadd.f32 %v5211_v12, %v4555_v13  ;;  %v5684_v5 = vshll.u32 %v10531_v60, 16 }
 0x4dd   :  { %v7010_v56 = vmax.f32 %v6925_v10, 0.0  ;;  %v6216_v7 = vadd.f32 %v6044_v51, %v5383_v21  ;;  %v5679_v51 = vsel %vm5446_vm6, %v5669_v3, %v5678_v45  ;;  %v4965_v10 = vsel %vm4086_vm7, %v4962_v2, %v4964_v27  ;;  %v11292_v2 = vld [vmem:[#allocation50_spill] sm:$0xff] }
 0x4de   :  { %v6329_v21 = vrot.slane %v10505_v24, 3  ;;  %v5686_v30 = vrot.slane %v5684_v5, 3  ;;  %v11294_v5 = vld [vmem:[#allocation52_spill] sm:$0xff] }
 0x4df   :  { %7095 = vst [vmem:[%s11140_s5 + $0xd8] sm:$0xff] %v7010_v56  ;;  %v6748_v35 = vadd.f32 %v6576_v26, %v6216_v7  ;;  %8163 = vmatmul.msk.bf16.gmra.mxu3 %vm962_vm3, %v5670_v54  ;;  %v5681_v26 = vshrl.u32 %v10531_v60, 16 }
 0x4e0   :  { %v6578_v6 = vpop.f32.mrf.mxu0  ;;  %v4388_v62 = vpop.f32.mrf.mxu1 }
 0x4e1   :  { %v6837_v61 = vmul.f32 %v10467_v46, %v6748_v35  ;;  %v4557_v15 = vadd.f32 %v4388_v62, %v9619_v28  ;;  %v5683_v54 = vrot.slane %v5681_v26, 2  ;;  %v6330_v35 = vsel %vm6279_vm8, %v6327_v48, %v6329_v21 }
 0x4e2   :  { %v5213_v50 = vpop.f32.mrf.mxu2  ;;  %v6049_v31 = vpop.f32.mrf.mxu3 }
 0x4e3   :  { %v6926_v47 = vadd.f32 %v10474_v40, %v6837_v61  ;;  %v5384_v19 = vadd.f32 %v5213_v50, %v4556_v59  ;;  %7911 = vmatmul.msk.bf16.gmra.mxu1 %vm962_vm3, %v4135_v33  ;;  %v5687_v62 = vor.u32 %v5686_v30, %v5683_v54  ;;  %v10583_v54 = vld [vmem:[#allocation2 + $0xf0] sm:$0xff] }
 0x4e5   :  { %v7011_v49 = vmax.f32 %v6926_v47, 0.0  ;;  %v6217_v55 = vadd.f32 %v6046_v25, %v5384_v19  ;;  %v5688_v50 = vsel %vm5446_vm6, %v5678_v45, %v5687_v62  ;;  %v10557_v19 = vld [vmem:[#allocation2 + $0xe8] sm:$0xff] }
 0x4e6   :  { %v11293_v45 = vld [vmem:[#allocation51_spill] sm:$0xff] }
 0x4e7   :  { %7096 = vst [vmem:[%s11140_s5 + $0xe0] sm:$0xff] %v7011_v49  ;;  %v6749_v11 = vadd.f32 %v6578_v6, %v6217_v55  ;;  %8119 = vmatmul.msk.bf16.gmra.mxu2 %vm962_vm3, %v4963_v22 }
 0x4e8   :  { %v6581_v63 = vpop.f32.mrf.mxu0  ;;  %v4390_v17 = vpop.f32.mrf.mxu1 }
 0x4e9   :  { %v6838_v38 = vmul.f32 %v10467_v46, %v6749_v11  ;;  %v4558_v3 = vadd.f32 %v4390_v17, %v9625_v53  ;;  %v4966_v11 = vrot.slane %v10531_v60, 2 }
 0x4ea   :  { %v5216_v58 = vpop.f32.mrf.mxu2  ;;  %v6051_v29 = vpop.f32.mrf.mxu3 }
 0x4eb   :  { %v6927_v41 = vadd.f32 %v10474_v40, %v6838_v38  ;;  %8207 = vmatmul.msk.bf16.gmra.mxu0 %vm962_vm3, %v6328_v20  ;;  %v5385_v42 = vadd.f32 %v5216_v58, %v4557_v15  ;;  %v5693_v20 = vshll.u32 %v10557_v19, 16 }
 0x4ed   :  { %v7012_v1 = vmax.f32 %v6927_v41, 0.0  ;;  %v6218_v32 = vadd.f32 %v6049_v31, %v5385_v42  ;;  %v8463_v31 = vld [vmem:[#allocation2 + $0xd8] sm:$0xff]  ;;  %v4967_v42 = vsel %vm4086_vm7, %v4964_v27, %v4966_v11 }
 0x4ee   :  { %v4138_v47 = vrot.slane %v8463_v31, 2  ;;  %v6333_v31 = vrot.slane %v10557_v19, 3 }
 0x4ef   :  { %7097 = vst [vmem:[%s11140_s5 + $0xe8] sm:$0xff] %v7012_v1  ;;  %v6750_v28 = vadd.f32 %v6581_v63, %v6218_v32  ;;  %8164 = vmatmul.msk.bf16.gmra.mxu3 %vm962_vm3, %v5679_v51  ;;  %v5690_v63 = vshrl.u32 %v10557_v19, 16  ;;  %v6331_v51 = vrot.slane %v10531_v60, 3 }
 0x4f0   :  { %v6583_v0 = vpop.f32.mrf.mxu0  ;;  %v4393_v37 = vpop.f32.mrf.mxu1  ;;  %v4139_v55 = vsel %vm4086_vm7, %v4136_v36, %v4138_v47  ;;  %v5695_v36 = vrot.slane %v5693_v20, 3 }
 0x4f1   :  { %v6839_v39 = vmul.f32 %v10467_v46, %v6750_v28  ;;  %v4559_v24 = vadd.f32 %v4393_v37, %v11292_v2  ;;  %v5692_v8 = vrot.slane %v5690_v63, 2  ;;  %v6332_v37 = vsel %vm6279_vm8, %v6329_v21, %v6331_v51  ;;  %v11295_v2 = vld [vmem:[#allocation53_spill] sm:$0xff] }
 0x4f2   :  { %v5218_v18 = vpop.f32.mrf.mxu2  ;;  %v6054_v13 = vpop.f32.mrf.mxu3 }
 0x4f3   :  { %v6928_v12 = vadd.f32 %v10474_v40, %v6839_v39  ;;  %v5386_v25 = vadd.f32 %v5218_v18, %v4558_v3  ;;  %7912 = vmatmul.msk.bf16.gmra.mxu1 %vm962_vm3, %v4137_v16  ;;  %v5696_v26 = vor.u32 %v5695_v36, %v5692_v8  ;;  %v10609_v8 = vld [vmem:[#allocation2 + $0xf8] sm:$0xff] }
 0x4f5   :  { %v7013_v23 = vmax.f32 %v6928_v12, 0.0  ;;  %v6219_v56 = vadd.f32 %v6051_v29, %v5386_v25  ;;  %v5697_v12 = vsel %vm5446_vm6, %v5687_v62, %v5696_v26  ;;  %v8464_v25 = vld [vmem:[#allocation2 + $0xe0] sm:$0xff]  ;;  %v5702_v62 = vshll.u32 %v10583_v54, 16 }
 0x4f7   :  { %7098 = vst [vmem:[%s11140_s5 + $0xf0] sm:$0xff] %v7013_v23  ;;  %v6751_v53 = vadd.f32 %v6583_v0, %v6219_v56  ;;  %8120 = vmatmul.msk.bf16.gmra.mxu2 %vm962_vm3, %v4965_v10  ;;  %v4140_v10 = vrot.slane %v8464_v25, 2  ;;  %v6335_v25 = vrot.slane %v10583_v54, 3 }
 0x4f8   :  { %v6586_v7 = vpop.f32.mrf.mxu0  ;;  %v4395_v6 = vpop.f32.mrf.mxu1 }
 0x4f9   :  { %v6840_v33 = vmul.f32 %v10467_v46, %v6751_v53  ;;  %v4560_v38 = vadd.f32 %v4395_v6, %v11293_v45  ;;  %v5699_v6 = vshrl.u32 %v10583_v54, 16 }
 0x4fa   :  { %v5221_v52 = vpop.f32.mrf.mxu2  ;;  %v6056_v14 = vpop.f32.mrf.mxu3 }
 0x4fb   :  { %v6929_v61 = vadd.f32 %v10474_v40, %v6840_v33  ;;  %8208 = vmatmul.msk.bf16.gmra.mxu0 %vm962_vm3, %v6330_v35  ;;  %v5387_v59 = vadd.f32 %v5221_v52, %v4559_v24  ;;  %v4968_v35 = vrot.slane %v10557_v19, 2 }
 0x4fd   :  { %v7014_v22 = vmax.f32 %v6929_v61, 0.0  ;;  %v6220_v48 = vadd.f32 %v6054_v13, %v5387_v59 }
 0x4ff   :  { %7099 = vst [vmem:[%s11140_s5 + $0xf8] sm:$0xff] %v7014_v22  ;;  %v6752_v34 = vadd.f32 %v6586_v7, %v6220_v48  ;;  %8165 = vmatmul.msk.bf16.gmra.mxu3 %vm962_vm3, %v5688_v50  ;;  %v4141_v7 = vsel %vm4086_vm7, %v4138_v47, %v4140_v10  ;;  %v4969_v50 = vsel %vm4086_vm7, %v4966_v11, %v4968_v35  ;;  %v5701_v47 = vrot.slane %v5699_v6, 2 }
 0x500   :  { %v6588_v57 = vpop.f32.mrf.mxu0  ;;  %v4398_v49 = vpop.f32.mrf.mxu1  ;;  %v5704_v22 = vrot.slane %v5702_v62, 3 }
 0x501   :  { %v6841_v17 = vmul.f32 %v10467_v46, %v6752_v34  ;;  %v4561_v60 = vadd.f32 %v4398_v49, %v11294_v5  ;;  %v11297_v5 = vld [vmem:[#allocation55_spill] sm:$0xff] }
 0x502   :  { %v5223_v15 = vpop.f32.mrf.mxu2  ;;  %v6059_v58 = vpop.f32.mrf.mxu3  ;;  %v5705_v20 = vor.u32 %v5704_v22, %v5701_v47  ;;  %v10635_v47 = vld [vmem:[#allocation2 + $0x100] sm:$0xff] }
 0x503   :  { %v6930_v29 = vadd.f32 %v10474_v40, %v6841_v17  ;;  %v5388_v41 = vadd.f32 %v5223_v15, %v4560_v38  ;;  %7913 = vmatmul.msk.bf16.gmra.mxu1 %vm962_vm3, %v4139_v55  ;;  %v6334_v55 = vsel %vm6279_vm8, %v6331_v51, %v6333_v31  ;;  %v11296_v17 = vld [vmem:[#allocation54_spill] sm:$0xff] }
 0x505   :  { %v7015_v1 = vmax.f32 %v6930_v29, 0.0  ;;  %v6221_v32 = vadd.f32 %v6056_v14, %v5388_v41  ;;  %v5706_v29 = vsel %vm5446_vm6, %v5696_v26, %v5705_v20  ;;  %v8465_v41 = vld [vmem:[#allocation2 + $0xe8] sm:$0xff]  ;;  %v5711_v26 = vshll.u32 %v10609_v8, 16 }
 0x507   :  { %7100 = vst [vmem:[%s11140_s5 + $0x100] sm:$0xff] %v7015_v1  ;;  %v6753_v28 = vadd.f32 %v6588_v57, %v6221_v32  ;;  %8121 = vmatmul.msk.bf16.gmra.mxu2 %vm962_vm3, %v4967_v42  ;;  %v4142_v42 = vrot.slane %v8465_v41, 2  ;;  %v6337_v41 = vrot.slane %v10609_v8, 3 }
 0x508   :  { %v6591_v0 = vpop.f32.mrf.mxu0  ;;  %v4400_v16 = vpop.f32.mrf.mxu1 }
 0x509   :  { %v6842_v27 = vmul.f32 %v10467_v46, %v6753_v28  ;;  %v4562_v24 = vadd.f32 %v4400_v16, %v11295_v2  ;;  %v5708_v16 = vshrl.u32 %v10609_v8, 16 }
 0x50a   :  { %v5226_v39 = vpop.f32.mrf.mxu2  ;;  %v6061_v3 = vpop.f32.mrf.mxu3 }
 0x50b   :  { %v6931_v18 = vadd.f32 %v10474_v40, %v6842_v27  ;;  %8209 = vmatmul.msk.bf16.gmra.mxu0 %vm962_vm3, %v6332_v37  ;;  %v5389_v13 = vadd.f32 %v5226_v39, %v4561_v60  ;;  %v4970_v37 = vrot.slane %v10583_v54, 2 }
 0x50d   :  { %v7016_v21 = vmax.f32 %v6931_v18, 0.0  ;;  %v6222_v30 = vadd.f32 %v6059_v58, %v5389_v13 }
 0x50f   :  { %7101 = vst [vmem:[%s11140_s5 + $0x108] sm:$0xff] %v7016_v21  ;;  %v6754_v23 = vadd.f32 %v6591_v0, %v6222_v30  ;;  %8166 = vmatmul.msk.bf16.gmra.mxu3 %vm962_vm3, %v5697_v12  ;;  %v4143_v0 = vsel %vm4086_vm7, %v4140_v10, %v4142_v42  ;;  %v4971_v12 = vsel %vm4086_vm7, %v4968_v35, %v4970_v37  ;;  %v5710_v10 = vrot.slane %v5708_v16, 2 }
 0x510   :  { %v6593_v56 = vpop.f32.mrf.mxu0  ;;  %v4403_v53 = vpop.f32.mrf.mxu1  ;;  %v5713_v21 = vrot.slane %v5711_v26, 3 }
 0x511   :  { %v6843_v33 = vmul.f32 %v10467_v46, %v6754_v23  ;;  %v4563_v19 = vadd.f32 %v4403_v53, %v11296_v17  ;;  %v11299_v17 = vld [vmem:[#allocation57_spill] sm:$0xff] }
 0x512   :  { %v5228_v52 = vpop.f32.mrf.mxu2  ;;  %v6064_v14 = vpop.f32.mrf.mxu3  ;;  %v5714_v62 = vor.u32 %v5713_v21, %v5710_v10  ;;  %v10661_v10 = vld [vmem:[#allocation2 + $0x108] sm:$0xff] }
 0x513   :  { %v6932_v61 = vadd.f32 %v10474_v40, %v6843_v33  ;;  %v5390_v59 = vadd.f32 %v5228_v52, %v4562_v24  ;;  %7914 = vmatmul.msk.bf16.gmra.mxu1 %vm962_vm3, %v4141_v7  ;;  %v6336_v7 = vsel %vm6279_vm8, %v6333_v31, %v6335_v25  ;;  %v11298_v33 = vld [vmem:[#allocation56_spill] sm:$0xff] }
 0x515   :  { %v7017_v48 = vmax.f32 %v6932_v61, 0.0  ;;  %v6223_v34 = vadd.f32 %v6061_v3, %v5390_v59  ;;  %v5715_v61 = vsel %vm5446_vm6, %v5705_v20, %v5714_v62  ;;  %v8466_v59 = vld [vmem:[#allocation2 + $0xf0] sm:$0xff]  ;;  %v5720_v20 = vshll.u32 %v10635_v47, 16 }
 0x517   :  { %7102 = vst [vmem:[%s11140_s5 + $0x110] sm:$0xff] %v7017_v48  ;;  %v6755_v57 = vadd.f32 %v6593_v56, %v6223_v34  ;;  %8122 = vmatmul.msk.bf16.gmra.mxu2 %vm962_vm3, %v4969_v50  ;;  %v4144_v50 = vrot.slane %v8466_v59, 2  ;;  %v6339_v59 = vrot.slane %v10635_v47, 3 }
 0x518   :  { %v6596_v49 = vpop.f32.mrf.mxu0  ;;  %v4405_v63 = vpop.f32.mrf.mxu1 }
 0x519   :  { %v6844_v11 = vmul.f32 %v10467_v46, %v6755_v57  ;;  %v4564_v60 = vadd.f32 %v4405_v63, %v11297_v5  ;;  %v5717_v63 = vshrl.u32 %v10635_v47, 16 }
 0x51a   :  { %v5231_v45 = vpop.f32.mrf.mxu2  ;;  %v6066_v38 = vpop.f32.mrf.mxu3 }
 0x51b   :  { %v6933_v15 = vadd.f32 %v10474_v40, %v6844_v11  ;;  %8210 = vmatmul.msk.bf16.gmra.mxu0 %vm962_vm3, %v6334_v55  ;;  %v5391_v58 = vadd.f32 %v5231_v45, %v4563_v19  ;;  %v4972_v55 = vrot.slane %v10609_v8, 2 }
 0x51d   :  { %v7018_v51 = vmax.f32 %v6933_v15, 0.0  ;;  %v6224_v36 = vadd.f32 %v6064_v14, %v5391_v58 }
 0x51f   :  { %7103 = vst [vmem:[%s11140_s5 + $0x118] sm:$0xff] %v7018_v51  ;;  %v6756_v1 = vadd.f32 %v6596_v49, %v6224_v36  ;;  %8167 = vmatmul.msk.bf16.gmra.mxu3 %vm962_vm3, %v5706_v29  ;;  %v4145_v49 = vsel %vm4086_vm7, %v4142_v42, %v4144_v50  ;;  %v4973_v29 = vsel %vm4086_vm7, %v4970_v37, %v4972_v55  ;;  %v5719_v42 = vrot.slane %v5717_v63, 2 }
 0x520   :  { %v6598_v32 = vpop.f32.mrf.mxu0  ;;  %v4408_v28 = vpop.f32.mrf.mxu1  ;;  %v5722_v51 = vrot.slane %v5720_v20, 3 }
 0x521   :  { %v6845_v27 = vmul.f32 %v10467_v46, %v6756_v1  ;;  %v4565_v54 = vadd.f32 %v4408_v28, %v11298_v33  ;;  %v11301_v33 = vld [vmem:[#allocation41_spill] sm:$0xff] }
 0x522   :  { %v5233_v39 = vpop.f32.mrf.mxu2  ;;  %v6069_v3 = vpop.f32.mrf.mxu3  ;;  %v5723_v26 = vor.u32 %v5722_v51, %v5719_v42  ;;  %v10687_v42 = vld [vmem:[#allocation2 + $0x110] sm:$0xff] }
 0x523   :  { %v6934_v18 = vadd.f32 %v10474_v40, %v6845_v27  ;;  %v5392_v13 = vadd.f32 %v5233_v39, %v4564_v60  ;;  %7915 = vmatmul.msk.bf16.gmra.mxu1 %vm962_vm3, %v4143_v0  ;;  %v6338_v0 = vsel %vm6279_vm8, %v6335_v25, %v6337_v41  ;;  %v11300_v27 = vld [vmem:[#allocation38_spill] sm:$0xff] }
 0x525   :  { %v7019_v30 = vmax.f32 %v6934_v18, 0.0  ;;  %v6225_v23 = vadd.f32 %v6066_v38, %v5392_v13  ;;  %v5724_v18 = vsel %vm5446_vm6, %v5714_v62, %v5723_v26  ;;  %v8467_v13 = vld [vmem:[#allocation2 + $0xf8] sm:$0xff]  ;;  %v5729_v62 = vshll.u32 %v10661_v10, 16 }
 0x527   :  { %7104 = vst [vmem:[%s11140_s5 + $0x120] sm:$0xff] %v7019_v30  ;;  %v6757_v56 = vadd.f32 %v6598_v32, %v6225_v23  ;;  %8123 = vmatmul.msk.bf16.gmra.mxu2 %vm962_vm3, %v4971_v12  ;;  %v4146_v12 = vrot.slane %v8467_v13, 2  ;;  %v6341_v13 = vrot.slane %v10661_v10, 3 }
 0x528   :  { %v6601_v53 = vpop.f32.mrf.mxu0  ;;  %v4410_v6 = vpop.f32.mrf.mxu1 }
 0x529   :  { %v6846_v35 = vmul.f32 %v10467_v46, %v6757_v56  ;;  %v4566_v19 = vadd.f32 %v4410_v6, %v11299_v17  ;;  %v5726_v6 = vshrl.u32 %v10661_v10, 16 }
 0x52a   :  { %v5236_v2 = vpop.f32.mrf.mxu2  ;;  %v6071_v24 = vpop.f32.mrf.mxu3 }
 0x52b   :  { %v6935_v52 = vadd.f32 %v10474_v40, %v6846_v35  ;;  %8211 = vmatmul.msk.bf16.gmra.mxu0 %vm962_vm3, %v6336_v7  ;;  %v5393_v14 = vadd.f32 %v5236_v2, %v4565_v54  ;;  %v4974_v7 = vrot.slane %v10635_v47, 2 }
 0x52d   :  { %v7020_v31 = vmax.f32 %v6935_v52, 0.0  ;;  %v6226_v22 = vadd.f32 %v6069_v3, %v5393_v14 }
 0x52f   :  { %7105 = vst [vmem:[%s11140_s5 + $0x128] sm:$0xff] %v7020_v31  ;;  %v6758_v48 = vadd.f32 %v6601_v53, %v6226_v22  ;;  %8168 = vmatmul.msk.bf16.gmra.mxu3 %vm962_vm3, %v5715_v61  ;;  %v4147_v53 = vsel %vm4086_vm7, %v4144_v50, %v4146_v12  ;;  %v4975_v61 = vsel %vm4086_vm7, %v4972_v55, %v4974_v7  ;;  %v5728_v50 = vrot.slane %v5726_v6, 2 }
 0x530   :  { %v6603_v34 = vpop.f32.mrf.mxu0  ;;  %v4413_v57 = vpop.f32.mrf.mxu1  ;;  %v5731_v31 = vrot.slane %v5729_v62, 3 }
 0x531   :  { %v6847_v11 = vmul.f32 %v10467_v46, %v6758_v48  ;;  %v4567_v8 = vadd.f32 %v4413_v57, %v11300_v27  ;;  %v11303_v27 = vld [vmem:[#allocation47_spill] sm:$0xff] }
 0x532   :  { %v5238_v45 = vpop.f32.mrf.mxu2  ;;  %v6074_v38 = vpop.f32.mrf.mxu3  ;;  %v5732_v20 = vor.u32 %v5731_v31, %v5728_v50  ;;  %v10713_v50 = vld [vmem:[#allocation2 + $0x118] sm:$0xff] }
 0x533   :  { %v6936_v15 = vadd.f32 %v10474_v40, %v6847_v11  ;;  %v5394_v58 = vadd.f32 %v5238_v45, %v4566_v19  ;;  %7916 = vmatmul.msk.bf16.gmra.mxu1 %vm962_vm3, %v4145_v49  ;;  %v6340_v49 = vsel %vm6279_vm8, %v6337_v41, %v6339_v59  ;;  %v11302_v11 = vld [vmem:[#allocation44_spill] sm:$0xff] }
 0x535   :  { %v7021_v36 = vmax.f32 %v6936_v15, 0.0  ;;  %v6227_v1 = vadd.f32 %v6071_v24, %v5394_v58  ;;  %v5733_v15 = vsel %vm5446_vm6, %v5723_v26, %v5732_v20  ;;  %v8468_v58 = vld [vmem:[#allocation2 + $0x100] sm:$0xff]  ;;  %v5738_v26 = vshll.u32 %v10687_v42, 16 }
 0x537   :  { %7106 = vst [vmem:[%s11140_s5 + $0x130] sm:$0xff] %v7021_v36  ;;  %v6759_v32 = vadd.f32 %v6603_v34, %v6227_v1  ;;  %8124 = vmatmul.msk.bf16.gmra.mxu2 %vm962_vm3, %v4973_v29  ;;  %v4148_v29 = vrot.slane %v8468_v58, 2  ;;  %v6343_v58 = vrot.slane %v10687_v42, 3 }
 0x538   :  { %v6606_v28 = vpop.f32.mrf.mxu0  ;;  %v4415_v16 = vpop.f32.mrf.mxu1 }
 0x539   :  { %v6848_v37 = vmul.f32 %v10467_v46, %v6759_v32  ;;  %v4568_v54 = vadd.f32 %v4415_v16, %v11301_v33  ;;  %v5735_v16 = vshrl.u32 %v10687_v42, 16 }
 0x53a   :  { %v5241_v5 = vpop.f32.mrf.mxu2  ;;  %v6076_v60 = vpop.f32.mrf.mxu3 }
 0x53b   :  { %v6937_v39 = vadd.f32 %v10474_v40, %v6848_v37  ;;  %8212 = vmatmul.msk.bf16.gmra.mxu0 %vm962_vm3, %v6338_v0  ;;  %v5395_v3 = vadd.f32 %v5241_v5, %v4567_v8  ;;  %v4976_v0 = vrot.slane %v10661_v10, 2 }
 0x53d   :  { %v7022_v25 = vmax.f32 %v6937_v39, 0.0  ;;  %v6228_v21 = vadd.f32 %v6074_v38, %v5395_v3 }
 0x53f   :  { %7107 = vst [vmem:[%s11140_s5 + $0x138] sm:$0xff] %v7022_v25  ;;  %v6760_v30 = vadd.f32 %v6606_v28, %v6228_v21  ;;  %8169 = vmatmul.msk.bf16.gmra.mxu3 %vm962_vm3, %v5724_v18  ;;  %v4149_v28 = vsel %vm4086_vm7, %v4146_v12, %v4148_v29  ;;  %v4977_v18 = vsel %vm4086_vm7, %v4974_v7, %v4976_v0  ;;  %v5737_v12 = vrot.slane %v5735_v16, 2 }
 0x540   :  { %v6608_v23 = vpop.f32.mrf.mxu0  ;;  %v4418_v56 = vpop.f32.mrf.mxu1  ;;  %v5740_v25 = vrot.slane %v5738_v26, 3 }
 0x541   :  { %v6849_v35 = vmul.f32 %v10467_v46, %v6760_v30  ;;  %v4569_v47 = vadd.f32 %v4418_v56, %v11302_v11  ;;  %v11305_v11 = vld [vmem:[#allocation5_spill] sm:$0xff] }
 0x542   :  { %v5243_v2 = vpop.f32.mrf.mxu2  ;;  %v6079_v24 = vpop.f32.mrf.mxu3  ;;  %v5741_v62 = vor.u32 %v5740_v25, %v5737_v12  ;;  %v10739_v12 = vld [vmem:[#allocation2 + $0x120] sm:$0xff] }
 0x543   :  { %v6938_v52 = vadd.f32 %v10474_v40, %v6849_v35  ;;  %v5396_v14 = vadd.f32 %v5243_v2, %v4568_v54  ;;  %7917 = vmatmul.msk.bf16.gmra.mxu1 %vm962_vm3, %v4147_v53  ;;  %v6342_v53 = vsel %vm6279_vm8, %v6339_v59, %v6341_v13  ;;  %v11304_v35 = vld [vmem:[#allocation4_spill] sm:$0xff] }
 0x545   :  { %v7023_v22 = vmax.f32 %v6938_v52, 0.0  ;;  %v6229_v48 = vadd.f32 %v6076_v60, %v5396_v14  ;;  %v5742_v52 = vsel %vm5446_vm6, %v5732_v20, %v5741_v62  ;;  %v8469_v14 = vld [vmem:[#allocation2 + $0x108] sm:$0xff]  ;;  %v5747_v20 = vshll.u32 %v10713_v50, 16 }
 0x547   :  { %7108 = vst [vmem:[%s11140_s5 + $0x140] sm:$0xff] %v7023_v22  ;;  %v6761_v34 = vadd.f32 %v6608_v23, %v6229_v48  ;;  %8125 = vmatmul.msk.bf16.gmra.mxu2 %vm962_vm3, %v4975_v61  ;;  %v4150_v61 = vrot.slane %v8469_v14, 2  ;;  %v6345_v14 = vrot.slane %v10713_v50, 3 }
 0x548   :  { %v6611_v57 = vpop.f32.mrf.mxu0  ;;  %v4420_v63 = vpop.f32.mrf.mxu1 }
 0x549   :  { %v6850_v55 = vmul.f32 %v10467_v46, %v6761_v34  ;;  %v4570_v8 = vadd.f32 %v4420_v63, %v11303_v27  ;;  %v5744_v63 = vshrl.u32 %v10713_v50, 16 }
 0x54a   :  { %v5246_v17 = vpop.f32.mrf.mxu2  ;;  %v6081_v19 = vpop.f32.mrf.mxu3 }
 0x54b   :  { %v6939_v45 = vadd.f32 %v10474_v40, %v6850_v55  ;;  %8213 = vmatmul.msk.bf16.gmra.mxu0 %vm962_vm3, %v6340_v49  ;;  %v5397_v38 = vadd.f32 %v5246_v17, %v4569_v47  ;;  %v4978_v49 = vrot.slane %v10687_v42, 2 }
 0x54d   :  { %v7024_v41 = vmax.f32 %v6939_v45, 0.0  ;;  %v6230_v51 = vadd.f32 %v6079_v24, %v5397_v38 }
 0x54f   :  { %7109 = vst [vmem:[%s11140_s5 + $0x148] sm:$0xff] %v7024_v41  ;;  %v6762_v36 = vadd.f32 %v6611_v57, %v6230_v51  ;;  %8170 = vmatmul.msk.bf16.gmra.mxu3 %vm962_vm3, %v5733_v15  ;;  %v4151_v57 = vsel %vm4086_vm7, %v4148_v29, %v4150_v61  ;;  %v4979_v15 = vsel %vm4086_vm7, %v4976_v0, %v4978_v49  ;;  %v5746_v29 = vrot.slane %v5744_v63, 2 }
 0x550   :  { %v6613_v1 = vpop.f32.mrf.mxu0  ;;  %v4423_v32 = vpop.f32.mrf.mxu1  ;;  %v5749_v41 = vrot.slane %v5747_v20, 3 }
 0x551   :  { %v6851_v37 = vmul.f32 %v10467_v46, %v6762_v36  ;;  %v4571_v10 = vadd.f32 %v4423_v32, %v11304_v35  ;;  %v11307_v35 = vld [vmem:[#allocation10_spill] sm:$0xff] }
 0x552   :  { %v5248_v5 = vpop.f32.mrf.mxu2  ;;  %v6084_v60 = vpop.f32.mrf.mxu3  ;;  %v5750_v26 = vor.u32 %v5749_v41, %v5746_v29  ;;  %v10765_v29 = vld [vmem:[#allocation2 + $0x128] sm:$0xff] }
 0x553   :  { %v6940_v39 = vadd.f32 %v10474_v40, %v6851_v37  ;;  %v5398_v3 = vadd.f32 %v5248_v5, %v4570_v8  ;;  %7918 = vmatmul.msk.bf16.gmra.mxu1 %vm962_vm3, %v4149_v28  ;;  %v6344_v28 = vsel %vm6279_vm8, %v6341_v13, %v6343_v58  ;;  %v11306_v37 = vld [vmem:[#allocation7_spill] sm:$0xff] }
 0x555   :  { %v7025_v21 = vmax.f32 %v6940_v39, 0.0  ;;  %v6231_v30 = vadd.f32 %v6081_v19, %v5398_v3  ;;  %v5751_v39 = vsel %vm5446_vm6, %v5741_v62, %v5750_v26  ;;  %v8470_v3 = vld [vmem:[#allocation2 + $0x110] sm:$0xff]  ;;  %v5756_v62 = vshll.u32 %v10739_v12, 16 }
 0x557   :  { %7110 = vst [vmem:[%s11140_s5 + $0x150] sm:$0xff] %v7025_v21  ;;  %v6763_v23 = vadd.f32 %v6613_v1, %v6231_v30  ;;  %8126 = vmatmul.msk.bf16.gmra.mxu2 %vm962_vm3, %v4977_v18  ;;  %v4152_v18 = vrot.slane %v8470_v3, 2  ;;  %v6347_v3 = vrot.slane %v10739_v12, 3 }
 0x558   :  { %v6616_v56 = vpop.f32.mrf.mxu0  ;;  %v4425_v6 = vpop.f32.mrf.mxu1 }
 0x559   :  { %v6852_v7 = vmul.f32 %v10467_v46, %v6763_v23  ;;  %v4572_v47 = vadd.f32 %v4425_v6, %v11305_v11  ;;  %v5753_v6 = vshrl.u32 %v10739_v12, 16 }
 0x55a   :  { %v5251_v33 = vpop.f32.mrf.mxu2  ;;  %v6086_v54 = vpop.f32.mrf.mxu3 }
 0x55b   :  { %v6941_v2 = vadd.f32 %v10474_v40, %v6852_v7  ;;  %8214 = vmatmul.msk.bf16.gmra.mxu0 %vm962_vm3, %v6342_v53  ;;  %v5399_v24 = vadd.f32 %v5251_v33, %v4571_v10  ;;  %v4980_v53 = vrot.slane %v10713_v50, 2 }
 0x55d   :  { %v7026_v59 = vmax.f32 %v6941_v2, 0.0  ;;  %v6232_v31 = vadd.f32 %v6084_v60, %v5399_v24 }
 0x55f   :  { %7111 = vst [vmem:[%s11140_s5 + $0x158] sm:$0xff] %v7026_v59  ;;  %v6764_v22 = vadd.f32 %v6616_v56, %v6232_v31  ;;  %8171 = vmatmul.msk.bf16.gmra.mxu3 %vm962_vm3, %v5742_v52  ;;  %v4153_v56 = vsel %vm4086_vm7, %v4150_v61, %v4152_v18  ;;  %v4981_v52 = vsel %vm4086_vm7, %v4978_v49, %v4980_v53  ;;  %v5755_v61 = vrot.slane %v5753_v6, 2 }
 0x560   :  { %v6618_v48 = vpop.f32.mrf.mxu0  ;;  %v4428_v34 = vpop.f32.mrf.mxu1  ;;  %v5758_v59 = vrot.slane %v5756_v62, 3 }
 0x561   :  { %v6853_v55 = vmul.f32 %v10467_v46, %v6764_v22  ;;  %v4573_v42 = vadd.f32 %v4428_v34, %v11306_v37  ;;  %v11309_v37 = vld [vmem:[#allocation14_spill] sm:$0xff] }
 0x562   :  { %v5253_v17 = vpop.f32.mrf.mxu2  ;;  %v6089_v19 = vpop.f32.mrf.mxu3  ;;  %v5759_v20 = vor.u32 %v5758_v59, %v5755_v61  ;;  %v10791_v61 = vld [vmem:[#allocation2 + $0x130] sm:$0xff] }
 0x563   :  { %v6942_v45 = vadd.f32 %v10474_v40, %v6853_v55  ;;  %v5400_v38 = vadd.f32 %v5253_v17, %v4572_v47  ;;  %7919 = vmatmul.msk.bf16.gmra.mxu1 %vm962_vm3, %v4151_v57  ;;  %v6346_v57 = vsel %vm6279_vm8, %v6343_v58, %v6345_v14  ;;  %v11308_v55 = vld [vmem:[#allocation12_spill] sm:$0xff] }
 0x565   :  { %v7027_v51 = vmax.f32 %v6942_v45, 0.0  ;;  %v6233_v36 = vadd.f32 %v6086_v54, %v5400_v38  ;;  %v5760_v45 = vsel %vm5446_vm6, %v5750_v26, %v5759_v20  ;;  %v8471_v38 = vld [vmem:[#allocation2 + $0x118] sm:$0xff]  ;;  %v5765_v26 = vshll.u32 %v10765_v29, 16 }
 0x567   :  { %7112 = vst [vmem:[%s11140_s5 + $0x160] sm:$0xff] %v7027_v51  ;;  %v6765_v1 = vadd.f32 %v6618_v48, %v6233_v36  ;;  %8127 = vmatmul.msk.bf16.gmra.mxu2 %vm962_vm3, %v4979_v15  ;;  %v4154_v15 = vrot.slane %v8471_v38, 2  ;;  %v6349_v38 = vrot.slane %v10765_v29, 3 }
 0x568   :  { %v6621_v32 = vpop.f32.mrf.mxu0  ;;  %v4430_v16 = vpop.f32.mrf.mxu1 }
 0x569   :  { %v6854_v0 = vmul.f32 %v10467_v46, %v6765_v1  ;;  %v4574_v10 = vadd.f32 %v4430_v16, %v11307_v35  ;;  %v5762_v16 = vshrl.u32 %v10765_v29, 16 }
 0x56a   :  { %v5256_v27 = vpop.f32.mrf.mxu2  ;;  %v6091_v8 = vpop.f32.mrf.mxu3 }
 0x56b   :  { %v6943_v5 = vadd.f32 %v10474_v40, %v6854_v0  ;;  %8215 = vmatmul.msk.bf16.gmra.mxu0 %vm962_vm3, %v6344_v28  ;;  %v5401_v60 = vadd.f32 %v5256_v27, %v4573_v42  ;;  %v4982_v28 = vrot.slane %v10739_v12, 2 }
 0x56d   :  { %v7028_v13 = vmax.f32 %v6943_v5, 0.0  ;;  %v6234_v25 = vadd.f32 %v6089_v19, %v5401_v60 }
 0x56f   :  { %7113 = vst [vmem:[%s11140_s5 + $0x168] sm:$0xff] %v7028_v13  ;;  %v6766_v21 = vadd.f32 %v6621_v32, %v6234_v25  ;;  %8172 = vmatmul.msk.bf16.gmra.mxu3 %vm962_vm3, %v5751_v39  ;;  %v4155_v32 = vsel %vm4086_vm7, %v4152_v18, %v4154_v15  ;;  %v4983_v39 = vsel %vm4086_vm7, %v4980_v53, %v4982_v28  ;;  %v5764_v18 = vrot.slane %v5762_v16, 2 }
 0x570   :  { %v6623_v30 = vpop.f32.mrf.mxu0  ;;  %v4433_v23 = vpop.f32.mrf.mxu1  ;;  %v5767_v13 = vrot.slane %v5765_v26, 3 }
 0x571   :  { %v6855_v7 = vmul.f32 %v10467_v46, %v6766_v21  ;;  %v4575_v50 = vadd.f32 %v4433_v23, %v11308_v55 }
 0x572   :  { %v5258_v33 = vpop.f32.mrf.mxu2  ;;  %v6094_v54 = vpop.f32.mrf.mxu3  ;;  %v5768_v62 = vor.u32 %v5767_v13, %v5764_v18  ;;  %v10827_v18 = vld [vmem:[#allocation2 + $0x138] sm:$0xff] }
 0x573   :  { %v6944_v2 = vadd.f32 %v10474_v40, %v6855_v7  ;;  %v5402_v24 = vadd.f32 %v5258_v33, %v4574_v10  ;;  %7920 = vmatmul.msk.bf16.gmra.mxu1 %vm962_vm3, %v4153_v56  ;;  %v6348_v56 = vsel %vm6279_vm8, %v6345_v14, %v6347_v3  ;;  %v11310_v7 = vld [vmem:[#allocation16_spill] sm:$0xff] }
 0x575   :  { %v7029_v31 = vmax.f32 %v6944_v2, 0.0  ;;  %v6235_v22 = vadd.f32 %v6091_v8, %v5402_v24  ;;  %v5769_v2 = vsel %vm5446_vm6, %v5759_v20, %v5768_v62  ;;  %v8472_v24 = vld [vmem:[#allocation2 + $0x120] sm:$0xff] }
 0x577   :  { %7114 = vst [vmem:[%s11140_s5 + $0x170] sm:$0xff] %v7029_v31  ;;  %v6767_v48 = vadd.f32 %v6623_v30, %v6235_v22  ;;  %8128 = vmatmul.msk.bf16.gmra.mxu2 %vm962_vm3, %v4981_v52  ;;  %v4156_v52 = vrot.slane %v8472_v24, 2  ;;  %v6351_v24 = vrot.slane %v10791_v61, 3 }
 0x578   :  { %v6626_v34 = vpop.f32.mrf.mxu0  ;;  %v4435_v63 = vpop.f32.mrf.mxu1 }
 0x579   :  { %v6856_v49 = vmul.f32 %v10467_v46, %v6767_v48  ;;  %v4576_v42 = vadd.f32 %v4435_v63, %v11309_v37  ;;  %v4157_v22 = vsel %vm4086_vm7, %v4154_v15, %v4156_v52  ;;  %v4984_v48 = vrot.slane %v10765_v29, 2  ;;  %v10804_v63 = vld [vmem:[%s11138_s3] ss:$0 sm:$0xff] }
 0x57a   :  { %v5261_v11 = vpop.f32.mrf.mxu2  ;;  %v6096_v47 = vpop.f32.mrf.mxu3 }
 0x57b   :  { %v6945_v17 = vadd.f32 %v10474_v40, %v6856_v49  ;;  %8216 = vmatmul.msk.bf16.gmra.mxu0 %vm962_vm3, %v6346_v57  ;;  %v5403_v19 = vadd.f32 %v5261_v11, %v4575_v50  ;;  %v5774_v57 = vshll.u32 %v10791_v61, 16  ;;  %v11311_v49 = vld [vmem:[#allocation18_spill] sm:$0xff] }
 0x57d   :  { %v7030_v58 = vmax.f32 %v6945_v17, 0.0  ;;  %v6236_v41 = vadd.f32 %v6094_v54, %v5403_v19 }
 0x57f   :  { %7115 = vst [vmem:[%s11140_s5 + $0x178] sm:$0xff] %v7030_v58  ;;  %v6768_v51 = vadd.f32 %v6626_v34, %v6236_v41  ;;  %8173 = vmatmul.msk.bf16.gmra.mxu3 %vm962_vm3, %v5760_v45  ;;  %v5771_v34 = vshrl.u32 %v10791_v61, 16  ;;  %v4985_v45 = vsel %vm4086_vm7, %v4982_v28, %v4984_v48  ;;  %v5776_v58 = vrot.slane %v5774_v57, 3 }
 0x580   :  { %v6628_v36 = vpop.f32.mrf.mxu0  ;;  %v4438_v1 = vpop.f32.mrf.mxu1 }
 0x581   :  { %v6857_v0 = vmul.f32 %v10467_v46, %v6768_v51  ;;  %v4577_v12 = vadd.f32 %v4438_v1, %v11310_v7  ;;  %v5773_v15 = vrot.slane %v5771_v34, 2  ;;  %v11313_v7 = vld [vmem:[#allocation22_spill] sm:$0xff] }
 0x582   :  { %v5263_v27 = vpop.f32.mrf.mxu2  ;;  %v6099_v8 = vpop.f32.mrf.mxu3 }
 0x583   :  { %v6946_v5 = vadd.f32 %v10474_v40, %v6857_v0  ;;  %v5404_v60 = vadd.f32 %v5263_v27, %v4576_v42  ;;  %7921 = vmatmul.msk.bf16.gmra.mxu1 %vm962_vm3, %v4155_v32  ;;  %v6350_v32 = vsel %vm6279_vm8, %v6347_v3, %v6349_v38  ;;  %v5777_v26 = vor.u32 %v5776_v58, %v5773_v15  ;;  %v11312_v0 = vld [vmem:[#allocation20_spill] sm:$0xff]  ;;  %v10853_v15 = vld [vmem:[#allocation2 + $0x140] sm:$0xff] }
 0x585   :  { %v7031_v25 = vmax.f32 %v6946_v5, 0.0  ;;  %v6237_v21 = vadd.f32 %v6096_v47, %v5404_v60  ;;  %v10811_v47 = vld [vmem:[%s11139_s4] ss:$0 sm:$0xff]  ;;  %v5778_v5 = vsel %vm5446_vm6, %v5768_v62, %v5777_v26  ;;  %v8475_v60 = vld [vmem:[#allocation2 + $0x128] sm:$0xff]  ;;  %v5783_v62 = vshll.u32 %v10827_v18, 16 }
 0x587   :  { %7116 = vst [vmem:[%s11140_s5 + $0x180] sm:$0xff] %v7031_v25  ;;  %v6769_v30 = vadd.f32 %v6628_v36, %v6237_v21  ;;  %8129 = vmatmul.msk.bf16.gmra.mxu2 %vm962_vm3, %v4983_v39  ;;  %v4158_v39 = vrot.slane %v8475_v60, 2  ;;  %v6353_v60 = vrot.slane %v10827_v18, 3 }
 0x588   :  { %v6631_v23 = vpop.f32.mrf.mxu0  ;;  %v4440_v6 = vpop.f32.mrf.mxu1 }
 0x589   :  { %v6858_v53 = vmul.f32 %v10467_v46, %v6769_v30  ;;  %v4578_v55 = vadd.f32 %v4440_v6, %v11311_v49  ;;  %v5780_v6 = vshrl.u32 %v10827_v18, 16 }
 0x58a   :  { %v5266_v35 = vpop.f32.mrf.mxu2  ;;  %v6101_v10 = vpop.f32.mrf.mxu3 }
 0x58b   :  { %v6947_v33 = vadd.f32 %v10474_v40, %v6858_v53  ;;  %8217 = vmatmul.msk.bf16.gmra.mxu0 %vm962_vm3, %v6348_v56  ;;  %v5405_v54 = vadd.f32 %v5266_v35, %v4577_v12  ;;  %v4986_v56 = vrot.slane %v10791_v61, 2 }
 0x58d   :  { %v7032_v14 = vmax.f32 %v6947_v33, 0.0  ;;  %v6238_v59 = vadd.f32 %v6099_v8, %v5405_v54 }
 0x58f   :  { %7117 = vst [vmem:[%s11140_s5 + $0x188] sm:$0xff] %v7032_v14  ;;  %v6770_v46 = vadd.f32 %v6631_v23, %v6238_v59  ;;  %8174 = vmatmul.msk.bf16.gmra.mxu3 %vm962_vm3, %v5769_v2  ;;  %v4159_v23 = vsel %vm4086_vm7, %v4156_v52, %v4158_v39  ;;  %v4987_v2 = vsel %vm4086_vm7, %v4984_v48, %v4986_v56  ;;  %v5782_v52 = vrot.slane %v5780_v6, 2 }
 0x590   :  { %v6633_v31 = vpop.f32.mrf.mxu0  ;;  %v4443_v40 = vpop.f32.mrf.mxu1  ;;  %v5785_v14 = vrot.slane %v5783_v62, 3 }
 0x591   :  { %v6859_v20 = vmul.f32 %v10804_v63, %v6770_v46  ;;  %v4579_v29 = vadd.f32 %v4443_v40, %v11312_v0  ;;  %v11315_v0 = vld [vmem:[#allocation26_spill] sm:$0xff] }
 0x592   :  { %v5268_v50 = vpop.f32.mrf.mxu2  ;;  %v6104_v11 = vpop.f32.mrf.mxu3  ;;  %v5786_v57 = vor.u32 %v5785_v14, %v5782_v52  ;;  %v10879_v52 = vld [vmem:[#allocation2 + $0x148] sm:$0xff] }
 0x593   :  { %v6948_v17 = vadd.f32 %v10811_v47, %v6859_v20  ;;  %v5406_v19 = vadd.f32 %v5268_v50, %v4578_v55  ;;  %7922 = vmatmul.msk.bf16.gmra.mxu1 %vm962_vm3, %v4157_v22  ;;  %v6352_v22 = vsel %vm6279_vm8, %v6349_v38, %v6351_v24  ;;  %v11314_v20 = vld [vmem:[#allocation24_spill] sm:$0xff] }
 0x595   :  { %v7033_v41 = vmax.f32 %v6948_v17, 0.0  ;;  %v6239_v51 = vadd.f32 %v6101_v10, %v5406_v19  ;;  %v5787_v17 = vsel %vm5446_vm6, %v5777_v26, %v5786_v57  ;;  %v8476_v19 = vld [vmem:[#allocation2 + $0x130] sm:$0xff]  ;;  %v5792_v26 = vshll.u32 %v10853_v15, 16 }
 0x597   :  { %7118 = vst [vmem:[%s11140_s5 + $0x190] sm:$0xff] %v7033_v41  ;;  %v6771_v36 = vadd.f32 %v6633_v31, %v6239_v51  ;;  %8130 = vmatmul.msk.bf16.gmra.mxu2 %vm962_vm3, %v4985_v45  ;;  %v4160_v45 = vrot.slane %v8476_v19, 2  ;;  %v6355_v19 = vrot.slane %v10853_v15, 3 }
 0x598   :  { %v6636_v1 = vpop.f32.mrf.mxu0  ;;  %v4445_v16 = vpop.f32.mrf.mxu1 }
 0x599   :  { %v6860_v28 = vmul.f32 %v10804_v63, %v6771_v36  ;;  %v4580_v12 = vadd.f32 %v4445_v16, %v11313_v7  ;;  %v5789_v16 = vshrl.u32 %v10853_v15, 16 }
 0x59a   :  { %v5271_v37 = vpop.f32.mrf.mxu2  ;;  %v6106_v42 = vpop.f32.mrf.mxu3 }
 0x59b   :  { %v6949_v27 = vadd.f32 %v10811_v47, %v6860_v28  ;;  %8218 = vmatmul.msk.bf16.gmra.mxu0 %vm962_vm3, %v6350_v32  ;;  %v5407_v8 = vadd.f32 %v5271_v37, %v4579_v29  ;;  %v4988_v32 = vrot.slane %v10827_v18, 2 }
 0x59d   :  { %v7034_v3 = vmax.f32 %v6949_v27, 0.0  ;;  %v6240_v13 = vadd.f32 %v6104_v11, %v5407_v8 }
 0x59f   :  { %7119 = vst [vmem:[%s11140_s5 + $0x198] sm:$0xff] %v7034_v3  ;;  %v6772_v25 = vadd.f32 %v6636_v1, %v6240_v13  ;;  %8175 = vmatmul.msk.bf16.gmra.mxu3 %vm962_vm3, %v5778_v5  ;;  %v4161_v1 = vsel %vm4086_vm7, %v4158_v39, %v4160_v45  ;;  %v4989_v5 = vsel %vm4086_vm7, %v4986_v56, %v4988_v32  ;;  %v5791_v39 = vrot.slane %v5789_v16, 2 }
 0x5a0   :  { %v6638_v21 = vpop.f32.mrf.mxu0  ;;  %v4448_v30 = vpop.f32.mrf.mxu1  ;;  %v5794_v3 = vrot.slane %v5792_v26, 3 }
 0x5a1   :  { %v6861_v53 = vmul.f32 %v10804_v63, %v6772_v25  ;;  %v4581_v61 = vadd.f32 %v4448_v30, %v11314_v20  ;;  %v11317_v20 = vld [vmem:[#allocation30_spill] sm:$0xff] }
 0x5a2   :  { %v5273_v35 = vpop.f32.mrf.mxu2  ;;  %v6109_v10 = vpop.f32.mrf.mxu3  ;;  %v5795_v62 = vor.u32 %v5794_v3, %v5791_v39  ;;  %v10905_v39 = vld [vmem:[#allocation2 + $0x150] sm:$0xff] }
 0x5a3   :  { %v6950_v33 = vadd.f32 %v10811_v47, %v6861_v53  ;;  %v5408_v54 = vadd.f32 %v5273_v35, %v4580_v12  ;;  %7923 = vmatmul.msk.bf16.gmra.mxu1 %vm962_vm3, %v4159_v23  ;;  %v6354_v23 = vsel %vm6279_vm8, %v6351_v24, %v6353_v60  ;;  %v11316_v53 = vld [vmem:[#allocation28_spill] sm:$0xff] }
 0x5a5   :  { %v7035_v59 = vmax.f32 %v6950_v33, 0.0  ;;  %v6241_v46 = vadd.f32 %v6106_v42, %v5408_v54  ;;  %v5796_v33 = vsel %vm5446_vm6, %v5786_v57, %v5795_v62  ;;  %v8477_v54 = vld [vmem:[#allocation2 + $0x138] sm:$0xff]  ;;  %v5801_v57 = vshll.u32 %v10879_v52, 16 }
 0x5a7   :  { %7120 = vst [vmem:[%s11140_s5 + $0x1a0] sm:$0xff] %v7035_v59  ;;  %v6773_v31 = vadd.f32 %v6638_v21, %v6241_v46  ;;  %8131 = vmatmul.msk.bf16.gmra.mxu2 %vm962_vm3, %v4987_v2  ;;  %v4162_v2 = vrot.slane %v8477_v54, 2 }
 0x5a8   :  { %v6641_v40 = vpop.f32.mrf.mxu0  ;;  %v4450_v34 = vpop.f32.mrf.mxu1 }
 0x5a9   :  { %v6862_v48 = vmul.f32 %v10804_v63, %v6773_v31  ;;  %v4582_v29 = vadd.f32 %v4450_v34, %v11315_v0  ;;  %v5798_v34 = vshrl.u32 %v10879_v52, 16 }
 0x5aa   :  { %v5276_v49 = vpop.f32.mrf.mxu2  ;;  %v6111_v55 = vpop.f32.mrf.mxu3 }
 0x5ab   :  { %v6951_v50 = vadd.f32 %v10811_v47, %v6862_v48  ;;  %8219 = vmatmul.msk.bf16.gmra.mxu0 %vm962_vm3, %v6352_v22  ;;  %v5409_v11 = vadd.f32 %v5276_v49, %v4581_v61  ;;  %v4990_v22 = vrot.slane %v10853_v15, 2 }
 0x5ad   :  { %v7036_v38 = vmax.f32 %v6951_v50, 0.0  ;;  %v6242_v58 = vadd.f32 %v6109_v10, %v5409_v11 }
 0x5af   :  { %7121 = vst [vmem:[%s11140_s5 + $0x1a8] sm:$0xff] %v7036_v38  ;;  %v6774_v41 = vadd.f32 %v6641_v40, %v6242_v58  ;;  %8176 = vmatmul.msk.bf16.gmra.mxu3 %vm962_vm3, %v5787_v17  ;;  %v4163_v40 = vsel %vm4086_vm7, %v4160_v45, %v4162_v2  ;;  %v4991_v17 = vsel %vm4086_vm7, %v4988_v32, %v4990_v22  ;;  %v5800_v45 = vrot.slane %v5798_v34, 2 }
 0x5b0   :  { %v6643_v51 = vpop.f32.mrf.mxu0  ;;  %v4453_v36 = vpop.f32.mrf.mxu1  ;;  %v5803_v38 = vrot.slane %v5801_v57, 3 }
 0x5b1   :  { %v6863_v28 = vmul.f32 %v10804_v63, %v6774_v41  ;;  %v4583_v18 = vadd.f32 %v4453_v36, %v11316_v53  ;;  %v5810_v53 = vshll.u32 %v10905_v39, 16 }
 0x5b2   :  { %v5278_v37 = vpop.f32.mrf.mxu2  ;;  %v6114_v42 = vpop.f32.mrf.mxu3  ;;  %v5804_v26 = vor.u32 %v5803_v38, %v5800_v45  ;;  %v8479_v45 = vld [vmem:[#allocation2 + $0x148] sm:$0xff] }
 0x5b3   :  { %v6952_v27 = vadd.f32 %v10811_v47, %v6863_v28  ;;  %v5410_v8 = vadd.f32 %v5278_v37, %v4582_v29  ;;  %7924 = vmatmul.msk.bf16.gmra.mxu1 %vm962_vm3, %v4161_v1  ;;  %v6356_v1 = vsel %vm6279_vm8, %v6353_v60, %v6355_v19  ;;  %v11318_v28 = vld [vmem:[#allocation32_spill] sm:$0xff]  ;;  %v4166_v38 = vrot.slane %v8479_v45, 2 }
 0x5b5   :  { %v7037_v13 = vmax.f32 %v6952_v27, 0.0  ;;  %v6243_v25 = vadd.f32 %v6111_v55, %v5410_v8  ;;  %v5805_v27 = vsel %vm5446_vm6, %v5795_v62, %v5804_v26  ;;  %v8478_v8 = vld [vmem:[#allocation2 + $0x140] sm:$0xff]  ;;  %v4992_v62 = vrot.slane %v10879_v52, 2 }
 0x5b7   :  { %7122 = vst [vmem:[%s11140_s5 + $0x1b0] sm:$0xff] %v7037_v13  ;;  %v6775_v21 = vadd.f32 %v6643_v51, %v6243_v25  ;;  %8132 = vmatmul.msk.bf16.gmra.mxu2 %vm962_vm3, %v4989_v5  ;;  %v4164_v5 = vrot.slane %v8478_v8, 2  ;;  %v7166_v25 = vld [vmem:[%s11137_s1 + $0x160] sm:$0xf] }
 0x5b8   :  { %v6646_v30 = vpop.f32.mrf.mxu0  ;;  %v4455_v6 = vpop.f32.mrf.mxu1  ;;  %227 = vst.msk [vmem:[#allocation2 + $0x160] sm:$0xf] %vm133_vm1, %v7166_v25 }
 0x5b9   :  { %v6864_v56 = vmul.f32 %v10804_v63, %v6775_v21  ;;  %v4584_v61 = vadd.f32 %v4455_v6, %v11317_v20  ;;  %v7167_v21 = vld [vmem:[%s11137_s1 + $0x164] sm:$0xf]  ;;  %v4165_v6 = vsel %vm4086_vm7, %v4162_v2, %v4164_v5  ;;  %v4993_v2 = vsel %vm4086_vm7, %v4990_v22, %v4992_v62 }
 0x5ba   :  { %v5281_v7 = vpop.f32.mrf.mxu2  ;;  %v6116_v12 = vpop.f32.mrf.mxu3  ;;  %228 = vst.msk [vmem:[#allocation2 + $0x164] sm:$0xf] %vm133_vm1, %v7167_v21 }
 0x5bb   :  { %v6953_v35 = vadd.f32 %v10811_v47, %v6864_v56  ;;  %8220 = vmatmul.msk.bf16.gmra.mxu0 %vm962_vm3, %v6354_v23  ;;  %v5411_v10 = vadd.f32 %v5281_v7, %v4583_v18  ;;  %v5807_v56 = vshrl.u32 %v10905_v39, 16  ;;  %v11319_v7 = vld [vmem:[#allocation34_spill] sm:$0xff] }
 0x5bd   :  { %v7038_v24 = vmax.f32 %v6953_v35, 0.0  ;;  %v6244_v14 = vadd.f32 %v6114_v42, %v5411_v10 }
 0x5bf   :  { %7123 = vst [vmem:[%s11140_s5 + $0x1b8] sm:$0xff] %v7038_v24  ;;  %v6776_v59 = vadd.f32 %v6646_v30, %v6244_v14  ;;  %8177 = vmatmul.msk.bf16.gmra.mxu3 %vm962_vm3, %v5796_v33  ;;  %v6357_v24 = vrot.slane %v10879_v52, 3  ;;  %v5809_v14 = vrot.slane %v5807_v56, 2 }
 0x5c0   :  { %v6648_v46 = vpop.f32.mrf.mxu0  ;;  %v4458_v31 = vpop.f32.mrf.mxu1 }
 0x5c1   :  { %v6865_v48 = vmul.f32 %v10804_v63, %v6776_v59  ;;  %v4585_v15 = vadd.f32 %v4458_v31, %v11318_v28  ;;  %v5812_v59 = vrot.slane %v5810_v53, 3  ;;  %v6358_v57 = vsel %vm6279_vm8, %v6355_v19, %v6357_v24 }
 0x5c2   :  { %v5283_v49 = vpop.f32.mrf.mxu2  ;;  %v6119_v55 = vpop.f32.mrf.mxu3 }
 0x5c3   :  { %v6954_v50 = vadd.f32 %v10811_v47, %v6865_v48  ;;  %v5412_v11 = vadd.f32 %v5283_v49, %v4584_v61  ;;  %7925 = vmatmul.msk.bf16.gmra.mxu1 %vm962_vm3, %v4163_v40  ;;  %v5813_v20 = vor.u32 %v5812_v59, %v5809_v14  ;;  %v11320_v61 = vld [vmem:[#allocation36_spill] sm:$0xff] }
 0x5c5   :  { %v7039_v58 = vmax.f32 %v6954_v50, 0.0  ;;  %v6245_v41 = vadd.f32 %v6116_v12, %v5412_v11 }
 0x5c7   :  { %7124 = vst [vmem:[%s11140_s5 + $0x1c0] sm:$0xff] %v7039_v58  ;;  %v6777_v51 = vadd.f32 %v6648_v46, %v6245_v41  ;;  %8133 = vmatmul.msk.bf16.gmra.mxu2 %vm962_vm3, %v4991_v17  ;;  %v5814_v17 = vsel %vm5446_vm6, %v5804_v26, %v5813_v20  ;;  %v10939_v58 = vld [vmem:[#allocation2 + $0x158] sm:$0xff] }
 0x5c8   :  { %v6651_v36 = vpop.f32.mrf.mxu0  ;;  %v4460_v16 = vpop.f32.mrf.mxu1  ;;  %v5816_v26 = vshrl.u32 %v10939_v58, 16  ;;  %v5819_v28 = vshll.u32 %v10939_v58, 16 }
 0x5c9   :  { %v6866_v32 = vmul.f32 %v10804_v63, %v6777_v51  ;;  %v4586_v12 = vadd.f32 %v4460_v16, %v11319_v7  ;;  %v4167_v16 = vsel %vm4086_vm7, %v4164_v5, %v4166_v38  ;;  %v6359_v5 = vrot.slane %v10905_v39, 3 }
 0x5ca   :  { %v5286_v0 = vpop.f32.mrf.mxu2  ;;  %v6121_v29 = vpop.f32.mrf.mxu3 }
 0x5cb   :  { %v6955_v37 = vadd.f32 %v10811_v47, %v6866_v32  ;;  %8221 = vmatmul.msk.bf16.gmra.mxu0 %vm962_vm3, %v6356_v1  ;;  %v5413_v42 = vadd.f32 %v5286_v0, %v4585_v15  ;;  %v4994_v32 = vrot.slane %v10905_v39, 2  ;;  %v11321_v0 = vld [vmem:[#allocation39_spill] sm:$0xff]  ;;  %v6360_v53 = vsel %vm6279_vm8, %v6357_v24, %v6359_v5 }
 0x5cd   :  { %v7040_v60 = vmax.f32 %v6955_v37, 0.0  ;;  %v6246_v3 = vadd.f32 %v6119_v55, %v5413_v42 }
 0x5cf   :  { %7125 = vst [vmem:[%s11140_s5 + $0x1c8] sm:$0xff] %v7040_v60  ;;  %v6778_v13 = vadd.f32 %v6651_v36, %v6246_v3  ;;  %8178 = vmatmul.msk.bf16.gmra.mxu3 %vm962_vm3, %v5805_v27  ;;  %v4995_v60 = vsel %vm4086_vm7, %v4992_v62, %v4994_v32  ;;  %v5818_v3 = vrot.slane %v5816_v26, 2 }
 0x5d0   :  { %v6653_v30 = vpop.f32.mrf.mxu0  ;;  %v4463_v23 = vpop.f32.mrf.mxu1 }
 0x5d1   :  { %v6867_v18 = vmul.f32 %v10804_v63, %v6778_v13  ;;  %v4587_v52 = vadd.f32 %v4463_v23, %v11320_v61  ;;  %v5821_v13 = vrot.slane %v5819_v28, 3  ;;  %v5440_v23 = vld [vmem:[#allocation2 + $0x164] sm:$0x7] }
 0x5d2   :  { %v5288_v35 = vpop.f32.mrf.mxu2  ;;  %v6124_v10 = vpop.f32.mrf.mxu3  ;;  %v5444_v7 = vunpack.c.l.b16 %v5440_v23  ;;  %v4697_v28 = vld [vmem:[#allocation2 + $0x164] sm:$0x3] }
 0x5d3   :  { %v6956_v33 = vadd.f32 %v10811_v47, %v6867_v18  ;;  %v5414_v54 = vadd.f32 %v5288_v35, %v4586_v12  ;;  %7926 = vmatmul.msk.bf16.gmra.mxu1 %vm962_vm3, %v4165_v6  ;;  %v5822_v18 = vor.u32 %v5821_v13, %v5818_v3  ;;  %v11322_v35 = vld [vmem:[#allocation42_spill] sm:$0xff] }
 0x5d5   :  { %v7041_v46 = vmax.f32 %v6956_v33, 0.0  ;;  %v6247_v31 = vadd.f32 %v6121_v29, %v5414_v54  ;;  %v5823_v59 = vsel %vm5446_vm6, %v5813_v20, %v5822_v18 }
 0x5d7   :  { %7126 = vst [vmem:[%s11140_s5 + $0x1d0] sm:$0xff] %v7041_v46  ;;  %v6779_v40 = vadd.f32 %v6653_v30, %v6247_v31  ;;  %8134 = vmatmul.msk.bf16.gmra.mxu2 %vm962_vm3, %v4993_v2  ;;  %v10955_v30 = vld [vmem:[#allocation2 + $0x160] sm:$0xf]  ;;  %v8480_v46 = vld [vmem:[#allocation2 + $0x150] sm:$0xff] }
 0x5d8   :  { %v6656_v34 = vpop.f32.mrf.mxu0  ;;  %v4465_v48 = vpop.f32.mrf.mxu1  ;;  %v4870_v39 = vunpack.c.l.b16 %v10955_v30  ;;  %v4168_v24 = vrot.slane %v8480_v46, 2  ;;  %v11325_v30 = vld [vmem:[#allocation58_spill] sm:$0xff] }
 0x5d9   :  { %v6868_v22 = vmul.f32 %v10804_v63, %v6779_v40  ;;  %v4588_v29 = vadd.f32 %v4465_v48, %v11321_v0  ;;  %v4170_v23 = vrot.slane %v11325_v30, 2 }
 0x5da   :  { %v5291_v49 = vpop.f32.mrf.mxu2  ;;  %v6126_v55 = vpop.f32.mrf.mxu3  ;;  %v10968_v31 = vpack.c.b16 %v5444_v7, %v4870_v39  ;;  %v4169_v61 = vsel %vm4086_vm7, %v4166_v38, %v4168_v24  ;;  %v6361_v38 = vrot.slane %v10939_v58, 3 }
 0x5db   :  { %v6957_v50 = vadd.f32 %v10811_v47, %v6868_v22  ;;  %8222 = vmatmul.msk.bf16.gmra.mxu0 %vm962_vm3, %v6358_v57  ;;  %v5415_v11 = vadd.f32 %v5291_v49, %v4587_v52  ;;  %v4996_v52 = vrot.slane %v10939_v58, 2 }
 0x5dc   :  { %v5825_v20 = vshrl.u32 %v10968_v31, 16  ;;  %v5828_v49 = vshll.u32 %v10968_v31, 16  ;;  %v6363_v46 = vrot.slane %v10968_v31, 3 }
 0x5dd   :  { %v7042_v19 = vmax.f32 %v6957_v50, 0.0  ;;  %v6248_v41 = vadd.f32 %v6124_v10, %v5415_v11  ;;  %v11323_v50 = vld [vmem:[#allocation45_spill] sm:$0xff] }
 0x5df   :  { %7127 = vst [vmem:[%s11140_s5 + $0x1d8] sm:$0xff] %v7042_v19  ;;  %v6780_v51 = vadd.f32 %v6656_v34, %v6248_v41  ;;  %8179 = vmatmul.msk.bf16.gmra.mxu3 %vm962_vm3, %v5814_v17 }
 0x5e0   :  { %v6658_v36 = vpop.f32.mrf.mxu0  ;;  %v4468_v1 = vpop.f32.mrf.mxu1 }
 0x5e1   :  { %v6869_v15 = vmul.f32 %v10804_v63, %v6780_v51  ;;  %v4589_v10 = vadd.f32 %v4468_v1, %v11322_v35  ;;  %v4997_v51 = vsel %vm4086_vm7, %v4994_v32, %v4996_v52  ;;  %v5830_v1 = vrot.slane %v5828_v49, 3 }
 0x5e2   :  { %v5293_v37 = vpop.f32.mrf.mxu2  ;;  %v6129_v42 = vpop.f32.mrf.mxu3  ;;  %v4871_v32 = vunpack.c.l.b16 %v4697_v28 }
 0x5e3   :  { %v6958_v27 = vadd.f32 %v10811_v47, %v6869_v15  ;;  %v5416_v8 = vadd.f32 %v5293_v37, %v4588_v29  ;;  %7927 = vmatmul.msk.bf16.gmra.mxu1 %vm962_vm3, %v4167_v16  ;;  %v6362_v29 = vsel %vm6279_vm8, %v6359_v5, %v6361_v38 }
 0x5e5   :  { %v7043_v25 = vmax.f32 %v6958_v27, 0.0  ;;  %v6249_v21 = vadd.f32 %v6126_v55, %v5416_v8  ;;  %v11324_v27 = vld [vmem:[#allocation48_spill] sm:$0xff] }
 0x5e7   :  { %7128 = vst [vmem:[%s11140_s5 + $0x1e0] sm:$0xff] %v7043_v25  ;;  %v6781_v6 = vadd.f32 %v6658_v36, %v6249_v21  ;;  %8135 = vmatmul.msk.bf16.gmra.mxu2 %vm962_vm3, %v4995_v60  ;;  %v5827_v36 = vrot.slane %v5825_v20, 2  ;;  %v11327_v20 = vld [vmem:[#allocation49_spill] sm:$0xff] }
 0x5e8   :  { %v6661_v56 = vpop.f32.mrf.mxu0  ;;  %v4470_v62 = vpop.f32.mrf.mxu1 }
 0x5e9   :  { %v6870_v12 = vmul.f32 %v10804_v63, %v6781_v6  ;;  %v4590_v11 = vadd.f32 %v4470_v62, %v11323_v50  ;;  %v4914_v6 = vpack.c.b16 %v4871_v32, %v4870_v39 }
 0x5ea   :  { %v5296_v33 = vpop.f32.mrf.mxu2  ;;  %v6131_v54 = vpop.f32.mrf.mxu3 }
 0x5eb   :  { %v6959_v2 = vadd.f32 %v10811_v47, %v6870_v12  ;;  %8223 = vmatmul.msk.bf16.gmra.mxu0 %vm962_vm3, %v6360_v53  ;;  %v5417_v14 = vadd.f32 %v5296_v33, %v4589_v10  ;;  %v4171_v12 = vsel %vm4086_vm7, %v4168_v24, %v4170_v23  ;;  %v4998_v35 = vrot.slane %v4914_v6, 2 }
 0x5ed   :  { %v7044_v40 = vmax.f32 %v6959_v2, 0.0  ;;  %v6250_v34 = vadd.f32 %v6129_v42, %v5417_v14  ;;  %v5831_v42 = vor.u32 %v5830_v1, %v5827_v36 }
 0x5ef   :  { %7129 = vst [vmem:[%s11140_s5 + $0x1e8] sm:$0xff] %v7044_v40  ;;  %v6782_v57 = vadd.f32 %v6661_v56, %v6250_v34  ;;  %8180 = vmatmul.msk.bf16.gmra.mxu3 %vm962_vm3, %v5823_v59  ;;  %v5832_v21 = vsel %vm5446_vm6, %v5822_v18, %v5831_v42  ;;  %v11326_v18 = vld [vmem:[#allocation3_spill] sm:$0xff]  ;;  %v4999_v59 = vsel %vm4086_vm7, %v4996_v52, %v4998_v35 }
 0x5f0   :  { %v6663_v48 = vpop.f32.mrf.mxu0  ;;  %v4473_v22 = vpop.f32.mrf.mxu1 }
 0x5f1   :  { %v6871_v55 = vmul.f32 %v10804_v63, %v6782_v57  ;;  %v4591_v8 = vadd.f32 %v4473_v22, %v11324_v27 }
 0x5f2   :  { %v5298_v17 = vpop.f32.mrf.mxu2  ;;  %v6134_v45 = vpop.f32.mrf.mxu3 }
 0x5f3   :  { %v6960_v19 = vadd.f32 %v10811_v47, %v6871_v55  ;;  %v5418_v41 = vadd.f32 %v5298_v17, %v4590_v11  ;;  %7928 = vmatmul.msk.bf16.gmra.mxu1 %vm962_vm3, %v4169_v61 }
 0x5f5   :  { %v7045_v16 = vmax.f32 %v6960_v19, 0.0  ;;  %v6251_v26 = vadd.f32 %v6131_v54, %v5418_v41 }
 0x5f7   :  { %7130 = vst [vmem:[%s11140_s5 + $0x1f0] sm:$0xff] %v7045_v16  ;;  %v6783_v15 = vadd.f32 %v6663_v48, %v6251_v26  ;;  %8136 = vmatmul.msk.bf16.gmra.mxu2 %vm962_vm3, %v4997_v51  ;;  %v6364_v48 = vsel %vm6279_vm8, %v6361_v38, %v6363_v46 }
 0x5f8   :  { %v6666_v0 = vpop.f32.mrf.mxu0  ;;  %v4475_v37 = vpop.f32.mrf.mxu1 }
 0x5f9   :  { %v6872_v58 = vmul.f32 %v10804_v63, %v6783_v15  ;;  %v4592_v33 = vadd.f32 %v4475_v37, %v11326_v18 }
 0x5fa   :  { %v5301_v60 = vpop.f32.mrf.mxu2  ;;  %v6136_v3 = vpop.f32.mrf.mxu3 }
 0x5fb   :  { %v6961_v13 = vadd.f32 %v10811_v47, %v6872_v58  ;;  %8224 = vmatmul.msk.bf16.gmra.mxu0 %vm962_vm3, %v6362_v29  ;;  %v5419_v25 = vadd.f32 %v5301_v60, %v4591_v8 }
 0x5fd   :  { %v7046_v5 = vmax.f32 %v6961_v13, 0.0  ;;  %v6252_v56 = vadd.f32 %v6134_v45, %v5419_v25 }
 0x5ff   :  { %7131 = vst [vmem:[%s11140_s5 + $0x1f8] sm:$0xff] %v7046_v5  ;;  %v6784_v53 = vadd.f32 %v6666_v0, %v6252_v56  ;;  %8181 = vmatmul.msk.bf16.gmra.mxu3 %vm962_vm3, %v5832_v21 }
 0x600   :  { %v6668_v62 = vpop.f32.mrf.mxu0  ;;  %v4478_v7 = vpop.f32.mrf.mxu1 }
 0x601   :  { %v6873_v10 = vmul.f32 %v10804_v63, %v6784_v53  ;;  %v4593_v49 = vadd.f32 %v4478_v7, %v11327_v20 }
 0x602   :  { %v5303_v54 = vpop.f32.mrf.mxu2  ;;  %v6139_v39 = vpop.f32.mrf.mxu3 }
 0x603   :  { %v6962_v2 = vadd.f32 %v10811_v47, %v6873_v10  ;;  %v5420_v14 = vadd.f32 %v5303_v54, %v4592_v33  ;;  %7929 = vmatmul.msk.bf16.gmra.mxu1 %vm962_vm3, %v4171_v12 }
 0x605   :  { %v7047_v40 = vmax.f32 %v6962_v2, 0.0  ;;  %v6253_v34 = vadd.f32 %v6136_v3, %v5420_v14 }
 0x607   :  { %7132 = vst [vmem:[%s11140_s5 + $0x200] sm:$0xff] %v7047_v40  ;;  %v6785_v24 = vadd.f32 %v6668_v62, %v6253_v34  ;;  %8137 = vmatmul.msk.bf16.gmra.mxu2 %vm962_vm3, %v4999_v59 }
 0x608   :  { %v6671_v57 = vpop.f32.mrf.mxu0  ;;  %v4480_v22 = vpop.f32.mrf.mxu1 }
 0x609   :  { %v6874_v61 = vmul.f32 %v10804_v63, %v6785_v24  ;;  %v4594_v38 = vadd.f32 %v4480_v22, %v9937_v9  ;;  %v11328_v24 = vld [vmem:[#allocation6_spill] sm:$0xff] }
 0x60a   :  { %v5306_v52 = vpop.f32.mrf.mxu2  ;;  %v6141_v55 = vpop.f32.mrf.mxu3 }
 0x60b   :  { %v6963_v31 = vadd.f32 %v10811_v47, %v6874_v61  ;;  %8225 = vmatmul.msk.bf16.gmra.mxu0 %vm962_vm3, %v6364_v48  ;;  %v5421_v50 = vadd.f32 %v5306_v52, %v4593_v49 }
 0x60d   :  { %v7048_v11 = vmax.f32 %v6963_v31, 0.0  ;;  %v6254_v17 = vadd.f32 %v6139_v39, %v5421_v50 }
 0x60f   :  { %7133 = vst [vmem:[%s11140_s5 + $0x208] sm:$0xff] %v7048_v11  ;;  %v6786_v45 = vadd.f32 %v6671_v57, %v6254_v17  ;;  %8182 = vmatmul.msk.bf16.gmra.mxu3 %vm962_vm3, %v5831_v42  ;;  %v11329_v11 = vld [vmem:[#allocation8_spill] sm:$0xff] }
 0x610   :  { %v6673_v19 = vpop.f32.mrf.mxu0  ;;  %v4483_v41 = vpop.f32.mrf.mxu1 }
 0x611   :  { %v6875_v51 = vmul.f32 %v10804_v63, %v6786_v45  ;;  %v4595_v42 = vadd.f32 %v4483_v41, %v9949_v44 }
 0x612   :  { %v5308_v36 = vpop.f32.mrf.mxu2  ;;  %v6144_v1 = vpop.f32.mrf.mxu3 }
 0x613   :  { %v6964_v16 = vadd.f32 %v10811_v47, %v6875_v51  ;;  %v5422_v26 = vadd.f32 %v5308_v36, %v4594_v38  ;;  %7930 = vmatmul.msk.bf16.gmra.mxu1 %vm962_vm3, %v4170_v23 }
 0x615   :  { %v7049_v28 = vmax.f32 %v6964_v16, 0.0  ;;  %v6255_v15 = vadd.f32 %v6141_v55, %v5422_v26 }
 0x617   :  { %7134 = vst [vmem:[%s11140_s5 + $0x210] sm:$0xff] %v7049_v28  ;;  %v6787_v0 = vadd.f32 %v6673_v19, %v6255_v15  ;;  %8138 = vmatmul.msk.bf16.gmra.mxu2 %vm962_vm3, %v4998_v35  ;;  %v11330_v15 = vld [vmem:[#allocation9_spill] sm:$0xff] }
 0x618   :  { %v6676_v29 = vpop.f32.mrf.mxu0  ;;  %v4485_v37 = vpop.f32.mrf.mxu1 }
 0x619   :  { %v6876_v9 = vmul.f32 %v10804_v63, %v6787_v0  ;;  %v4596_v44 = vadd.f32 %v4485_v37, %v9961_v4 }
 0x61a   :  { %v5311_v32 = vpop.f32.mrf.mxu2  ;;  %v6146_v58 = vpop.f32.mrf.mxu3 }
 0x61b   :  { %v6965_v27 = vadd.f32 %v10811_v47, %v6876_v9  ;;  %8226 = vmatmul.msk.bf16.gmra.mxu0 %vm962_vm3, %v6363_v46  ;;  %v5423_v8 = vadd.f32 %v5311_v32, %v4595_v42 }
 0x61d   :  { %v7050_v60 = vmax.f32 %v6965_v27, 0.0  ;;  %v6256_v3 = vadd.f32 %v6144_v1, %v5423_v8 }
 0x61f   :  { %7135 = vst [vmem:[%s11140_s5 + $0x218] sm:$0xff] %v7050_v60  ;;  %v6788_v13 = vadd.f32 %v6676_v29, %v6256_v3 }
 0x620   :  { %v6678_v25 = vpop.f32.mrf.mxu0  ;;  %v4488_v21 = vpop.f32.mrf.mxu1 }
 0x621   :  { %v6877_v30 = vmul.f32 %v10804_v63, %v6788_v13  ;;  %v4597_v18 = vadd.f32 %v4488_v21, %v9970_v43  ;;  %v11331_v13 = vld [vmem:[#allocation11_spill] sm:$0xff] }
 0x622   :  { %v5313_v23 = vpop.f32.mrf.mxu2  ;;  %v6149_v6 = vpop.f32.mrf.mxu3 }
 0x623   :  { %v6966_v5 = vadd.f32 %v10811_v47, %v6877_v30  ;;  %v5424_v56 = vadd.f32 %v5313_v23, %v4596_v44 }
 0x625   :  { %v7051_v53 = vmax.f32 %v6966_v5, 0.0  ;;  %v6257_v62 = vadd.f32 %v6146_v58, %v5424_v56 }
 0x627   :  { %7136 = vst [vmem:[%s11140_s5 + $0x220] sm:$0xff] %v7051_v53  ;;  %v6789_v7 = vadd.f32 %v6678_v25, %v6257_v62 }
 0x628   :  { %v6681_v12 = vpop.f32.mrf.mxu0  ;;  %v4490_v35 = vpop.f32.mrf.mxu1 }
 0x629   :  { %v6878_v10 = vmul.f32 %v10804_v63, %v6789_v7  ;;  %v4598_v57 = vadd.f32 %v4490_v35, %v11328_v24 }
 0x62a   :  { %v5316_v33 = vpop.f32.mrf.mxu2  ;;  %v6151_v4 = vpop.f32.mrf.mxu3 }
 0x62b   :  { %v6967_v54 = vadd.f32 %v10811_v47, %v6878_v10  ;;  %v5425_v39 = vadd.f32 %v5316_v33, %v4597_v18 }
 0x62d   :  { %v7052_v2 = vmax.f32 %v6967_v54, 0.0  ;;  %v6258_v14 = vadd.f32 %v6149_v6, %v5425_v39 }
 0x62f   :  { %7137 = vst [vmem:[%s11140_s5 + $0x228] sm:$0xff] %v7052_v2  ;;  %v6790_v59 = vadd.f32 %v6681_v12, %v6258_v14  ;;  %v11332_v12 = vld [vmem:[#allocation13_spill] sm:$0xff] }
 0x630   :  { %v6683_v46 = vpop.f32.mrf.mxu0  ;;  %v4493_v40 = vpop.f32.mrf.mxu1 }
 0x631   :  { %v6879_v34 = vmul.f32 %v10804_v63, %v6790_v59  ;;  %v4599_v17 = vadd.f32 %v4493_v40, %v11329_v11  ;;  %v11333_v40 = vld [vmem:[#allocation15_spill] sm:$0xff] }
 0x632   :  { %v5318_v48 = vpop.f32.mrf.mxu2  ;;  %v6154_v43 = vpop.f32.mrf.mxu3 }
 0x633   :  { %v6968_v22 = vadd.f32 %v10811_v47, %v6879_v34  ;;  %v5426_v61 = vadd.f32 %v5318_v48, %v4598_v57 }
 0x635   :  { %v7053_v20 = vmax.f32 %v6968_v22, 0.0  ;;  %v6259_v49 = vadd.f32 %v6151_v4, %v5426_v61 }
 0x637   :  { %7138 = vst [vmem:[%s11140_s5 + $0x230] sm:$0xff] %v7053_v20  ;;  %v6791_v52 = vadd.f32 %v6683_v46, %v6259_v49 }
 0x638   :  { %v6686_v55 = vpop.f32.mrf.mxu0  ;;  %v4495_v31 = vpop.f32.mrf.mxu1 }
 0x639   :  { %v6880_v50 = vmul.f32 %v10804_v63, %v6791_v52  ;;  %v4600_v0 = vadd.f32 %v4495_v31, %v11330_v15  ;;  %v11334_v31 = vld [vmem:[#allocation17_spill] sm:$0xff] }
 0x63a   :  { %v5321_v45 = vpop.f32.mrf.mxu2  ;;  %v6156_v19 = vpop.f32.mrf.mxu3 }
 0x63b   :  { %v6969_v41 = vadd.f32 %v10811_v47, %v6880_v50  ;;  %v5427_v51 = vadd.f32 %v5321_v45, %v4599_v17 }
 0x63d   :  { %v7054_v38 = vmax.f32 %v6969_v41, 0.0  ;;  %v6260_v36 = vadd.f32 %v6154_v43, %v5427_v51 }
 0x63f   :  { %7139 = vst [vmem:[%s11140_s5 + $0x238] sm:$0xff] %v7054_v38  ;;  %v6792_v1 = vadd.f32 %v6686_v55, %v6260_v36 }
 0x640   :  { %v6688_v16 = vpop.f32.mrf.mxu0  ;;  %v4498_v26 = vpop.f32.mrf.mxu1 }
 0x641   :  { %v6881_v28 = vmul.f32 %v10804_v63, %v6792_v1  ;;  %v4601_v25 = vadd.f32 %v4498_v26, %v11331_v13  ;;  %v11335_v26 = vld [vmem:[#allocation19_spill] sm:$0xff] }
 0x642   :  { %v5323_v29 = vpop.f32.mrf.mxu2  ;;  %v6159_v37 = vpop.f32.mrf.mxu3 }
 0x643   :  { %v6970_v9 = vadd.f32 %v10811_v47, %v6881_v28  ;;  %v5428_v42 = vadd.f32 %v5323_v29, %v4600_v0 }
 0x645   :  { %v7055_v32 = vmax.f32 %v6970_v9, 0.0  ;;  %v6261_v58 = vadd.f32 %v6156_v19, %v5428_v42 }
 0x647   :  { %7140 = vst [vmem:[%s11140_s5 + $0x240] sm:$0xff] %v7055_v32  ;;  %v6793_v27 = vadd.f32 %v6688_v16, %v6261_v58 }
 0x648   :  { %v6691_v8 = vpop.f32.mrf.mxu0  ;;  %v4500_v60 = vpop.f32.mrf.mxu1 }
 0x649   :  { %v6882_v3 = vmul.f32 %v10804_v63, %v6793_v27  ;;  %v4602_v35 = vadd.f32 %v4500_v60, %v11332_v12  ;;  %v11336_v60 = vld [vmem:[#allocation21_spill] sm:$0xff] }
 0x64a   :  { %v5326_v21 = vpop.f32.mrf.mxu2  ;;  %v6161_v30 = vpop.f32.mrf.mxu3 }
 0x64b   :  { %v6971_v44 = vadd.f32 %v10811_v47, %v6882_v3  ;;  %v5429_v23 = vadd.f32 %v5326_v21, %v4601_v25 }
 0x64d   :  { %v7056_v6 = vmax.f32 %v6971_v44, 0.0  ;;  %v6262_v5 = vadd.f32 %v6159_v37, %v5429_v23 }
 0x64f   :  { %7141 = vst [vmem:[%s11140_s5 + $0x248] sm:$0xff] %v7056_v6  ;;  %v6794_v56 = vadd.f32 %v6691_v8, %v6262_v5 }
 0x650   :  { %v6693_v53 = vpop.f32.mrf.mxu0  ;;  %v4503_v62 = vpop.f32.mrf.mxu1 }
 0x651   :  { %v6883_v7 = vmul.f32 %v10804_v63, %v6794_v56  ;;  %v4603_v34 = vadd.f32 %v4503_v62, %v11333_v40  ;;  %v11337_v62 = vld [vmem:[#allocation23_spill] sm:$0xff] }
 0x652   :  { %v5328_v10 = vpop.f32.mrf.mxu2  ;;  %v6164_v18 = vpop.f32.mrf.mxu3 }
 0x653   :  { %v6972_v33 = vadd.f32 %v10811_v47, %v6883_v7  ;;  %v5430_v4 = vadd.f32 %v5328_v10, %v4602_v35 }
 0x655   :  { %v7057_v54 = vmax.f32 %v6972_v33, 0.0  ;;  %v6263_v39 = vadd.f32 %v6161_v30, %v5430_v4 }
 0x657   :  { %7142 = vst [vmem:[%s11140_s5 + $0x250] sm:$0xff] %v7057_v54  ;;  %v6795_v2 = vadd.f32 %v6693_v53, %v6263_v39 }
 0x658   :  { %v6696_v14 = vpop.f32.mrf.mxu0  ;;  %v4505_v59 = vpop.f32.mrf.mxu1 }
 0x659   :  { %v6884_v46 = vmul.f32 %v10804_v63, %v6795_v2  ;;  %v4604_v50 = vadd.f32 %v4505_v59, %v11334_v31  ;;  %v11338_v59 = vld [vmem:[#allocation25_spill] sm:$0xff] }
 0x65a   :  { %v5331_v24 = vpop.f32.mrf.mxu2  ;;  %v6166_v57 = vpop.f32.mrf.mxu3 }
 0x65b   :  { %v6973_v48 = vadd.f32 %v10811_v47, %v6884_v46  ;;  %v5431_v43 = vadd.f32 %v5331_v24, %v4603_v34 }
 0x65d   :  { %v7058_v22 = vmax.f32 %v6973_v48, 0.0  ;;  %v6264_v61 = vadd.f32 %v6164_v18, %v5431_v43 }
 0x65f   :  { %7143 = vst [vmem:[%s11140_s5 + $0x258] sm:$0xff] %v7058_v22  ;;  %v6796_v20 = vadd.f32 %v6696_v14, %v6264_v61 }
 0x660   :  { %v6698_v49 = vpop.f32.mrf.mxu0  ;;  %v4508_v52 = vpop.f32.mrf.mxu1 }
 0x661   :  { %v6885_v55 = vmul.f32 %v10804_v63, %v6796_v20  ;;  %v4605_v28 = vadd.f32 %v4508_v52, %v11335_v26  ;;  %v11339_v52 = vld [vmem:[#allocation27_spill] sm:$0xff] }
 0x662   :  { %v5333_v11 = vpop.f32.mrf.mxu2  ;;  %v6169_v17 = vpop.f32.mrf.mxu3 }
 0x663   :  { %v6974_v45 = vadd.f32 %v10811_v47, %v6885_v55  ;;  %v5432_v19 = vadd.f32 %v5333_v11, %v4604_v50 }
 0x665   :  { %v7059_v41 = vmax.f32 %v6974_v45, 0.0  ;;  %v6265_v51 = vadd.f32 %v6166_v57, %v5432_v19 }
 0x667   :  { %7144 = vst [vmem:[%s11140_s5 + $0x260] sm:$0xff] %v7059_v41  ;;  %v6797_v38 = vadd.f32 %v6698_v49, %v6265_v51 }
 0x668   :  { %v6701_v36 = vpop.f32.mrf.mxu0  ;;  %v4510_v1 = vpop.f32.mrf.mxu1 }
 0x669   :  { %v6886_v16 = vmul.f32 %v10804_v63, %v6797_v38  ;;  %v4606_v3 = vadd.f32 %v4510_v1, %v11336_v60  ;;  %v11340_v1 = vld [vmem:[#allocation29_spill] sm:$0xff] }
 0x66a   :  { %v5336_v15 = vpop.f32.mrf.mxu2  ;;  %v6171_v0 = vpop.f32.mrf.mxu3 }
 0x66b   :  { %v6975_v29 = vadd.f32 %v10811_v47, %v6886_v16  ;;  %v5433_v37 = vadd.f32 %v5336_v15, %v4605_v28 }
 0x66d   :  { %v7060_v9 = vmax.f32 %v6975_v29, 0.0  ;;  %v6266_v42 = vadd.f32 %v6169_v17, %v5433_v37 }
 0x66f   :  { %7145 = vst [vmem:[%s11140_s5 + $0x268] sm:$0xff] %v7060_v9  ;;  %v6798_v32 = vadd.f32 %v6701_v36, %v6266_v42 }
 0x670   :  { %v6703_v58 = vpop.f32.mrf.mxu0  ;;  %v4513_v27 = vpop.f32.mrf.mxu1 }
 0x671   :  { %v6887_v8 = vmul.f32 %v10804_v63, %v6798_v32  ;;  %v4607_v7 = vadd.f32 %v4513_v27, %v11337_v62  ;;  %v11341_v27 = vld [vmem:[#allocation31_spill] sm:$0xff] }
 0x672   :  { %v5338_v13 = vpop.f32.mrf.mxu2  ;;  %v6174_v25 = vpop.f32.mrf.mxu3 }
 0x673   :  { %v6976_v21 = vadd.f32 %v10811_v47, %v6887_v8  ;;  %v5434_v30 = vadd.f32 %v5338_v13, %v4606_v3 }
 0x675   :  { %v7061_v44 = vmax.f32 %v6976_v21, 0.0  ;;  %v6267_v23 = vadd.f32 %v6171_v0, %v5434_v30 }
 0x677   :  { %7146 = vst [vmem:[%s11140_s5 + $0x270] sm:$0xff] %v7061_v44  ;;  %v6799_v6 = vadd.f32 %v6703_v58, %v6267_v23 }
 0x678   :  { %v6706_v5 = vpop.f32.mrf.mxu0  ;;  %v4515_v56 = vpop.f32.mrf.mxu1 }
 0x679   :  { %v6888_v53 = vmul.f32 %v10804_v63, %v6799_v6  ;;  %v4608_v46 = vadd.f32 %v4515_v56, %v11338_v59 }
 0x67a   :  { %v5341_v12 = vpop.f32.mrf.mxu2  ;;  %v6176_v35 = vpop.f32.mrf.mxu3 }
 0x67b   :  { %v6977_v10 = vadd.f32 %v10811_v47, %v6888_v53  ;;  %v5435_v18 = vadd.f32 %v5341_v12, %v4607_v7 }
 0x67d   :  { %v7062_v33 = vmax.f32 %v6977_v10, 0.0  ;;  %v6268_v4 = vadd.f32 %v6174_v25, %v5435_v18 }
 0x67f   :  { %7147 = vst [vmem:[%s11140_s5 + $0x278] sm:$0xff] %v7062_v33  ;;  %v6800_v54 = vadd.f32 %v6706_v5, %v6268_v4 }
 0x680   :  { %v6708_v39 = vpop.f32.mrf.mxu0  ;;  %v4518_v2 = vpop.f32.mrf.mxu1 }
 0x681   :  { %v6889_v14 = vmul.f32 %v10804_v63, %v6800_v54  ;;  %v4609_v55 = vadd.f32 %v4518_v2, %v11339_v52 }
 0x682   :  { %v5343_v40 = vpop.f32.mrf.mxu2  ;;  %v6179_v34 = vpop.f32.mrf.mxu3 }
 0x683   :  { %v6978_v24 = vadd.f32 %v10811_v47, %v6889_v14  ;;  %v5436_v57 = vadd.f32 %v5343_v40, %v4608_v46 }
 0x685   :  { %v7063_v48 = vmax.f32 %v6978_v24, 0.0  ;;  %v6269_v43 = vadd.f32 %v6176_v35, %v5436_v57 }
 0x687   :  { %7148 = vst [vmem:[%s11140_s5 + $0x280] sm:$0xff] %v7063_v48  ;;  %v6801_v22 = vadd.f32 %v6708_v39, %v6269_v43 }
 0x688   :  { %v6711_v61 = vpop.f32.mrf.mxu0  ;;  %v4520_v20 = vpop.f32.mrf.mxu1 }
 0x689   :  { %v6890_v49 = vmul.f32 %v10804_v63, %v6801_v22  ;;  %v8481_v63 = vld [vmem:[%s11138_s3] ss:$0 sm:$0xff]  ;;  %v4610_v16 = vadd.f32 %v4520_v20, %v11340_v1 }
 0x68a   :  { %v5346_v31 = vpop.f32.mrf.mxu2  ;;  %v6181_v50 = vpop.f32.mrf.mxu3 }
 0x68b   :  { %v6979_v11 = vadd.f32 %v10811_v47, %v6890_v49  ;;  %v5437_v17 = vadd.f32 %v5346_v31, %v4609_v55  ;;  %v8482_v47 = vld [vmem:[%s11139_s4] ss:$0 sm:$0xff] }
 0x68d   :  { %v7064_v45 = vmax.f32 %v6979_v11, 0.0  ;;  %v6270_v19 = vadd.f32 %v6179_v34, %v5437_v17 }
 0x68f   :  { %7149 = vst [vmem:[%s11140_s5 + $0x288] sm:$0xff] %v7064_v45  ;;  %v6802_v41 = vadd.f32 %v6711_v61, %v6270_v19 }
 0x690   :  { %v6713_v51 = vpop.f32.mrf.mxu0  ;;  %v4523_v38 = vpop.f32.mrf.mxu1 }
 0x691   :  { %v6891_v36 = vmul.f32 %v8481_v63, %v6802_v41  ;;  %v4611_v8 = vadd.f32 %v4523_v38, %v11341_v27 }
 0x692   :  { %v5348_v26 = vpop.f32.mrf.mxu2  ;;  %v6184_v28 = vpop.f32.mrf.mxu3 }
 0x693   :  { %v6980_v15 = vadd.f32 %v8482_v47, %v6891_v36  ;;  %v5438_v0 = vadd.f32 %v5348_v26, %v4610_v16 }
 0x695   :  { %v7065_v29 = vmax.f32 %v6980_v15, 0.0  ;;  %v6271_v37 = vadd.f32 %v6181_v50, %v5438_v0 }
 0x697   :  { %7150 = vst [vmem:[%s11140_s5 + $0x290] sm:$0xff] %v7065_v29  ;;  %v6803_v9 = vadd.f32 %v6713_v51, %v6271_v37 }
 0x698   :  { %v6716_v42 = vpop.f32.mrf.mxu0  ;;  %v4525_v32 = vpop.f32.mrf.mxu1 }
 0x699   :  { %v6892_v58 = vmul.f32 %v8481_v63, %v6803_v9 }
 0x69a   :  { %v5351_v60 = vpop.f32.mrf.mxu2  ;;  %v6186_v3 = vpop.f32.mrf.mxu3 }
 0x69b   :  { %v6981_v13 = vadd.f32 %v8482_v47, %v6892_v58  ;;  %v5439_v25 = vadd.f32 %v5351_v60, %v4611_v8 }
 0x69d   :  { %v7066_v21 = vmax.f32 %v6981_v13, 0.0  ;;  %v6272_v30 = vadd.f32 %v6184_v28, %v5439_v25 }
 0x69f   :  { %7151 = vst [vmem:[%s11140_s5 + $0x298] sm:$0xff] %v7066_v21  ;;  %v6804_v44 = vadd.f32 %v6716_v42, %v6272_v30 }
 0x6a0   :  { %v6718_v23 = vpop.f32.mrf.mxu0 }
 0x6a1   :  { %v6893_v6 = vmul.f32 %v8481_v63, %v6804_v44 }
 0x6a2   :  { %v5353_v5 = vpop.f32.mrf.mxu2 }
 0x6a3   :  { %v6982_v56 = vadd.f32 %v8482_v47, %v6893_v6 }
 0x6a5   :  { %v7067_v53 = vmax.f32 %v6982_v56, 0.0 }
 0x6a7   :  { %7152 = vst [vmem:[%s11140_s5 + $0x2a0] sm:$0xff] %v7067_v53 }

</bundles_post_ra>
